<compile_context>
chip_gen: v7x
topology: tpu7x:2x2x1
jax: 0.10.0
libtpu: 0.0.40
codegen_flags: <defaults>
</compile_context>

<pallas_src>
import functools

import jax
import jax.numpy as jnp
from jax.experimental import pallas as pl
from jax.experimental.pallas import tpu as pltpu


_RB_KEYS = ("w1", "w2", "w3", "sc", "sh",
            "fc1w", "fc1b", "fc2w", "fc2b", "ssew", "sseb")


def _pad_geom(H, W):
    """Flat padded-image geometry: FRONT zeros (>= W+1, rounded to 128 so the
    interior store is lane-aligned), H*W interior, W+1 trailing zeros."""
    front = ((W + 1 + 127) // 128) * 128
    return front, front + H * W + W + 1


# ----------------------------------------------------------------------------
# Fused kernel: ResBlock1 -> ResBlock2 -> MaxPool2d(2,2), one batch per step.
# ----------------------------------------------------------------------------
def downsample_kernel(*refs, Cin, Cout, H, W, G, has_proj):
    HW = H * W
    cg = Cout // G
    FRONT, _ = _pad_geom(H, W)

    it = iter(refs)
    x_ref = next(it)          # (1, Cin, HW) bf16
    sel_ref = next(it)        # (HW, H2*W2) f32 even-(h,w) selection matrix

    def take_rb(with_proj):
        d = {k: next(it) for k in _RB_KEYS}
        if with_proj:
            d["projw"] = next(it)
            d["projb"] = next(it)
        return d

    rb1 = take_rb(has_proj)
    rb2 = take_rb(False)
    conv_ref = next(it)       # (1, Cout, HW) f32
    down_ref = next(it)       # (1, Cout, H2*W2) f32
    padA = next(it)           # (Cmax, PW) bf16   ping padded image
    padB = next(it)           # (Cmax, PW) bf16   pong padded image
    stk = next(it)            # (9*Cmax, HW) bf16 tap-stacked conv operand
    pool = next(it)           # (Cout, HW+W+1) f32 max-pool shift buffer

    # Scratch init: pad rows/guards and the pool tail must be zero.
    padA[...] = jnp.zeros(padA.shape, padA.dtype)
    padB[...] = jnp.zeros(padB.shape, padB.dtype)
    pool[...] = jnp.zeros(pool.shape, pool.dtype)

    # Column masks computed in-kernel (no streamed index input).
    lane = jax.lax.broadcasted_iota(jnp.int32, (1, HW), 1)
    col = (lane & (W - 1)) if (W & (W - 1)) == 0 else lane % W
    not_left = col != 0              # output col 0   has no w-1 neighbour
    not_right = col != (W - 1)       # output col W-1 has no w+1 neighbour

    def write_interior(pad, arr, c):
        pad[pl.ds(0, c), pl.ds(FRONT, HW)] = arr.astype(pad.dtype)

    def stack_taps(pad, c0, c):
        """Build the (9*c, HW) tap-stacked operand in VMEM and return it."""
        t = 0
        for dy in (-1, 0, 1):
            for dx in (-1, 0, 1):
                xs = pad[pl.ds(c0, c), pl.ds(FRONT + dy * W + dx, HW)]
                if dx == -1:
                    xs = jnp.where(not_left, xs, jnp.zeros_like(xs))
                elif dx == 1:
                    xs = jnp.where(not_right, xs, jnp.zeros_like(xs))
                stk[pl.ds(t * c, c), pl.ds(0, HW)] = xs
                t += 1
        return stk[pl.ds(0, 9 * c), pl.ds(0, HW)]

    def conv3x3(pad_in, c_in, w_ref, scale, shift, relu):
        """3x3 conv (+ folded BN affine, optional ReLU): one K=9*c_in matmul."""
        op = stack_taps(pad_in, 0, c_in)
        y = jnp.dot(w_ref[...], op, preferred_element_type=jnp.float32)
        y = y * scale + shift
        return jnp.maximum(y, 0.0) if relu else y

    def conv3x3_grouped_to_pad(pad_in, pad_out, w_ref, scale, shift):
        """Grouped 3x3 conv; each group's result goes straight into its
        output-channel slice of pad_out (no sublane concat)."""
        for g in range(G):
            op = stack_taps(pad_in, g * cg, cg)
            y = jnp.dot(w_ref[g], op, preferred_element_type=jnp.float32)
            y = y * scale[g * cg:(g + 1) * cg] + shift[g * cg:(g + 1) * cg]
            y = jnp.maximum(y, 0.0)
            pad_out[pl.ds(g * cg, cg), pl.ds(FRONT, HW)] = y.astype(pad_out.dtype)

    def scse_res_relu(h3, prm, res):
        """SCSE (cSE + sSE) + residual add + ReLU — f32 on VPU/XLU/EUP."""
        pooled = jnp.mean(h3, axis=1, keepdims=True)                    # (C,1)
        hid = jnp.sum(prm["fc1w"][...] * pooled, axis=0, keepdims=True) \
            + prm["fc1b"][...]
        hid = jnp.maximum(hid, 0.0)                                     # (1,Ch)
        gate = jax.nn.sigmoid(
            jnp.sum(prm["fc2w"][...] * hid, axis=1, keepdims=True)
            + prm["fc2b"][...])                                         # (C,1)
        smask = jax.nn.sigmoid(
            jnp.sum(h3 * prm["ssew"][...], axis=0, keepdims=True)
            + prm["sseb"][...])                                         # (1,HW)
        return jnp.maximum(h3 * gate + h3 * smask + res, 0.0)

    def resblock(x_bf16, c_in, prm, res):
        sc = prm["sc"][...]          # (3, Cout, 1) folded conv-bias + BN scale
        sh = prm["sh"][...]          # (3, Cout, 1) folded shift
        write_interior(padA, x_bf16, c_in)
        h1 = conv3x3(padA, c_in, prm["w1"], sc[0], sh[0], relu=True)
        write_interior(padB, h1, Cout)
        conv3x3_grouped_to_pad(padB, padA, prm["w2"], sc[1], sh[1])
        h3 = conv3x3(padA, Cout, prm["w3"], sc[2], sh[2], relu=False)
        return scse_res_relu(h3, prm, res)

    # ----------------------------- ResBlock 1 ------------------------------
    x_in = x_ref[0]                                            # (Cin, HW) bf16
    if has_proj:
        res1 = jnp.dot(rb1["projw"][...], x_in,
                       preferred_element_type=jnp.float32) + rb1["projb"][...]
    else:
        res1 = x_in.astype(jnp.float32)
    y1 = resblock(x_in, Cin, rb1, res1)                        # (Cout, HW) f32

    # ----------------------------- ResBlock 2 ------------------------------
    y2 = resblock(y1.astype(jnp.bfloat16), Cout, rb2, y1)      # (Cout, HW) f32
    conv_ref[0] = y2.astype(conv_ref.dtype)

    # ------------------------ fused MaxPool2d(2, 2) ------------------------
    # 2x2 window max via three shifted reads (+1, +W, +W+1); the wrap-around /
    # tail positions are never selected by `sel` (only even h, even w survive).
    pool[pl.ds(0, Cout), pl.ds(0, HW)] = y2
    a01 = pool[pl.ds(0, Cout), pl.ds(1, HW)]        # (h,   w+1)
    a10 = pool[pl.ds(0, Cout), pl.ds(W, HW)]        # (h+1, w  )
    a11 = pool[pl.ds(0, Cout), pl.ds(W + 1, HW)]    # (h+1, w+1)
    cm = jnp.maximum(jnp.maximum(y2, a01), jnp.maximum(a10, a11))
    down = jnp.dot(cm, sel_ref[...], preferred_element_type=jnp.float32)
    down_ref[0] = down.astype(down_ref.dtype)


# ----------------------------------------------------------------------------
# Parameter packing / initialization
# ----------------------------------------------------------------------------
def _pack_w3x3(w):
    """PyTorch-layout (Cout, Cin_g, 3, 3) -> (Cout, 9*Cin_g); rows ordered
    tap-major / input-channel-minor to match the kernel's tap stacking."""
    co, ci = w.shape[0], w.shape[1]
    return w.reshape(co, ci, 9).transpose(0, 2, 1).reshape(co, 9 * ci)


def _bn_fold(bias, out_ch, eps=1e-5):
    # TODO(synk): BN folded with identity running stats (untrained, eval mode).
    gamma = jnp.ones((out_ch,), jnp.float32)
    beta = jnp.zeros((out_ch,), jnp.float32)
    mean = jnp.zeros((out_ch,), jnp.float32)
    var = jnp.ones((out_ch,), jnp.float32)
    scale = gamma * jax.lax.rsqrt(var + eps)
    shift = beta + (bias - mean) * scale
    return scale.reshape(out_ch, 1), shift.reshape(out_ch, 1)


def init_resblock(key, in_ch, out_ch):
    ks = jax.random.split(key, 16)
    rnd = lambda k, s: jax.random.normal(k, s, jnp.float32) * 0.1
    G = 2 - out_ch % 2
    cg = out_ch // G
    ch = out_ch // 2                         # SCSE r=2 hidden width
    p = {}
    p["w1"] = _pack_w3x3(rnd(ks[0], (out_ch, in_ch, 3, 3))).astype(jnp.bfloat16)
    w2 = rnd(ks[1], (G, cg, cg, 3, 3))
    p["w2"] = jnp.stack([_pack_w3x3(w2[g]) for g in range(G)]).astype(jnp.bfloat16)
    p["w3"] = _pack_w3x3(rnd(ks[2], (out_ch, out_ch, 3, 3))).astype(jnp.bfloat16)
    scs, shs = [], []
    for i in range(3):                       # conv bias + BN fold per conv
        s, t = _bn_fold(rnd(ks[3 + i], (out_ch,)), out_ch)
        scs.append(s)
        shs.append(t)
    p["sc"] = jnp.stack(scs)                 # (3, out_ch, 1) f32
    p["sh"] = jnp.stack(shs)
    # cSE: Linear(out_ch->ch) stored transposed; Linear(ch->out_ch) natural.
    p["fc1w"] = rnd(ks[6], (out_ch, ch))
    p["fc1b"] = rnd(ks[7], (1, ch))
    p["fc2w"] = rnd(ks[8], (out_ch, ch))
    p["fc2b"] = rnd(ks[9], (out_ch, 1))
    # sSE: 1x1 conv out_ch -> 1 (+ bias).
    p["ssew"] = rnd(ks[10], (out_ch, 1))
    p["sseb"] = rnd(ks[11], (1, 1))
    if in_ch != out_ch:                      # 1x1 residual projection
        p["projw"] = rnd(ks[12], (out_ch, in_ch)).astype(jnp.bfloat16)
        p["projb"] = rnd(ks[13], (out_ch, 1))
    return p


# ----------------------------------------------------------------------------
# Wrapper
# ----------------------------------------------------------------------------
def downsample_forward(x_nchw, params):
    """Matches DownSample.forward: returns (down, conv), both NCHW f32."""
    N, Cin, H, W = x_nchw.shape
    rb1, rb2 = params["rb1"], params["rb2"]
    Cout = rb1["sc"].shape[1]
    G = rb1["w2"].shape[0]
    has_proj = "projw" in rb1
    HW = H * W
    H2, W2 = H // 2, W // 2
    HW2 = H2 * W2
    _, PW = _pad_geom(H, W)
    Cmax = max(Cin, Cout)

    # NCHW -> (N, C, H*W): channels on sublanes, pixels on lanes (free reshape)
    x = x_nchw.astype(jnp.bfloat16).reshape(N, Cin, HW)

    # Even-(h,w) decimation matrix for the fused 2x2 max-pool (one MXU matmul).
    j = jnp.arange(HW2)
    tgt = 2 * (j // W2) * W + 2 * (j % W2)
    sel = (jnp.arange(HW)[:, None] == tgt[None, :]).astype(jnp.float32)

    def rb_args(p, with_proj):
        a = [p[k] for k in _RB_KEYS]
        if with_proj:
            a += [p["projw"], p["projb"]]
        return a

    args = [x, sel] + rb_args(rb1, has_proj) + rb_args(rb2, False)

    def const_spec(a):
        return pl.BlockSpec(a.shape, lambda n, _z=(0,) * a.ndim: _z)

    in_specs = ([pl.BlockSpec((1, Cin, HW), lambda n: (n, 0, 0))]
                + [const_spec(a) for a in args[1:]])
    out_shape = (jax.ShapeDtypeStruct((N, Cout, HW), jnp.float32),
                 jax.ShapeDtypeStruct((N, Cout, HW2), jnp.float32))
    out_specs = (pl.BlockSpec((1, Cout, HW), lambda n: (n, 0, 0)),
                 pl.BlockSpec((1, Cout, HW2), lambda n: (n, 0, 0)))

    def _rb_flops(ci):
        return (2 * 9 * Cout * ci * HW + 2 * 9 * Cout * (Cout // G) * HW
                + 2 * 9 * Cout * Cout * HW + 8 * Cout * HW)

    flops = N * (_rb_flops(Cin) + _rb_flops(Cout)
                 + (2 * Cout * Cin * HW if has_proj else 0)
                 + 2 * Cout * HW * HW2)
    cost = pl.CostEstimate(
        flops=int(flops),
        transcendentals=int(N * 2 * (Cout + HW)),
        bytes_accessed=int(x.size * 2 + sel.size * 4
                           + sum(int(a.size) * a.dtype.itemsize for a in args[2:])
                           + N * Cout * (HW + HW2) * 4))

    kern = functools.partial(downsample_kernel, Cin=Cin, Cout=Cout, H=H, W=W,
                             G=G, has_proj=has_proj)
    conv_flat, down_flat = pl.pallas_call(
        kern,
        out_shape=out_shape,
        grid=(N,),
        in_specs=in_specs,
        out_specs=out_specs,
        scratch_shapes=[
            pltpu.VMEM((Cmax, PW), jnp.bfloat16),         # ping padded image
            pltpu.VMEM((Cmax, PW), jnp.bfloat16),         # pong padded image
            pltpu.VMEM((9 * Cmax, HW), jnp.bfloat16),     # tap-stacked operand
            pltpu.VMEM((Cout, HW + W + 1), jnp.float32),  # max-pool shifts
        ],
        compiler_params=pltpu.CompilerParams(
            dimension_semantics=("parallel",),
            vmem_limit_bytes=32 * 1024 * 1024),
        cost_estimate=cost,
    )(*args)

    down = down_flat.reshape(N, Cout, H2, W2)
    conv = conv_flat.reshape(N, Cout, H, W)
    return down, conv


# ----------------------------------------------------------------------------
if __name__ == "__main__":
    key = jax.random.PRNGKey(0)
    kx, k1, k2 = jax.random.split(key, 3)

    N, in_ch, H, W = 2, 4, 16, 16
    out_ch = 8

    x = jax.random.normal(kx, (N, in_ch, H, W), jnp.float32)
    params = {
        "rb1": init_resblock(k1, in_ch, out_ch),
        "rb2": init_resblock(k2, out_ch, out_ch),
    }

    fwd = jax.jit(downsample_forward)
    down, conv = fwd(x, params)
    down = jax.block_until_ready(down)
    conv = jax.block_until_ready(conv)

    assert down.shape == (N, out_ch, H // 2, W // 2), down.shape
    assert conv.shape == (N, out_ch, H, W), conv.shape
    assert bool(jnp.all(jnp.isfinite(down))) and bool(jnp.all(jnp.isfinite(conv)))

    print("KERNEL_OK")
</pallas_src>

<mosaic_0001>
module attributes {stable_mosaic.version = 11 : i64} {
  func.func @downsample_kernel(%arg0: i32, %arg1: memref<1x4x256xbf16, #tpu.memory_space<vmem>>, %arg2: memref<256x64xf32, #tpu.memory_space<vmem>>, %arg3: memref<8x36xbf16, #tpu.memory_space<vmem>>, %arg4: memref<2x4x36xbf16, #tpu.memory_space<vmem>>, %arg5: memref<8x72xbf16, #tpu.memory_space<vmem>>, %arg6: memref<3x8x1xf32, #tpu.memory_space<vmem>>, %arg7: memref<3x8x1xf32, #tpu.memory_space<vmem>>, %arg8: memref<8x4xf32, #tpu.memory_space<vmem>>, %arg9: memref<1x4xf32, #tpu.memory_space<vmem>>, %arg10: memref<8x4xf32, #tpu.memory_space<vmem>>, %arg11: memref<8x1xf32, #tpu.memory_space<vmem>>, %arg12: memref<8x1xf32, #tpu.memory_space<vmem>>, %arg13: memref<1x1xf32, #tpu.memory_space<vmem>>, %arg14: memref<8x4xbf16, #tpu.memory_space<vmem>>, %arg15: memref<8x1xf32, #tpu.memory_space<vmem>>, %arg16: memref<8x72xbf16, #tpu.memory_space<vmem>>, %arg17: memref<2x4x36xbf16, #tpu.memory_space<vmem>>, %arg18: memref<8x72xbf16, #tpu.memory_space<vmem>>, %arg19: memref<3x8x1xf32, #tpu.memory_space<vmem>>, %arg20: memref<3x8x1xf32, #tpu.memory_space<vmem>>, %arg21: memref<8x4xf32, #tpu.memory_space<vmem>>, %arg22: memref<1x4xf32, #tpu.memory_space<vmem>>, %arg23: memref<8x4xf32, #tpu.memory_space<vmem>>, %arg24: memref<8x1xf32, #tpu.memory_space<vmem>>, %arg25: memref<8x1xf32, #tpu.memory_space<vmem>>, %arg26: memref<1x1xf32, #tpu.memory_space<vmem>>, %arg27: memref<1x8x256xf32, #tpu.memory_space<vmem>>, %arg28: memref<1x8x64xf32, #tpu.memory_space<vmem>>, %arg29: memref<8x401xbf16, #tpu.memory_space<vmem>>, %arg30: memref<8x401xbf16, #tpu.memory_space<vmem>>, %arg31: memref<72x256xbf16, #tpu.memory_space<vmem>>, %arg32: memref<8x273xf32, #tpu.memory_space<vmem>>) attributes {dimension_semantics = [#tpu.dimension_semantics<parallel>], iteration_bounds = array<i64: 2>, scalar_prefetch = 0 : i64, scratch_operands = 4 : i64, tpu.core_type = #tpu.core_type<tc>, window_params = [{transform_indices = @transform_0, window_bounds = array<i64: 1, 4, 256>}, {pipeline_mode = #tpu.pipeline_mode<synchronous>, transform_indices = @transform_1, window_bounds = array<i64: 256, 64>}, {pipeline_mode = #tpu.pipeline_mode<synchronous>, transform_indices = @transform_2, window_bounds = array<i64: 8, 36>}, {pipeline_mode = #tpu.pipeline_mode<synchronous>, transform_indices = @transform_3, window_bounds = array<i64: 2, 4, 36>}, {pipeline_mode = #tpu.pipeline_mode<synchronous>, transform_indices = @transform_4, window_bounds = array<i64: 8, 72>}, {pipeline_mode = #tpu.pipeline_mode<synchronous>, transform_indices = @transform_5, window_bounds = array<i64: 3, 8, 1>}, {pipeline_mode = #tpu.pipeline_mode<synchronous>, transform_indices = @transform_6, window_bounds = array<i64: 3, 8, 1>}, {pipeline_mode = #tpu.pipeline_mode<synchronous>, transform_indices = @transform_7, window_bounds = array<i64: 8, 4>}, {pipeline_mode = #tpu.pipeline_mode<synchronous>, transform_indices = @transform_8, window_bounds = array<i64: 1, 4>}, {pipeline_mode = #tpu.pipeline_mode<synchronous>, transform_indices = @transform_9, window_bounds = array<i64: 8, 4>}, {pipeline_mode = #tpu.pipeline_mode<synchronous>, transform_indices = @transform_10, window_bounds = array<i64: 8, 1>}, {pipeline_mode = #tpu.pipeline_mode<synchronous>, transform_indices = @transform_11, window_bounds = array<i64: 8, 1>}, {pipeline_mode = #tpu.pipeline_mode<synchronous>, transform_indices = @transform_12, window_bounds = array<i64: 1, 1>}, {pipeline_mode = #tpu.pipeline_mode<synchronous>, transform_indices = @transform_13, window_bounds = array<i64: 8, 4>}, {pipeline_mode = #tpu.pipeline_mode<synchronous>, transform_indices = @transform_14, window_bounds = array<i64: 8, 1>}, {pipeline_mode = #tpu.pipeline_mode<synchronous>, transform_indices = @transform_15, window_bounds = array<i64: 8, 72>}, {pipeline_mode = #tpu.pipeline_mode<synchronous>, transform_indices = @transform_16, window_bounds = array<i64: 2, 4, 36>}, {pipeline_mode = #tpu.pipeline_mode<synchronous>, transform_indices = @transform_17, window_bounds = array<i64: 8, 72>}, {pipeline_mode = #tpu.pipeline_mode<synchronous>, transform_indices = @transform_18, window_bounds = array<i64: 3, 8, 1>}, {pipeline_mode = #tpu.pipeline_mode<synchronous>, transform_indices = @transform_19, window_bounds = array<i64: 3, 8, 1>}, {pipeline_mode = #tpu.pipeline_mode<synchronous>, transform_indices = @transform_20, window_bounds = array<i64: 8, 4>}, {pipeline_mode = #tpu.pipeline_mode<synchronous>, transform_indices = @transform_21, window_bounds = array<i64: 1, 4>}, {pipeline_mode = #tpu.pipeline_mode<synchronous>, transform_indices = @transform_22, window_bounds = array<i64: 8, 4>}, {pipeline_mode = #tpu.pipeline_mode<synchronous>, transform_indices = @transform_23, window_bounds = array<i64: 8, 1>}, {pipeline_mode = #tpu.pipeline_mode<synchronous>, transform_indices = @transform_24, window_bounds = array<i64: 8, 1>}, {pipeline_mode = #tpu.pipeline_mode<synchronous>, transform_indices = @transform_25, window_bounds = array<i64: 1, 1>}, {transform_indices = @transform_26, window_bounds = array<i64: 1, 8, 256>}, {transform_indices = @transform_27, window_bounds = array<i64: 1, 8, 64>}]} {
    %cst = arith.constant 0.000000e+00 : bf16
    %0 = vector.broadcast %cst : bf16 to vector<8x401xbf16>
    %c0 = arith.constant 0 : index
    %c0_0 = arith.constant 0 : index
    %1 = vector.load %arg29[%c0, %c0_0] : memref<8x401xbf16, #tpu.memory_space<vmem>>, vector<8x401xbf16>
    tpu.vector_store %arg29[%c0, %c0_0], %0 {strides = array<i32>} : memref<8x401xbf16, #tpu.memory_space<vmem>>, vector<8x401xbf16>,
    %cst_1 = arith.constant 0.000000e+00 : bf16
    %2 = vector.broadcast %cst_1 : bf16 to vector<8x401xbf16>
    %c0_2 = arith.constant 0 : index
    %c0_3 = arith.constant 0 : index
    %3 = vector.load %arg30[%c0_2, %c0_3] : memref<8x401xbf16, #tpu.memory_space<vmem>>, vector<8x401xbf16>
    tpu.vector_store %arg30[%c0_2, %c0_3], %2 {strides = array<i32>} : memref<8x401xbf16, #tpu.memory_space<vmem>>, vector<8x401xbf16>,
    %cst_4 = arith.constant 0.000000e+00 : f32
    %4 = vector.broadcast %cst_4 : f32 to vector<8x273xf32>
    %c0_5 = arith.constant 0 : index
    %c0_6 = arith.constant 0 : index
    %5 = vector.load %arg32[%c0_5, %c0_6] : memref<8x273xf32, #tpu.memory_space<vmem>>, vector<8x273xf32>
    tpu.vector_store %arg32[%c0_5, %c0_6], %4 {strides = array<i32>} : memref<8x273xf32, #tpu.memory_space<vmem>>, vector<8x273xf32>,
    %6 = tpu.iota {dimensions = array<i32: 1>} : vector<1x256xi32>
    %c15_i32 = arith.constant 15 : i32
    %7 = vector.broadcast %c15_i32 : i32 to vector<1x256xi32>
    %8 = arith.andi %6, %7 : vector<1x256xi32>
    %c0_i32 = arith.constant 0 : i32
    %9 = vector.broadcast %c0_i32 : i32 to vector<1x256xi32>
    %10 = arith.cmpi ne, %8, %9 : vector<1x256xi32>
    %c15_i32_7 = arith.constant 15 : i32
    %11 = vector.broadcast %c15_i32_7 : i32 to vector<1x256xi32>
    %12 = arith.cmpi ne, %8, %11 : vector<1x256xi32>
    %c0_8 = arith.constant 0 : index
    %c0_9 = arith.constant 0 : index
    %c0_10 = arith.constant 0 : index
    %13 = vector.load %arg1[%c0_8, %c0_9, %c0_10] : memref<1x4x256xbf16, #tpu.memory_space<vmem>>, vector<1x4x256xbf16>
    %14 = vector.shape_cast %13 : vector<1x4x256xbf16> to vector<4x256xbf16>
    %c0_11 = arith.constant 0 : index
    %c0_12 = arith.constant 0 : index
    %15 = vector.load %arg14[%c0_11, %c0_12] : memref<8x4xbf16, #tpu.memory_space<vmem>>, vector<8x4xbf16>
    %cst_13 = arith.constant dense<0.000000e+00> : vector<8x256xf32>
    %16 = tpu.matmul %15, %14, %cst_13 {dimension_numbers = #tpu.dot_dimension_numbers<[1], [0], [0], [1], [0, 0, 1, 1], [], []>} : vector<8x4xbf16>, vector<4x256xbf16>, vector<8x256xf32> -> vector<8x256xf32>
    %c0_14 = arith.constant 0 : index
    %c0_15 = arith.constant 0 : index
    %17 = vector.load %arg15[%c0_14, %c0_15] : memref<8x1xf32, #tpu.memory_space<vmem>>, vector<8x1xf32>
    %18 = vector.broadcast %17 : vector<8x1xf32> to vector<8x256xf32>
    %19 = arith.addf %16, %18 : vector<8x256xf32>
    %c0_16 = arith.constant 0 : index
    %c0_17 = arith.constant 0 : index
    %c0_18 = arith.constant 0 : index
    %20 = vector.load %arg6[%c0_16, %c0_17, %c0_18] : memref<3x8x1xf32, #tpu.memory_space<vmem>>, vector<3x8x1xf32>
    %c0_19 = arith.constant 0 : index
    %c0_20 = arith.constant 0 : index
    %c0_21 = arith.constant 0 : index
    %21 = vector.load %arg7[%c0_19, %c0_20, %c0_21] : memref<3x8x1xf32, #tpu.memory_space<vmem>>, vector<3x8x1xf32>
    %c0_22 = arith.constant 0 : index
    %c128 = arith.constant 128 : index
    %22 = vector.load %arg29[%c0_22, %c128] : memref<8x401xbf16, #tpu.memory_space<vmem>>, vector<4x256xbf16>
    tpu.vector_store %arg29[%c0_22, %c128], %14 {strides = array<i32>} : memref<8x401xbf16, #tpu.memory_space<vmem>>, vector<4x256xbf16>,
    %23 = vector.extract_strided_slice %20 {offsets = [0, 0, 0], sizes = [1, 8, 1], strides = [1, 1, 1]} : vector<3x8x1xf32> to vector<1x8x1xf32>
    %24 = vector.shape_cast %23 : vector<1x8x1xf32> to vector<8x1xf32>
    %25 = vector.extract_strided_slice %21 {offsets = [0, 0, 0], sizes = [1, 8, 1], strides = [1, 1, 1]} : vector<3x8x1xf32> to vector<1x8x1xf32>
    %26 = vector.shape_cast %25 : vector<1x8x1xf32> to vector<8x1xf32>
    %c0_23 = arith.constant 0 : index
    %c111 = arith.constant 111 : index
    %27 = vector.load %arg29[%c0_23, %c111] : memref<8x401xbf16, #tpu.memory_space<vmem>>, vector<4x256xbf16>
    %cst_24 = arith.constant 0.000000e+00 : bf16
    %28 = vector.broadcast %cst_24 : bf16 to vector<4x256xbf16>
    %29 = vector.shape_cast %10 : vector<1x256xi1> to vector<1x256xi1>
    %30 = vector.broadcast %29 : vector<1x256xi1> to vector<4x256xi1>
    %31 = arith.select %30, %27, %28 : vector<4x256xi1>, vector<4x256xbf16>
    %c0_25 = arith.constant 0 : index
    %c0_26 = arith.constant 0 : index
    %32 = vector.load %arg31[%c0_25, %c0_26] : memref<72x256xbf16, #tpu.memory_space<vmem>>, vector<4x256xbf16>
    tpu.vector_store %arg31[%c0_25, %c0_26], %31 {strides = array<i32>} : memref<72x256xbf16, #tpu.memory_space<vmem>>, vector<4x256xbf16>,
    %c0_27 = arith.constant 0 : index
    %c112 = arith.constant 112 : index
    %33 = vector.load %arg29[%c0_27, %c112] : memref<8x401xbf16, #tpu.memory_space<vmem>>, vector<4x256xbf16>
    %c4 = arith.constant 4 : index
    %c0_28 = arith.constant 0 : index
    %34 = vector.load %arg31[%c4, %c0_28] : memref<72x256xbf16, #tpu.memory_space<vmem>>, vector<4x256xbf16>
    tpu.vector_store %arg31[%c4, %c0_28], %33 {strides = array<i32>} : memref<72x256xbf16, #tpu.memory_space<vmem>>, vector<4x256xbf16>,
    %c0_29 = arith.constant 0 : index
    %c113 = arith.constant 113 : index
    %35 = vector.load %arg29[%c0_29, %c113] : memref<8x401xbf16, #tpu.memory_space<vmem>>, vector<4x256xbf16>
    %cst_30 = arith.constant 0.000000e+00 : bf16
    %36 = vector.broadcast %cst_30 : bf16 to vector<4x256xbf16>
    %37 = vector.shape_cast %12 : vector<1x256xi1> to vector<1x256xi1>
    %38 = vector.broadcast %37 : vector<1x256xi1> to vector<4x256xi1>
    %39 = arith.select %38, %35, %36 : vector<4x256xi1>, vector<4x256xbf16>
    %c8 = arith.constant 8 : index
    %c0_31 = arith.constant 0 : index
    %40 = vector.load %arg31[%c8, %c0_31] : memref<72x256xbf16, #tpu.memory_space<vmem>>, vector<4x256xbf16>
    tpu.vector_store %arg31[%c8, %c0_31], %39 {strides = array<i32>} : memref<72x256xbf16, #tpu.memory_space<vmem>>, vector<4x256xbf16>,
    %c0_32 = arith.constant 0 : index
    %c127 = arith.constant 127 : index
    %41 = vector.load %arg29[%c0_32, %c127] : memref<8x401xbf16, #tpu.memory_space<vmem>>, vector<4x256xbf16>
    %cst_33 = arith.constant 0.000000e+00 : bf16
    %42 = vector.broadcast %cst_33 : bf16 to vector<4x256xbf16>
    %43 = vector.shape_cast %10 : vector<1x256xi1> to vector<1x256xi1>
    %44 = vector.broadcast %43 : vector<1x256xi1> to vector<4x256xi1>
    %45 = arith.select %44, %41, %42 : vector<4x256xi1>, vector<4x256xbf16>
    %c12 = arith.constant 12 : index
    %c0_34 = arith.constant 0 : index
    %46 = vector.load %arg31[%c12, %c0_34] : memref<72x256xbf16, #tpu.memory_space<vmem>>, vector<4x256xbf16>
    tpu.vector_store %arg31[%c12, %c0_34], %45 {strides = array<i32>} : memref<72x256xbf16, #tpu.memory_space<vmem>>, vector<4x256xbf16>,
    %c0_35 = arith.constant 0 : index
    %c128_36 = arith.constant 128 : index
    %47 = vector.load %arg29[%c0_35, %c128_36] : memref<8x401xbf16, #tpu.memory_space<vmem>>, vector<4x256xbf16>
    %c16 = arith.constant 16 : index
    %c0_37 = arith.constant 0 : index
    %48 = vector.load %arg31[%c16, %c0_37] : memref<72x256xbf16, #tpu.memory_space<vmem>>, vector<4x256xbf16>
    tpu.vector_store %arg31[%c16, %c0_37], %47 {strides = array<i32>} : memref<72x256xbf16, #tpu.memory_space<vmem>>, vector<4x256xbf16>,
    %c0_38 = arith.constant 0 : index
    %c129 = arith.constant 129 : index
    %49 = vector.load %arg29[%c0_38, %c129] : memref<8x401xbf16, #tpu.memory_space<vmem>>, vector<4x256xbf16>
    %cst_39 = arith.constant 0.000000e+00 : bf16
    %50 = vector.broadcast %cst_39 : bf16 to vector<4x256xbf16>
    %51 = vector.shape_cast %12 : vector<1x256xi1> to vector<1x256xi1>
    %52 = vector.broadcast %51 : vector<1x256xi1> to vector<4x256xi1>
    %53 = arith.select %52, %49, %50 : vector<4x256xi1>, vector<4x256xbf16>
    %c20 = arith.constant 20 : index
    %c0_40 = arith.constant 0 : index
    %54 = vector.load %arg31[%c20, %c0_40] : memref<72x256xbf16, #tpu.memory_space<vmem>>, vector<4x256xbf16>
    tpu.vector_store %arg31[%c20, %c0_40], %53 {strides = array<i32>} : memref<72x256xbf16, #tpu.memory_space<vmem>>, vector<4x256xbf16>,
    %c0_41 = arith.constant 0 : index
    %c143 = arith.constant 143 : index
    %55 = vector.load %arg29[%c0_41, %c143] : memref<8x401xbf16, #tpu.memory_space<vmem>>, vector<4x256xbf16>
    %cst_42 = arith.constant 0.000000e+00 : bf16
    %56 = vector.broadcast %cst_42 : bf16 to vector<4x256xbf16>
    %57 = vector.shape_cast %10 : vector<1x256xi1> to vector<1x256xi1>
    %58 = vector.broadcast %57 : vector<1x256xi1> to vector<4x256xi1>
    %59 = arith.select %58, %55, %56 : vector<4x256xi1>, vector<4x256xbf16>
    %c24 = arith.constant 24 : index
    %c0_43 = arith.constant 0 : index
    %60 = vector.load %arg31[%c24, %c0_43] : memref<72x256xbf16, #tpu.memory_space<vmem>>, vector<4x256xbf16>
    tpu.vector_store %arg31[%c24, %c0_43], %59 {strides = array<i32>} : memref<72x256xbf16, #tpu.memory_space<vmem>>, vector<4x256xbf16>,
    %c0_44 = arith.constant 0 : index
    %c144 = arith.constant 144 : index
    %61 = vector.load %arg29[%c0_44, %c144] : memref<8x401xbf16, #tpu.memory_space<vmem>>, vector<4x256xbf16>
    %c28 = arith.constant 28 : index
    %c0_45 = arith.constant 0 : index
    %62 = vector.load %arg31[%c28, %c0_45] : memref<72x256xbf16, #tpu.memory_space<vmem>>, vector<4x256xbf16>
    tpu.vector_store %arg31[%c28, %c0_45], %61 {strides = array<i32>} : memref<72x256xbf16, #tpu.memory_space<vmem>>, vector<4x256xbf16>,
    %c0_46 = arith.constant 0 : index
    %c145 = arith.constant 145 : index
    %63 = vector.load %arg29[%c0_46, %c145] : memref<8x401xbf16, #tpu.memory_space<vmem>>, vector<4x256xbf16>
    %cst_47 = arith.constant 0.000000e+00 : bf16
    %64 = vector.broadcast %cst_47 : bf16 to vector<4x256xbf16>
    %65 = vector.shape_cast %12 : vector<1x256xi1> to vector<1x256xi1>
    %66 = vector.broadcast %65 : vector<1x256xi1> to vector<4x256xi1>
    %67 = arith.select %66, %63, %64 : vector<4x256xi1>, vector<4x256xbf16>
    %c32 = arith.constant 32 : index
    %c0_48 = arith.constant 0 : index
    %68 = vector.load %arg31[%c32, %c0_48] : memref<72x256xbf16, #tpu.memory_space<vmem>>, vector<4x256xbf16>
    tpu.vector_store %arg31[%c32, %c0_48], %67 {strides = array<i32>} : memref<72x256xbf16, #tpu.memory_space<vmem>>, vector<4x256xbf16>,
    %c0_49 = arith.constant 0 : index
    %c0_50 = arith.constant 0 : index
    %69 = vector.load %arg31[%c0_49, %c0_50] : memref<72x256xbf16, #tpu.memory_space<vmem>>, vector<36x256xbf16>
    %c0_51 = arith.constant 0 : index
    %c0_52 = arith.constant 0 : index
    %70 = vector.load %arg3[%c0_51, %c0_52] : memref<8x36xbf16, #tpu.memory_space<vmem>>, vector<8x36xbf16>
    %cst_53 = arith.constant dense<0.000000e+00> : vector<8x256xf32>
    %71 = tpu.matmul %70, %69, %cst_53 {dimension_numbers = #tpu.dot_dimension_numbers<[1], [0], [0], [1], [0, 0, 1, 1], [], []>} : vector<8x36xbf16>, vector<36x256xbf16>, vector<8x256xf32> -> vector<8x256xf32>
    %72 = vector.broadcast %24 : vector<8x1xf32> to vector<8x256xf32>
    %73 = arith.mulf %71, %72 : vector<8x256xf32>
    %74 = vector.broadcast %26 : vector<8x1xf32> to vector<8x256xf32>
    %75 = arith.addf %73, %74 : vector<8x256xf32>
    %cst_54 = arith.constant 0.000000e+00 : f32
    %76 = vector.broadcast %cst_54 : f32 to vector<8x256xf32>
    %77 = arith.maximumf %75, %76 : vector<8x256xf32>
    %78 = arith.truncf %77 : vector<8x256xf32> to vector<8x256xbf16>
    %c0_55 = arith.constant 0 : index
    %c128_56 = arith.constant 128 : index
    %79 = vector.load %arg30[%c0_55, %c128_56] : memref<8x401xbf16, #tpu.memory_space<vmem>>, vector<8x256xbf16>
    tpu.vector_store %arg30[%c0_55, %c128_56], %78 {strides = array<i32>} : memref<8x401xbf16, #tpu.memory_space<vmem>>, vector<8x256xbf16>,
    %80 = vector.extract_strided_slice %20 {offsets = [1, 0, 0], sizes = [1, 8, 1], strides = [1, 1, 1]} : vector<3x8x1xf32> to vector<1x8x1xf32>
    %81 = vector.shape_cast %80 : vector<1x8x1xf32> to vector<8x1xf32>
    %82 = vector.extract_strided_slice %21 {offsets = [1, 0, 0], sizes = [1, 8, 1], strides = [1, 1, 1]} : vector<3x8x1xf32> to vector<1x8x1xf32>
    %83 = vector.shape_cast %82 : vector<1x8x1xf32> to vector<8x1xf32>
    %c0_57 = arith.constant 0 : index
    %c111_58 = arith.constant 111 : index
    %84 = vector.load %arg30[%c0_57, %c111_58] : memref<8x401xbf16, #tpu.memory_space<vmem>>, vector<4x256xbf16>
    %cst_59 = arith.constant 0.000000e+00 : bf16
    %85 = vector.broadcast %cst_59 : bf16 to vector<4x256xbf16>
    %86 = vector.shape_cast %10 : vector<1x256xi1> to vector<1x256xi1>
    %87 = vector.broadcast %86 : vector<1x256xi1> to vector<4x256xi1>
    %88 = arith.select %87, %84, %85 : vector<4x256xi1>, vector<4x256xbf16>
    %c0_60 = arith.constant 0 : index
    %c0_61 = arith.constant 0 : index
    %89 = vector.load %arg31[%c0_60, %c0_61] : memref<72x256xbf16, #tpu.memory_space<vmem>>, vector<4x256xbf16>
    tpu.vector_store %arg31[%c0_60, %c0_61], %88 {strides = array<i32>} : memref<72x256xbf16, #tpu.memory_space<vmem>>, vector<4x256xbf16>,
    %c0_62 = arith.constant 0 : index
    %c112_63 = arith.constant 112 : index
    %90 = vector.load %arg30[%c0_62, %c112_63] : memref<8x401xbf16, #tpu.memory_space<vmem>>, vector<4x256xbf16>
    %c4_64 = arith.constant 4 : index
    %c0_65 = arith.constant 0 : index
    %91 = vector.load %arg31[%c4_64, %c0_65] : memref<72x256xbf16, #tpu.memory_space<vmem>>, vector<4x256xbf16>
    tpu.vector_store %arg31[%c4_64, %c0_65], %90 {strides = array<i32>} : memref<72x256xbf16, #tpu.memory_space<vmem>>, vector<4x256xbf16>,
    %c0_66 = arith.constant 0 : index
    %c113_67 = arith.constant 113 : index
    %92 = vector.load %arg30[%c0_66, %c113_67] : memref<8x401xbf16, #tpu.memory_space<vmem>>, vector<4x256xbf16>
    %cst_68 = arith.constant 0.000000e+00 : bf16
    %93 = vector.broadcast %cst_68 : bf16 to vector<4x256xbf16>
    %94 = vector.shape_cast %12 : vector<1x256xi1> to vector<1x256xi1>
    %95 = vector.broadcast %94 : vector<1x256xi1> to vector<4x256xi1>
    %96 = arith.select %95, %92, %93 : vector<4x256xi1>, vector<4x256xbf16>
    %c8_69 = arith.constant 8 : index
    %c0_70 = arith.constant 0 : index
    %97 = vector.load %arg31[%c8_69, %c0_70] : memref<72x256xbf16, #tpu.memory_space<vmem>>, vector<4x256xbf16>
    tpu.vector_store %arg31[%c8_69, %c0_70], %96 {strides = array<i32>} : memref<72x256xbf16, #tpu.memory_space<vmem>>, vector<4x256xbf16>,
    %c0_71 = arith.constant 0 : index
    %c127_72 = arith.constant 127 : index
    %98 = vector.load %arg30[%c0_71, %c127_72] : memref<8x401xbf16, #tpu.memory_space<vmem>>, vector<4x256xbf16>
    %cst_73 = arith.constant 0.000000e+00 : bf16
    %99 = vector.broadcast %cst_73 : bf16 to vector<4x256xbf16>
    %100 = vector.shape_cast %10 : vector<1x256xi1> to vector<1x256xi1>
    %101 = vector.broadcast %100 : vector<1x256xi1> to vector<4x256xi1>
    %102 = arith.select %101, %98, %99 : vector<4x256xi1>, vector<4x256xbf16>
    %c12_74 = arith.constant 12 : index
    %c0_75 = arith.constant 0 : index
    %103 = vector.load %arg31[%c12_74, %c0_75] : memref<72x256xbf16, #tpu.memory_space<vmem>>, vector<4x256xbf16>
    tpu.vector_store %arg31[%c12_74, %c0_75], %102 {strides = array<i32>} : memref<72x256xbf16, #tpu.memory_space<vmem>>, vector<4x256xbf16>,
    %c0_76 = arith.constant 0 : index
    %c128_77 = arith.constant 128 : index
    %104 = vector.load %arg30[%c0_76, %c128_77] : memref<8x401xbf16, #tpu.memory_space<vmem>>, vector<4x256xbf16>
    %c16_78 = arith.constant 16 : index
    %c0_79 = arith.constant 0 : index
    %105 = vector.load %arg31[%c16_78, %c0_79] : memref<72x256xbf16, #tpu.memory_space<vmem>>, vector<4x256xbf16>
    tpu.vector_store %arg31[%c16_78, %c0_79], %104 {strides = array<i32>} : memref<72x256xbf16, #tpu.memory_space<vmem>>, vector<4x256xbf16>,
    %c0_80 = arith.constant 0 : index
    %c129_81 = arith.constant 129 : index
    %106 = vector.load %arg30[%c0_80, %c129_81] : memref<8x401xbf16, #tpu.memory_space<vmem>>, vector<4x256xbf16>
    %cst_82 = arith.constant 0.000000e+00 : bf16
    %107 = vector.broadcast %cst_82 : bf16 to vector<4x256xbf16>
    %108 = vector.shape_cast %12 : vector<1x256xi1> to vector<1x256xi1>
    %109 = vector.broadcast %108 : vector<1x256xi1> to vector<4x256xi1>
    %110 = arith.select %109, %106, %107 : vector<4x256xi1>, vector<4x256xbf16>
    %c20_83 = arith.constant 20 : index
    %c0_84 = arith.constant 0 : index
    %111 = vector.load %arg31[%c20_83, %c0_84] : memref<72x256xbf16, #tpu.memory_space<vmem>>, vector<4x256xbf16>
    tpu.vector_store %arg31[%c20_83, %c0_84], %110 {strides = array<i32>} : memref<72x256xbf16, #tpu.memory_space<vmem>>, vector<4x256xbf16>,
    %c0_85 = arith.constant 0 : index
    %c143_86 = arith.constant 143 : index
    %112 = vector.load %arg30[%c0_85, %c143_86] : memref<8x401xbf16, #tpu.memory_space<vmem>>, vector<4x256xbf16>
    %cst_87 = arith.constant 0.000000e+00 : bf16
    %113 = vector.broadcast %cst_87 : bf16 to vector<4x256xbf16>
    %114 = vector.shape_cast %10 : vector<1x256xi1> to vector<1x256xi1>
    %115 = vector.broadcast %114 : vector<1x256xi1> to vector<4x256xi1>
    %116 = arith.select %115, %112, %113 : vector<4x256xi1>, vector<4x256xbf16>
    %c24_88 = arith.constant 24 : index
    %c0_89 = arith.constant 0 : index
    %117 = vector.load %arg31[%c24_88, %c0_89] : memref<72x256xbf16, #tpu.memory_space<vmem>>, vector<4x256xbf16>
    tpu.vector_store %arg31[%c24_88, %c0_89], %116 {strides = array<i32>} : memref<72x256xbf16, #tpu.memory_space<vmem>>, vector<4x256xbf16>,
    %c0_90 = arith.constant 0 : index
    %c144_91 = arith.constant 144 : index
    %118 = vector.load %arg30[%c0_90, %c144_91] : memref<8x401xbf16, #tpu.memory_space<vmem>>, vector<4x256xbf16>
    %c28_92 = arith.constant 28 : index
    %c0_93 = arith.constant 0 : index
    %119 = vector.load %arg31[%c28_92, %c0_93] : memref<72x256xbf16, #tpu.memory_space<vmem>>, vector<4x256xbf16>
    tpu.vector_store %arg31[%c28_92, %c0_93], %118 {strides = array<i32>} : memref<72x256xbf16, #tpu.memory_space<vmem>>, vector<4x256xbf16>,
    %c0_94 = arith.constant 0 : index
    %c145_95 = arith.constant 145 : index
    %120 = vector.load %arg30[%c0_94, %c145_95] : memref<8x401xbf16, #tpu.memory_space<vmem>>, vector<4x256xbf16>
    %cst_96 = arith.constant 0.000000e+00 : bf16
    %121 = vector.broadcast %cst_96 : bf16 to vector<4x256xbf16>
    %122 = vector.shape_cast %12 : vector<1x256xi1> to vector<1x256xi1>
    %123 = vector.broadcast %122 : vector<1x256xi1> to vector<4x256xi1>
    %124 = arith.select %123, %120, %121 : vector<4x256xi1>, vector<4x256xbf16>
    %c32_97 = arith.constant 32 : index
    %c0_98 = arith.constant 0 : index
    %125 = vector.load %arg31[%c32_97, %c0_98] : memref<72x256xbf16, #tpu.memory_space<vmem>>, vector<4x256xbf16>
    tpu.vector_store %arg31[%c32_97, %c0_98], %124 {strides = array<i32>} : memref<72x256xbf16, #tpu.memory_space<vmem>>, vector<4x256xbf16>,
    %c0_99 = arith.constant 0 : index
    %c0_100 = arith.constant 0 : index
    %126 = vector.load %arg31[%c0_99, %c0_100] : memref<72x256xbf16, #tpu.memory_space<vmem>>, vector<36x256xbf16>
    %c0_101 = arith.constant 0 : index
    %c0_102 = arith.constant 0 : index
    %c0_103 = arith.constant 0 : index
    %127 = vector.load %arg4[%c0_101, %c0_102, %c0_103] : memref<2x4x36xbf16, #tpu.memory_space<vmem>>, vector<1x4x36xbf16>
    %128 = vector.shape_cast %127 : vector<1x4x36xbf16> to vector<4x36xbf16>
    %cst_104 = arith.constant dense<0.000000e+00> : vector<4x256xf32>
    %129 = tpu.matmul %128, %126, %cst_104 {dimension_numbers = #tpu.dot_dimension_numbers<[1], [0], [0], [1], [0, 0, 1, 1], [], []>} : vector<4x36xbf16>, vector<36x256xbf16>, vector<4x256xf32> -> vector<4x256xf32>
    %130 = vector.extract_strided_slice %81 {offsets = [0, 0], sizes = [4, 1], strides = [1, 1]} : vector<8x1xf32> to vector<4x1xf32>
    %131 = vector.broadcast %130 : vector<4x1xf32> to vector<4x256xf32>
    %132 = arith.mulf %129, %131 : vector<4x256xf32>
    %133 = vector.extract_strided_slice %83 {offsets = [0, 0], sizes = [4, 1], strides = [1, 1]} : vector<8x1xf32> to vector<4x1xf32>
    %134 = vector.broadcast %133 : vector<4x1xf32> to vector<4x256xf32>
    %135 = arith.addf %132, %134 : vector<4x256xf32>
    %cst_105 = arith.constant 0.000000e+00 : f32
    %136 = vector.broadcast %cst_105 : f32 to vector<4x256xf32>
    %137 = arith.maximumf %135, %136 : vector<4x256xf32>
    %138 = arith.truncf %137 : vector<4x256xf32> to vector<4x256xbf16>
    %c0_106 = arith.constant 0 : index
    %c128_107 = arith.constant 128 : index
    %139 = vector.load %arg29[%c0_106, %c128_107] : memref<8x401xbf16, #tpu.memory_space<vmem>>, vector<4x256xbf16>
    tpu.vector_store %arg29[%c0_106, %c128_107], %138 {strides = array<i32>} : memref<8x401xbf16, #tpu.memory_space<vmem>>, vector<4x256xbf16>,
    %c4_108 = arith.constant 4 : index
    %c111_109 = arith.constant 111 : index
    %140 = vector.load %arg30[%c4_108, %c111_109] : memref<8x401xbf16, #tpu.memory_space<vmem>>, vector<4x256xbf16>
    %cst_110 = arith.constant 0.000000e+00 : bf16
    %141 = vector.broadcast %cst_110 : bf16 to vector<4x256xbf16>
    %142 = vector.shape_cast %10 : vector<1x256xi1> to vector<1x256xi1>
    %143 = vector.broadcast %142 : vector<1x256xi1> to vector<4x256xi1>
    %144 = arith.select %143, %140, %141 : vector<4x256xi1>, vector<4x256xbf16>
    %c0_111 = arith.constant 0 : index
    %c0_112 = arith.constant 0 : index
    %145 = vector.load %arg31[%c0_111, %c0_112] : memref<72x256xbf16, #tpu.memory_space<vmem>>, vector<4x256xbf16>
    tpu.vector_store %arg31[%c0_111, %c0_112], %144 {strides = array<i32>} : memref<72x256xbf16, #tpu.memory_space<vmem>>, vector<4x256xbf16>,
    %c4_113 = arith.constant 4 : index
    %c112_114 = arith.constant 112 : index
    %146 = vector.load %arg30[%c4_113, %c112_114] : memref<8x401xbf16, #tpu.memory_space<vmem>>, vector<4x256xbf16>
    %c4_115 = arith.constant 4 : index
    %c0_116 = arith.constant 0 : index
    %147 = vector.load %arg31[%c4_115, %c0_116] : memref<72x256xbf16, #tpu.memory_space<vmem>>, vector<4x256xbf16>
    tpu.vector_store %arg31[%c4_115, %c0_116], %146 {strides = array<i32>} : memref<72x256xbf16, #tpu.memory_space<vmem>>, vector<4x256xbf16>,
    %c4_117 = arith.constant 4 : index
    %c113_118 = arith.constant 113 : index
    %148 = vector.load %arg30[%c4_117, %c113_118] : memref<8x401xbf16, #tpu.memory_space<vmem>>, vector<4x256xbf16>
    %cst_119 = arith.constant 0.000000e+00 : bf16
    %149 = vector.broadcast %cst_119 : bf16 to vector<4x256xbf16>
    %150 = vector.shape_cast %12 : vector<1x256xi1> to vector<1x256xi1>
    %151 = vector.broadcast %150 : vector<1x256xi1> to vector<4x256xi1>
    %152 = arith.select %151, %148, %149 : vector<4x256xi1>, vector<4x256xbf16>
    %c8_120 = arith.constant 8 : index
    %c0_121 = arith.constant 0 : index
    %153 = vector.load %arg31[%c8_120, %c0_121] : memref<72x256xbf16, #tpu.memory_space<vmem>>, vector<4x256xbf16>
    tpu.vector_store %arg31[%c8_120, %c0_121], %152 {strides = array<i32>} : memref<72x256xbf16, #tpu.memory_space<vmem>>, vector<4x256xbf16>,
    %c4_122 = arith.constant 4 : index
    %c127_123 = arith.constant 127 : index
    %154 = vector.load %arg30[%c4_122, %c127_123] : memref<8x401xbf16, #tpu.memory_space<vmem>>, vector<4x256xbf16>
    %cst_124 = arith.constant 0.000000e+00 : bf16
    %155 = vector.broadcast %cst_124 : bf16 to vector<4x256xbf16>
    %156 = vector.shape_cast %10 : vector<1x256xi1> to vector<1x256xi1>
    %157 = vector.broadcast %156 : vector<1x256xi1> to vector<4x256xi1>
    %158 = arith.select %157, %154, %155 : vector<4x256xi1>, vector<4x256xbf16>
    %c12_125 = arith.constant 12 : index
    %c0_126 = arith.constant 0 : index
    %159 = vector.load %arg31[%c12_125, %c0_126] : memref<72x256xbf16, #tpu.memory_space<vmem>>, vector<4x256xbf16>
    tpu.vector_store %arg31[%c12_125, %c0_126], %158 {strides = array<i32>} : memref<72x256xbf16, #tpu.memory_space<vmem>>, vector<4x256xbf16>,
    %c4_127 = arith.constant 4 : index
    %c128_128 = arith.constant 128 : index
    %160 = vector.load %arg30[%c4_127, %c128_128] : memref<8x401xbf16, #tpu.memory_space<vmem>>, vector<4x256xbf16>
    %c16_129 = arith.constant 16 : index
    %c0_130 = arith.constant 0 : index
    %161 = vector.load %arg31[%c16_129, %c0_130] : memref<72x256xbf16, #tpu.memory_space<vmem>>, vector<4x256xbf16>
    tpu.vector_store %arg31[%c16_129, %c0_130], %160 {strides = array<i32>} : memref<72x256xbf16, #tpu.memory_space<vmem>>, vector<4x256xbf16>,
    %c4_131 = arith.constant 4 : index
    %c129_132 = arith.constant 129 : index
    %162 = vector.load %arg30[%c4_131, %c129_132] : memref<8x401xbf16, #tpu.memory_space<vmem>>, vector<4x256xbf16>
    %cst_133 = arith.constant 0.000000e+00 : bf16
    %163 = vector.broadcast %cst_133 : bf16 to vector<4x256xbf16>
    %164 = vector.shape_cast %12 : vector<1x256xi1> to vector<1x256xi1>
    %165 = vector.broadcast %164 : vector<1x256xi1> to vector<4x256xi1>
    %166 = arith.select %165, %162, %163 : vector<4x256xi1>, vector<4x256xbf16>
    %c20_134 = arith.constant 20 : index
    %c0_135 = arith.constant 0 : index
    %167 = vector.load %arg31[%c20_134, %c0_135] : memref<72x256xbf16, #tpu.memory_space<vmem>>, vector<4x256xbf16>
    tpu.vector_store %arg31[%c20_134, %c0_135], %166 {strides = array<i32>} : memref<72x256xbf16, #tpu.memory_space<vmem>>, vector<4x256xbf16>,
    %c4_136 = arith.constant 4 : index
    %c143_137 = arith.constant 143 : index
    %168 = vector.load %arg30[%c4_136, %c143_137] : memref<8x401xbf16, #tpu.memory_space<vmem>>, vector<4x256xbf16>
    %cst_138 = arith.constant 0.000000e+00 : bf16
    %169 = vector.broadcast %cst_138 : bf16 to vector<4x256xbf16>
    %170 = vector.shape_cast %10 : vector<1x256xi1> to vector<1x256xi1>
    %171 = vector.broadcast %170 : vector<1x256xi1> to vector<4x256xi1>
    %172 = arith.select %171, %168, %169 : vector<4x256xi1>, vector<4x256xbf16>
    %c24_139 = arith.constant 24 : index
    %c0_140 = arith.constant 0 : index
    %173 = vector.load %arg31[%c24_139, %c0_140] : memref<72x256xbf16, #tpu.memory_space<vmem>>, vector<4x256xbf16>
    tpu.vector_store %arg31[%c24_139, %c0_140], %172 {strides = array<i32>} : memref<72x256xbf16, #tpu.memory_space<vmem>>, vector<4x256xbf16>,
    %c4_141 = arith.constant 4 : index
    %c144_142 = arith.constant 144 : index
    %174 = vector.load %arg30[%c4_141, %c144_142] : memref<8x401xbf16, #tpu.memory_space<vmem>>, vector<4x256xbf16>
    %c28_143 = arith.constant 28 : index
    %c0_144 = arith.constant 0 : index
    %175 = vector.load %arg31[%c28_143, %c0_144] : memref<72x256xbf16, #tpu.memory_space<vmem>>, vector<4x256xbf16>
    tpu.vector_store %arg31[%c28_143, %c0_144], %174 {strides = array<i32>} : memref<72x256xbf16, #tpu.memory_space<vmem>>, vector<4x256xbf16>,
    %c4_145 = arith.constant 4 : index
    %c145_146 = arith.constant 145 : index
    %176 = vector.load %arg30[%c4_145, %c145_146] : memref<8x401xbf16, #tpu.memory_space<vmem>>, vector<4x256xbf16>
    %cst_147 = arith.constant 0.000000e+00 : bf16
    %177 = vector.broadcast %cst_147 : bf16 to vector<4x256xbf16>
    %178 = vector.shape_cast %12 : vector<1x256xi1> to vector<1x256xi1>
    %179 = vector.broadcast %178 : vector<1x256xi1> to vector<4x256xi1>
    %180 = arith.select %179, %176, %177 : vector<4x256xi1>, vector<4x256xbf16>
    %c32_148 = arith.constant 32 : index
    %c0_149 = arith.constant 0 : index
    %181 = vector.load %arg31[%c32_148, %c0_149] : memref<72x256xbf16, #tpu.memory_space<vmem>>, vector<4x256xbf16>
    tpu.vector_store %arg31[%c32_148, %c0_149], %180 {strides = array<i32>} : memref<72x256xbf16, #tpu.memory_space<vmem>>, vector<4x256xbf16>,
    %c0_150 = arith.constant 0 : index
    %c0_151 = arith.constant 0 : index
    %182 = vector.load %arg31[%c0_150, %c0_151] : memref<72x256xbf16, #tpu.memory_space<vmem>>, vector<36x256xbf16>
    %c1 = arith.constant 1 : index
    %c0_152 = arith.constant 0 : index
    %c0_153 = arith.constant 0 : index
    %183 = vector.load %arg4[%c1, %c0_152, %c0_153] : memref<2x4x36xbf16, #tpu.memory_space<vmem>>, vector<1x4x36xbf16>
    %184 = vector.shape_cast %183 : vector<1x4x36xbf16> to vector<4x36xbf16>
    %cst_154 = arith.constant dense<0.000000e+00> : vector<4x256xf32>
    %185 = tpu.matmul %184, %182, %cst_154 {dimension_numbers = #tpu.dot_dimension_numbers<[1], [0], [0], [1], [0, 0, 1, 1], [], []>} : vector<4x36xbf16>, vector<36x256xbf16>, vector<4x256xf32> -> vector<4x256xf32>
    %186 = vector.extract_strided_slice %81 {offsets = [4, 0], sizes = [4, 1], strides = [1, 1]} : vector<8x1xf32> to vector<4x1xf32>
    %187 = vector.broadcast %186 : vector<4x1xf32> to vector<4x256xf32>
    %188 = arith.mulf %185, %187 : vector<4x256xf32>
    %189 = vector.extract_strided_slice %83 {offsets = [4, 0], sizes = [4, 1], strides = [1, 1]} : vector<8x1xf32> to vector<4x1xf32>
    %190 = vector.broadcast %189 : vector<4x1xf32> to vector<4x256xf32>
    %191 = arith.addf %188, %190 : vector<4x256xf32>
    %cst_155 = arith.constant 0.000000e+00 : f32
    %192 = vector.broadcast %cst_155 : f32 to vector<4x256xf32>
    %193 = arith.maximumf %191, %192 : vector<4x256xf32>
    %194 = arith.truncf %193 : vector<4x256xf32> to vector<4x256xbf16>
    %c4_156 = arith.constant 4 : index
    %c128_157 = arith.constant 128 : index
    %195 = vector.load %arg29[%c4_156, %c128_157] : memref<8x401xbf16, #tpu.memory_space<vmem>>, vector<4x256xbf16>
    tpu.vector_store %arg29[%c4_156, %c128_157], %194 {strides = array<i32>} : memref<8x401xbf16, #tpu.memory_space<vmem>>, vector<4x256xbf16>,
    %196 = vector.extract_strided_slice %20 {offsets = [2, 0, 0], sizes = [1, 8, 1], strides = [1, 1, 1]} : vector<3x8x1xf32> to vector<1x8x1xf32>
    %197 = vector.shape_cast %196 : vector<1x8x1xf32> to vector<8x1xf32>
    %198 = vector.extract_strided_slice %21 {offsets = [2, 0, 0], sizes = [1, 8, 1], strides = [1, 1, 1]} : vector<3x8x1xf32> to vector<1x8x1xf32>
    %199 = vector.shape_cast %198 : vector<1x8x1xf32> to vector<8x1xf32>
    %c0_158 = arith.constant 0 : index
    %c111_159 = arith.constant 111 : index
    %200 = vector.load %arg29[%c0_158, %c111_159] : memref<8x401xbf16, #tpu.memory_space<vmem>>, vector<8x256xbf16>
    %cst_160 = arith.constant 0.000000e+00 : bf16
    %201 = vector.broadcast %cst_160 : bf16 to vector<8x256xbf16>
    %202 = vector.shape_cast %10 : vector<1x256xi1> to vector<1x256xi1>
    %203 = vector.broadcast %202 : vector<1x256xi1> to vector<8x256xi1>
    %204 = arith.select %203, %200, %201 : vector<8x256xi1>, vector<8x256xbf16>
    %c0_161 = arith.constant 0 : index
    %c0_162 = arith.constant 0 : index
    %205 = vector.load %arg31[%c0_161, %c0_162] : memref<72x256xbf16, #tpu.memory_space<vmem>>, vector<8x256xbf16>
    tpu.vector_store %arg31[%c0_161, %c0_162], %204 {strides = array<i32>} : memref<72x256xbf16, #tpu.memory_space<vmem>>, vector<8x256xbf16>,
    %c0_163 = arith.constant 0 : index
    %c112_164 = arith.constant 112 : index
    %206 = vector.load %arg29[%c0_163, %c112_164] : memref<8x401xbf16, #tpu.memory_space<vmem>>, vector<8x256xbf16>
    %c8_165 = arith.constant 8 : index
    %c0_166 = arith.constant 0 : index
    %207 = vector.load %arg31[%c8_165, %c0_166] : memref<72x256xbf16, #tpu.memory_space<vmem>>, vector<8x256xbf16>
    tpu.vector_store %arg31[%c8_165, %c0_166], %206 {strides = array<i32>} : memref<72x256xbf16, #tpu.memory_space<vmem>>, vector<8x256xbf16>,
    %c0_167 = arith.constant 0 : index
    %c113_168 = arith.constant 113 : index
    %208 = vector.load %arg29[%c0_167, %c113_168] : memref<8x401xbf16, #tpu.memory_space<vmem>>, vector<8x256xbf16>
    %cst_169 = arith.constant 0.000000e+00 : bf16
    %209 = vector.broadcast %cst_169 : bf16 to vector<8x256xbf16>
    %210 = vector.shape_cast %12 : vector<1x256xi1> to vector<1x256xi1>
    %211 = vector.broadcast %210 : vector<1x256xi1> to vector<8x256xi1>
    %212 = arith.select %211, %208, %209 : vector<8x256xi1>, vector<8x256xbf16>
    %c16_170 = arith.constant 16 : index
    %c0_171 = arith.constant 0 : index
    %213 = vector.load %arg31[%c16_170, %c0_171] : memref<72x256xbf16, #tpu.memory_space<vmem>>, vector<8x256xbf16>
    tpu.vector_store %arg31[%c16_170, %c0_171], %212 {strides = array<i32>} : memref<72x256xbf16, #tpu.memory_space<vmem>>, vector<8x256xbf16>,
    %c0_172 = arith.constant 0 : index
    %c127_173 = arith.constant 127 : index
    %214 = vector.load %arg29[%c0_172, %c127_173] : memref<8x401xbf16, #tpu.memory_space<vmem>>, vector<8x256xbf16>
    %cst_174 = arith.constant 0.000000e+00 : bf16
    %215 = vector.broadcast %cst_174 : bf16 to vector<8x256xbf16>
    %216 = vector.shape_cast %10 : vector<1x256xi1> to vector<1x256xi1>
    %217 = vector.broadcast %216 : vector<1x256xi1> to vector<8x256xi1>
    %218 = arith.select %217, %214, %215 : vector<8x256xi1>, vector<8x256xbf16>
    %c24_175 = arith.constant 24 : index
    %c0_176 = arith.constant 0 : index
    %219 = vector.load %arg31[%c24_175, %c0_176] : memref<72x256xbf16, #tpu.memory_space<vmem>>, vector<8x256xbf16>
    tpu.vector_store %arg31[%c24_175, %c0_176], %218 {strides = array<i32>} : memref<72x256xbf16, #tpu.memory_space<vmem>>, vector<8x256xbf16>,
    %c0_177 = arith.constant 0 : index
    %c128_178 = arith.constant 128 : index
    %220 = vector.load %arg29[%c0_177, %c128_178] : memref<8x401xbf16, #tpu.memory_space<vmem>>, vector<8x256xbf16>
    %c32_179 = arith.constant 32 : index
    %c0_180 = arith.constant 0 : index
    %221 = vector.load %arg31[%c32_179, %c0_180] : memref<72x256xbf16, #tpu.memory_space<vmem>>, vector<8x256xbf16>
    tpu.vector_store %arg31[%c32_179, %c0_180], %220 {strides = array<i32>} : memref<72x256xbf16, #tpu.memory_space<vmem>>, vector<8x256xbf16>,
    %c0_181 = arith.constant 0 : index
    %c129_182 = arith.constant 129 : index
    %222 = vector.load %arg29[%c0_181, %c129_182] : memref<8x401xbf16, #tpu.memory_space<vmem>>, vector<8x256xbf16>
    %cst_183 = arith.constant 0.000000e+00 : bf16
    %223 = vector.broadcast %cst_183 : bf16 to vector<8x256xbf16>
    %224 = vector.shape_cast %12 : vector<1x256xi1> to vector<1x256xi1>
    %225 = vector.broadcast %224 : vector<1x256xi1> to vector<8x256xi1>
    %226 = arith.select %225, %222, %223 : vector<8x256xi1>, vector<8x256xbf16>
    %c40 = arith.constant 40 : index
    %c0_184 = arith.constant 0 : index
    %227 = vector.load %arg31[%c40, %c0_184] : memref<72x256xbf16, #tpu.memory_space<vmem>>, vector<8x256xbf16>
    tpu.vector_store %arg31[%c40, %c0_184], %226 {strides = array<i32>} : memref<72x256xbf16, #tpu.memory_space<vmem>>, vector<8x256xbf16>,
    %c0_185 = arith.constant 0 : index
    %c143_186 = arith.constant 143 : index
    %228 = vector.load %arg29[%c0_185, %c143_186] : memref<8x401xbf16, #tpu.memory_space<vmem>>, vector<8x256xbf16>
    %cst_187 = arith.constant 0.000000e+00 : bf16
    %229 = vector.broadcast %cst_187 : bf16 to vector<8x256xbf16>
    %230 = vector.shape_cast %10 : vector<1x256xi1> to vector<1x256xi1>
    %231 = vector.broadcast %230 : vector<1x256xi1> to vector<8x256xi1>
    %232 = arith.select %231, %228, %229 : vector<8x256xi1>, vector<8x256xbf16>
    %c48 = arith.constant 48 : index
    %c0_188 = arith.constant 0 : index
    %233 = vector.load %arg31[%c48, %c0_188] : memref<72x256xbf16, #tpu.memory_space<vmem>>, vector<8x256xbf16>
    tpu.vector_store %arg31[%c48, %c0_188], %232 {strides = array<i32>} : memref<72x256xbf16, #tpu.memory_space<vmem>>, vector<8x256xbf16>,
    %c0_189 = arith.constant 0 : index
    %c144_190 = arith.constant 144 : index
    %234 = vector.load %arg29[%c0_189, %c144_190] : memref<8x401xbf16, #tpu.memory_space<vmem>>, vector<8x256xbf16>
    %c56 = arith.constant 56 : index
    %c0_191 = arith.constant 0 : index
    %235 = vector.load %arg31[%c56, %c0_191] : memref<72x256xbf16, #tpu.memory_space<vmem>>, vector<8x256xbf16>
    tpu.vector_store %arg31[%c56, %c0_191], %234 {strides = array<i32>} : memref<72x256xbf16, #tpu.memory_space<vmem>>, vector<8x256xbf16>,
    %c0_192 = arith.constant 0 : index
    %c145_193 = arith.constant 145 : index
    %236 = vector.load %arg29[%c0_192, %c145_193] : memref<8x401xbf16, #tpu.memory_space<vmem>>, vector<8x256xbf16>
    %cst_194 = arith.constant 0.000000e+00 : bf16
    %237 = vector.broadcast %cst_194 : bf16 to vector<8x256xbf16>
    %238 = vector.shape_cast %12 : vector<1x256xi1> to vector<1x256xi1>
    %239 = vector.broadcast %238 : vector<1x256xi1> to vector<8x256xi1>
    %240 = arith.select %239, %236, %237 : vector<8x256xi1>, vector<8x256xbf16>
    %c64 = arith.constant 64 : index
    %c0_195 = arith.constant 0 : index
    %241 = vector.load %arg31[%c64, %c0_195] : memref<72x256xbf16, #tpu.memory_space<vmem>>, vector<8x256xbf16>
    tpu.vector_store %arg31[%c64, %c0_195], %240 {strides = array<i32>} : memref<72x256xbf16, #tpu.memory_space<vmem>>, vector<8x256xbf16>,
    %c0_196 = arith.constant 0 : index
    %c0_197 = arith.constant 0 : index
    %242 = vector.load %arg31[%c0_196, %c0_197] : memref<72x256xbf16, #tpu.memory_space<vmem>>, vector<72x256xbf16>
    %c0_198 = arith.constant 0 : index
    %c0_199 = arith.constant 0 : index
    %243 = vector.load %arg5[%c0_198, %c0_199] : memref<8x72xbf16, #tpu.memory_space<vmem>>, vector<8x72xbf16>
    %cst_200 = arith.constant dense<0.000000e+00> : vector<8x256xf32>
    %244 = tpu.matmul %243, %242, %cst_200 {dimension_numbers = #tpu.dot_dimension_numbers<[1], [0], [0], [1], [0, 0, 1, 1], [], []>} : vector<8x72xbf16>, vector<72x256xbf16>, vector<8x256xf32> -> vector<8x256xf32>
    %245 = vector.broadcast %197 : vector<8x1xf32> to vector<8x256xf32>
    %246 = arith.mulf %244, %245 : vector<8x256xf32>
    %247 = vector.broadcast %199 : vector<8x1xf32> to vector<8x256xf32>
    %248 = arith.addf %246, %247 : vector<8x256xf32>
    %cst_201 = arith.constant dense<0.000000e+00> : vector<8xf32>
    %249 = vector.multi_reduction <add>, %248, %cst_201 [1] : vector<8x256xf32> to vector<8xf32>
    %250 = vector.shape_cast %249 : vector<8xf32> to vector<8x1xf32>
    %cst_202 = arith.constant 2.560000e+02 : f32
    %251 = vector.broadcast %cst_202 : f32 to vector<8x1xf32>
    %252 = arith.divf %250, %251 : vector<8x1xf32>
    %c0_203 = arith.constant 0 : index
    %c0_204 = arith.constant 0 : index
    %253 = vector.load %arg8[%c0_203, %c0_204] : memref<8x4xf32, #tpu.memory_space<vmem>>, vector<8x4xf32>
    %254 = vector.broadcast %252 : vector<8x1xf32> to vector<8x4xf32>
    %255 = arith.mulf %253, %254 : vector<8x4xf32>
    %cst_205 = arith.constant dense<0.000000e+00> : vector<4xf32>
    %256 = vector.multi_reduction <add>, %255, %cst_205 [0] : vector<8x4xf32> to vector<4xf32>
    %257 = vector.shape_cast %256 : vector<4xf32> to vector<1x4xf32>
    %c0_206 = arith.constant 0 : index
    %c0_207 = arith.constant 0 : index
    %258 = vector.load %arg9[%c0_206, %c0_207] : memref<1x4xf32, #tpu.memory_space<vmem>>, vector<1x4xf32>
    %259 = arith.addf %257, %258 : vector<1x4xf32>
    %cst_208 = arith.constant 0.000000e+00 : f32
    %260 = vector.broadcast %cst_208 : f32 to vector<1x4xf32>
    %261 = arith.maximumf %259, %260 : vector<1x4xf32>
    %c0_209 = arith.constant 0 : index
    %c0_210 = arith.constant 0 : index
    %262 = vector.load %arg10[%c0_209, %c0_210] : memref<8x4xf32, #tpu.memory_space<vmem>>, vector<8x4xf32>
    %263 = vector.broadcast %261 : vector<1x4xf32> to vector<8x4xf32>
    %264 = arith.mulf %262, %263 : vector<8x4xf32>
    %cst_211 = arith.constant dense<0.000000e+00> : vector<8xf32>
    %265 = vector.multi_reduction <add>, %264, %cst_211 [1] : vector<8x4xf32> to vector<8xf32>
    %266 = vector.shape_cast %265 : vector<8xf32> to vector<8x1xf32>
    %c0_212 = arith.constant 0 : index
    %c0_213 = arith.constant 0 : index
    %267 = vector.load %arg11[%c0_212, %c0_213] : memref<8x1xf32, #tpu.memory_space<vmem>>, vector<8x1xf32>
    %268 = arith.addf %266, %267 : vector<8x1xf32>
    %269 = arith.negf %268 : vector<8x1xf32>
    %270 = math.exp %269 : vector<8x1xf32>
    %cst_214 = arith.constant 1.000000e+00 : f32
    %271 = vector.broadcast %cst_214 : f32 to vector<8x1xf32>
    %272 = arith.addf %271, %270 : vector<8x1xf32>
    %273 = arith.divf %271, %272 : vector<8x1xf32>
    %c0_215 = arith.constant 0 : index
    %c0_216 = arith.constant 0 : index
    %274 = vector.load %arg12[%c0_215, %c0_216] : memref<8x1xf32, #tpu.memory_space<vmem>>, vector<8x1xf32>
    %275 = vector.broadcast %274 : vector<8x1xf32> to vector<8x256xf32>
    %276 = arith.mulf %248, %275 : vector<8x256xf32>
    %cst_217 = arith.constant dense<0.000000e+00> : vector<256xf32>
    %277 = vector.multi_reduction <add>, %276, %cst_217 [0] : vector<8x256xf32> to vector<256xf32>
    %278 = vector.shape_cast %277 : vector<256xf32> to vector<1x256xf32>
    %c0_218 = arith.constant 0 : index
    %c0_219 = arith.constant 0 : index
    %279 = vector.load %arg13[%c0_218, %c0_219] : memref<1x1xf32, #tpu.memory_space<vmem>>, vector<1x1xf32>
    %280 = vector.broadcast %279 : vector<1x1xf32> to vector<1x256xf32>
    %281 = arith.addf %278, %280 : vector<1x256xf32>
    %282 = arith.negf %281 : vector<1x256xf32>
    %283 = math.exp %282 : vector<1x256xf32>
    %cst_220 = arith.constant 1.000000e+00 : f32
    %284 = vector.broadcast %cst_220 : f32 to vector<1x256xf32>
    %285 = arith.addf %284, %283 : vector<1x256xf32>
    %286 = arith.divf %284, %285 : vector<1x256xf32>
    %287 = vector.broadcast %273 : vector<8x1xf32> to vector<8x256xf32>
    %288 = arith.mulf %248, %287 : vector<8x256xf32>
    %289 = vector.broadcast %286 : vector<1x256xf32> to vector<8x256xf32>
    %290 = arith.mulf %248, %289 : vector<8x256xf32>
    %291 = arith.addf %288, %290 : vector<8x256xf32>
    %292 = arith.addf %291, %19 : vector<8x256xf32>
    %cst_221 = arith.constant 0.000000e+00 : f32
    %293 = vector.broadcast %cst_221 : f32 to vector<8x256xf32>
    %294 = arith.maximumf %292, %293 : vector<8x256xf32>
    %295 = arith.truncf %294 : vector<8x256xf32> to vector<8x256xbf16>
    %c0_222 = arith.constant 0 : index
    %c0_223 = arith.constant 0 : index
    %c0_224 = arith.constant 0 : index
    %296 = vector.load %arg19[%c0_222, %c0_223, %c0_224] : memref<3x8x1xf32, #tpu.memory_space<vmem>>, vector<3x8x1xf32>
    %c0_225 = arith.constant 0 : index
    %c0_226 = arith.constant 0 : index
    %c0_227 = arith.constant 0 : index
    %297 = vector.load %arg20[%c0_225, %c0_226, %c0_227] : memref<3x8x1xf32, #tpu.memory_space<vmem>>, vector<3x8x1xf32>
    %c0_228 = arith.constant 0 : index
    %c128_229 = arith.constant 128 : index
    %298 = vector.load %arg29[%c0_228, %c128_229] : memref<8x401xbf16, #tpu.memory_space<vmem>>, vector<8x256xbf16>
    tpu.vector_store %arg29[%c0_228, %c128_229], %295 {strides = array<i32>} : memref<8x401xbf16, #tpu.memory_space<vmem>>, vector<8x256xbf16>,
    %299 = vector.extract_strided_slice %296 {offsets = [0, 0, 0], sizes = [1, 8, 1], strides = [1, 1, 1]} : vector<3x8x1xf32> to vector<1x8x1xf32>
    %300 = vector.shape_cast %299 : vector<1x8x1xf32> to vector<8x1xf32>
    %301 = vector.extract_strided_slice %297 {offsets = [0, 0, 0], sizes = [1, 8, 1], strides = [1, 1, 1]} : vector<3x8x1xf32> to vector<1x8x1xf32>
    %302 = vector.shape_cast %301 : vector<1x8x1xf32> to vector<8x1xf32>
    %c0_230 = arith.constant 0 : index
    %c111_231 = arith.constant 111 : index
    %303 = vector.load %arg29[%c0_230, %c111_231] : memref<8x401xbf16, #tpu.memory_space<vmem>>, vector<8x256xbf16>
    %cst_232 = arith.constant 0.000000e+00 : bf16
    %304 = vector.broadcast %cst_232 : bf16 to vector<8x256xbf16>
    %305 = vector.shape_cast %10 : vector<1x256xi1> to vector<1x256xi1>
    %306 = vector.broadcast %305 : vector<1x256xi1> to vector<8x256xi1>
    %307 = arith.select %306, %303, %304 : vector<8x256xi1>, vector<8x256xbf16>
    %c0_233 = arith.constant 0 : index
    %c0_234 = arith.constant 0 : index
    %308 = vector.load %arg31[%c0_233, %c0_234] : memref<72x256xbf16, #tpu.memory_space<vmem>>, vector<8x256xbf16>
    tpu.vector_store %arg31[%c0_233, %c0_234], %307 {strides = array<i32>} : memref<72x256xbf16, #tpu.memory_space<vmem>>, vector<8x256xbf16>,
    %c0_235 = arith.constant 0 : index
    %c112_236 = arith.constant 112 : index
    %309 = vector.load %arg29[%c0_235, %c112_236] : memref<8x401xbf16, #tpu.memory_space<vmem>>, vector<8x256xbf16>
    %c8_237 = arith.constant 8 : index
    %c0_238 = arith.constant 0 : index
    %310 = vector.load %arg31[%c8_237, %c0_238] : memref<72x256xbf16, #tpu.memory_space<vmem>>, vector<8x256xbf16>
    tpu.vector_store %arg31[%c8_237, %c0_238], %309 {strides = array<i32>} : memref<72x256xbf16, #tpu.memory_space<vmem>>, vector<8x256xbf16>,
    %c0_239 = arith.constant 0 : index
    %c113_240 = arith.constant 113 : index
    %311 = vector.load %arg29[%c0_239, %c113_240] : memref<8x401xbf16, #tpu.memory_space<vmem>>, vector<8x256xbf16>
    %cst_241 = arith.constant 0.000000e+00 : bf16
    %312 = vector.broadcast %cst_241 : bf16 to vector<8x256xbf16>
    %313 = vector.shape_cast %12 : vector<1x256xi1> to vector<1x256xi1>
    %314 = vector.broadcast %313 : vector<1x256xi1> to vector<8x256xi1>
    %315 = arith.select %314, %311, %312 : vector<8x256xi1>, vector<8x256xbf16>
    %c16_242 = arith.constant 16 : index
    %c0_243 = arith.constant 0 : index
    %316 = vector.load %arg31[%c16_242, %c0_243] : memref<72x256xbf16, #tpu.memory_space<vmem>>, vector<8x256xbf16>
    tpu.vector_store %arg31[%c16_242, %c0_243], %315 {strides = array<i32>} : memref<72x256xbf16, #tpu.memory_space<vmem>>, vector<8x256xbf16>,
    %c0_244 = arith.constant 0 : index
    %c127_245 = arith.constant 127 : index
    %317 = vector.load %arg29[%c0_244, %c127_245] : memref<8x401xbf16, #tpu.memory_space<vmem>>, vector<8x256xbf16>
    %cst_246 = arith.constant 0.000000e+00 : bf16
    %318 = vector.broadcast %cst_246 : bf16 to vector<8x256xbf16>
    %319 = vector.shape_cast %10 : vector<1x256xi1> to vector<1x256xi1>
    %320 = vector.broadcast %319 : vector<1x256xi1> to vector<8x256xi1>
    %321 = arith.select %320, %317, %318 : vector<8x256xi1>, vector<8x256xbf16>
    %c24_247 = arith.constant 24 : index
    %c0_248 = arith.constant 0 : index
    %322 = vector.load %arg31[%c24_247, %c0_248] : memref<72x256xbf16, #tpu.memory_space<vmem>>, vector<8x256xbf16>
    tpu.vector_store %arg31[%c24_247, %c0_248], %321 {strides = array<i32>} : memref<72x256xbf16, #tpu.memory_space<vmem>>, vector<8x256xbf16>,
    %c0_249 = arith.constant 0 : index
    %c128_250 = arith.constant 128 : index
    %323 = vector.load %arg29[%c0_249, %c128_250] : memref<8x401xbf16, #tpu.memory_space<vmem>>, vector<8x256xbf16>
    %c32_251 = arith.constant 32 : index
    %c0_252 = arith.constant 0 : index
    %324 = vector.load %arg31[%c32_251, %c0_252] : memref<72x256xbf16, #tpu.memory_space<vmem>>, vector<8x256xbf16>
    tpu.vector_store %arg31[%c32_251, %c0_252], %323 {strides = array<i32>} : memref<72x256xbf16, #tpu.memory_space<vmem>>, vector<8x256xbf16>,
    %c0_253 = arith.constant 0 : index
    %c129_254 = arith.constant 129 : index
    %325 = vector.load %arg29[%c0_253, %c129_254] : memref<8x401xbf16, #tpu.memory_space<vmem>>, vector<8x256xbf16>
    %cst_255 = arith.constant 0.000000e+00 : bf16
    %326 = vector.broadcast %cst_255 : bf16 to vector<8x256xbf16>
    %327 = vector.shape_cast %12 : vector<1x256xi1> to vector<1x256xi1>
    %328 = vector.broadcast %327 : vector<1x256xi1> to vector<8x256xi1>
    %329 = arith.select %328, %325, %326 : vector<8x256xi1>, vector<8x256xbf16>
    %c40_256 = arith.constant 40 : index
    %c0_257 = arith.constant 0 : index
    %330 = vector.load %arg31[%c40_256, %c0_257] : memref<72x256xbf16, #tpu.memory_space<vmem>>, vector<8x256xbf16>
    tpu.vector_store %arg31[%c40_256, %c0_257], %329 {strides = array<i32>} : memref<72x256xbf16, #tpu.memory_space<vmem>>, vector<8x256xbf16>,
    %c0_258 = arith.constant 0 : index
    %c143_259 = arith.constant 143 : index
    %331 = vector.load %arg29[%c0_258, %c143_259] : memref<8x401xbf16, #tpu.memory_space<vmem>>, vector<8x256xbf16>
    %cst_260 = arith.constant 0.000000e+00 : bf16
    %332 = vector.broadcast %cst_260 : bf16 to vector<8x256xbf16>
    %333 = vector.shape_cast %10 : vector<1x256xi1> to vector<1x256xi1>
    %334 = vector.broadcast %333 : vector<1x256xi1> to vector<8x256xi1>
    %335 = arith.select %334, %331, %332 : vector<8x256xi1>, vector<8x256xbf16>
    %c48_261 = arith.constant 48 : index
    %c0_262 = arith.constant 0 : index
    %336 = vector.load %arg31[%c48_261, %c0_262] : memref<72x256xbf16, #tpu.memory_space<vmem>>, vector<8x256xbf16>
    tpu.vector_store %arg31[%c48_261, %c0_262], %335 {strides = array<i32>} : memref<72x256xbf16, #tpu.memory_space<vmem>>, vector<8x256xbf16>,
    %c0_263 = arith.constant 0 : index
    %c144_264 = arith.constant 144 : index
    %337 = vector.load %arg29[%c0_263, %c144_264] : memref<8x401xbf16, #tpu.memory_space<vmem>>, vector<8x256xbf16>
    %c56_265 = arith.constant 56 : index
    %c0_266 = arith.constant 0 : index
    %338 = vector.load %arg31[%c56_265, %c0_266] : memref<72x256xbf16, #tpu.memory_space<vmem>>, vector<8x256xbf16>
    tpu.vector_store %arg31[%c56_265, %c0_266], %337 {strides = array<i32>} : memref<72x256xbf16, #tpu.memory_space<vmem>>, vector<8x256xbf16>,
    %c0_267 = arith.constant 0 : index
    %c145_268 = arith.constant 145 : index
    %339 = vector.load %arg29[%c0_267, %c145_268] : memref<8x401xbf16, #tpu.memory_space<vmem>>, vector<8x256xbf16>
    %cst_269 = arith.constant 0.000000e+00 : bf16
    %340 = vector.broadcast %cst_269 : bf16 to vector<8x256xbf16>
    %341 = vector.shape_cast %12 : vector<1x256xi1> to vector<1x256xi1>
    %342 = vector.broadcast %341 : vector<1x256xi1> to vector<8x256xi1>
    %343 = arith.select %342, %339, %340 : vector<8x256xi1>, vector<8x256xbf16>
    %c64_270 = arith.constant 64 : index
    %c0_271 = arith.constant 0 : index
    %344 = vector.load %arg31[%c64_270, %c0_271] : memref<72x256xbf16, #tpu.memory_space<vmem>>, vector<8x256xbf16>
    tpu.vector_store %arg31[%c64_270, %c0_271], %343 {strides = array<i32>} : memref<72x256xbf16, #tpu.memory_space<vmem>>, vector<8x256xbf16>,
    %c0_272 = arith.constant 0 : index
    %c0_273 = arith.constant 0 : index
    %345 = vector.load %arg31[%c0_272, %c0_273] : memref<72x256xbf16, #tpu.memory_space<vmem>>, vector<72x256xbf16>
    %c0_274 = arith.constant 0 : index
    %c0_275 = arith.constant 0 : index
    %346 = vector.load %arg16[%c0_274, %c0_275] : memref<8x72xbf16, #tpu.memory_space<vmem>>, vector<8x72xbf16>
    %cst_276 = arith.constant dense<0.000000e+00> : vector<8x256xf32>
    %347 = tpu.matmul %346, %345, %cst_276 {dimension_numbers = #tpu.dot_dimension_numbers<[1], [0], [0], [1], [0, 0, 1, 1], [], []>} : vector<8x72xbf16>, vector<72x256xbf16>, vector<8x256xf32> -> vector<8x256xf32>
    %348 = vector.broadcast %300 : vector<8x1xf32> to vector<8x256xf32>
    %349 = arith.mulf %347, %348 : vector<8x256xf32>
    %350 = vector.broadcast %302 : vector<8x1xf32> to vector<8x256xf32>
    %351 = arith.addf %349, %350 : vector<8x256xf32>
    %cst_277 = arith.constant 0.000000e+00 : f32
    %352 = vector.broadcast %cst_277 : f32 to vector<8x256xf32>
    %353 = arith.maximumf %351, %352 : vector<8x256xf32>
    %354 = arith.truncf %353 : vector<8x256xf32> to vector<8x256xbf16>
    %c0_278 = arith.constant 0 : index
    %c128_279 = arith.constant 128 : index
    %355 = vector.load %arg30[%c0_278, %c128_279] : memref<8x401xbf16, #tpu.memory_space<vmem>>, vector<8x256xbf16>
    tpu.vector_store %arg30[%c0_278, %c128_279], %354 {strides = array<i32>} : memref<8x401xbf16, #tpu.memory_space<vmem>>, vector<8x256xbf16>,
    %356 = vector.extract_strided_slice %296 {offsets = [1, 0, 0], sizes = [1, 8, 1], strides = [1, 1, 1]} : vector<3x8x1xf32> to vector<1x8x1xf32>
    %357 = vector.shape_cast %356 : vector<1x8x1xf32> to vector<8x1xf32>
    %358 = vector.extract_strided_slice %297 {offsets = [1, 0, 0], sizes = [1, 8, 1], strides = [1, 1, 1]} : vector<3x8x1xf32> to vector<1x8x1xf32>
    %359 = vector.shape_cast %358 : vector<1x8x1xf32> to vector<8x1xf32>
    %c0_280 = arith.constant 0 : index
    %c111_281 = arith.constant 111 : index
    %360 = vector.load %arg30[%c0_280, %c111_281] : memref<8x401xbf16, #tpu.memory_space<vmem>>, vector<4x256xbf16>
    %cst_282 = arith.constant 0.000000e+00 : bf16
    %361 = vector.broadcast %cst_282 : bf16 to vector<4x256xbf16>
    %362 = vector.shape_cast %10 : vector<1x256xi1> to vector<1x256xi1>
    %363 = vector.broadcast %362 : vector<1x256xi1> to vector<4x256xi1>
    %364 = arith.select %363, %360, %361 : vector<4x256xi1>, vector<4x256xbf16>
    %c0_283 = arith.constant 0 : index
    %c0_284 = arith.constant 0 : index
    %365 = vector.load %arg31[%c0_283, %c0_284] : memref<72x256xbf16, #tpu.memory_space<vmem>>, vector<4x256xbf16>
    tpu.vector_store %arg31[%c0_283, %c0_284], %364 {strides = array<i32>} : memref<72x256xbf16, #tpu.memory_space<vmem>>, vector<4x256xbf16>,
    %c0_285 = arith.constant 0 : index
    %c112_286 = arith.constant 112 : index
    %366 = vector.load %arg30[%c0_285, %c112_286] : memref<8x401xbf16, #tpu.memory_space<vmem>>, vector<4x256xbf16>
    %c4_287 = arith.constant 4 : index
    %c0_288 = arith.constant 0 : index
    %367 = vector.load %arg31[%c4_287, %c0_288] : memref<72x256xbf16, #tpu.memory_space<vmem>>, vector<4x256xbf16>
    tpu.vector_store %arg31[%c4_287, %c0_288], %366 {strides = array<i32>} : memref<72x256xbf16, #tpu.memory_space<vmem>>, vector<4x256xbf16>,
    %c0_289 = arith.constant 0 : index
    %c113_290 = arith.constant 113 : index
    %368 = vector.load %arg30[%c0_289, %c113_290] : memref<8x401xbf16, #tpu.memory_space<vmem>>, vector<4x256xbf16>
    %cst_291 = arith.constant 0.000000e+00 : bf16
    %369 = vector.broadcast %cst_291 : bf16 to vector<4x256xbf16>
    %370 = vector.shape_cast %12 : vector<1x256xi1> to vector<1x256xi1>
    %371 = vector.broadcast %370 : vector<1x256xi1> to vector<4x256xi1>
    %372 = arith.select %371, %368, %369 : vector<4x256xi1>, vector<4x256xbf16>
    %c8_292 = arith.constant 8 : index
    %c0_293 = arith.constant 0 : index
    %373 = vector.load %arg31[%c8_292, %c0_293] : memref<72x256xbf16, #tpu.memory_space<vmem>>, vector<4x256xbf16>
    tpu.vector_store %arg31[%c8_292, %c0_293], %372 {strides = array<i32>} : memref<72x256xbf16, #tpu.memory_space<vmem>>, vector<4x256xbf16>,
    %c0_294 = arith.constant 0 : index
    %c127_295 = arith.constant 127 : index
    %374 = vector.load %arg30[%c0_294, %c127_295] : memref<8x401xbf16, #tpu.memory_space<vmem>>, vector<4x256xbf16>
    %cst_296 = arith.constant 0.000000e+00 : bf16
    %375 = vector.broadcast %cst_296 : bf16 to vector<4x256xbf16>
    %376 = vector.shape_cast %10 : vector<1x256xi1> to vector<1x256xi1>
    %377 = vector.broadcast %376 : vector<1x256xi1> to vector<4x256xi1>
    %378 = arith.select %377, %374, %375 : vector<4x256xi1>, vector<4x256xbf16>
    %c12_297 = arith.constant 12 : index
    %c0_298 = arith.constant 0 : index
    %379 = vector.load %arg31[%c12_297, %c0_298] : memref<72x256xbf16, #tpu.memory_space<vmem>>, vector<4x256xbf16>
    tpu.vector_store %arg31[%c12_297, %c0_298], %378 {strides = array<i32>} : memref<72x256xbf16, #tpu.memory_space<vmem>>, vector<4x256xbf16>,
    %c0_299 = arith.constant 0 : index
    %c128_300 = arith.constant 128 : index
    %380 = vector.load %arg30[%c0_299, %c128_300] : memref<8x401xbf16, #tpu.memory_space<vmem>>, vector<4x256xbf16>
    %c16_301 = arith.constant 16 : index
    %c0_302 = arith.constant 0 : index
    %381 = vector.load %arg31[%c16_301, %c0_302] : memref<72x256xbf16, #tpu.memory_space<vmem>>, vector<4x256xbf16>
    tpu.vector_store %arg31[%c16_301, %c0_302], %380 {strides = array<i32>} : memref<72x256xbf16, #tpu.memory_space<vmem>>, vector<4x256xbf16>,
    %c0_303 = arith.constant 0 : index
    %c129_304 = arith.constant 129 : index
    %382 = vector.load %arg30[%c0_303, %c129_304] : memref<8x401xbf16, #tpu.memory_space<vmem>>, vector<4x256xbf16>
    %cst_305 = arith.constant 0.000000e+00 : bf16
    %383 = vector.broadcast %cst_305 : bf16 to vector<4x256xbf16>
    %384 = vector.shape_cast %12 : vector<1x256xi1> to vector<1x256xi1>
    %385 = vector.broadcast %384 : vector<1x256xi1> to vector<4x256xi1>
    %386 = arith.select %385, %382, %383 : vector<4x256xi1>, vector<4x256xbf16>
    %c20_306 = arith.constant 20 : index
    %c0_307 = arith.constant 0 : index
    %387 = vector.load %arg31[%c20_306, %c0_307] : memref<72x256xbf16, #tpu.memory_space<vmem>>, vector<4x256xbf16>
    tpu.vector_store %arg31[%c20_306, %c0_307], %386 {strides = array<i32>} : memref<72x256xbf16, #tpu.memory_space<vmem>>, vector<4x256xbf16>,
    %c0_308 = arith.constant 0 : index
    %c143_309 = arith.constant 143 : index
    %388 = vector.load %arg30[%c0_308, %c143_309] : memref<8x401xbf16, #tpu.memory_space<vmem>>, vector<4x256xbf16>
    %cst_310 = arith.constant 0.000000e+00 : bf16
    %389 = vector.broadcast %cst_310 : bf16 to vector<4x256xbf16>
    %390 = vector.shape_cast %10 : vector<1x256xi1> to vector<1x256xi1>
    %391 = vector.broadcast %390 : vector<1x256xi1> to vector<4x256xi1>
    %392 = arith.select %391, %388, %389 : vector<4x256xi1>, vector<4x256xbf16>
    %c24_311 = arith.constant 24 : index
    %c0_312 = arith.constant 0 : index
    %393 = vector.load %arg31[%c24_311, %c0_312] : memref<72x256xbf16, #tpu.memory_space<vmem>>, vector<4x256xbf16>
    tpu.vector_store %arg31[%c24_311, %c0_312], %392 {strides = array<i32>} : memref<72x256xbf16, #tpu.memory_space<vmem>>, vector<4x256xbf16>,
    %c0_313 = arith.constant 0 : index
    %c144_314 = arith.constant 144 : index
    %394 = vector.load %arg30[%c0_313, %c144_314] : memref<8x401xbf16, #tpu.memory_space<vmem>>, vector<4x256xbf16>
    %c28_315 = arith.constant 28 : index
    %c0_316 = arith.constant 0 : index
    %395 = vector.load %arg31[%c28_315, %c0_316] : memref<72x256xbf16, #tpu.memory_space<vmem>>, vector<4x256xbf16>
    tpu.vector_store %arg31[%c28_315, %c0_316], %394 {strides = array<i32>} : memref<72x256xbf16, #tpu.memory_space<vmem>>, vector<4x256xbf16>,
    %c0_317 = arith.constant 0 : index
    %c145_318 = arith.constant 145 : index
    %396 = vector.load %arg30[%c0_317, %c145_318] : memref<8x401xbf16, #tpu.memory_space<vmem>>, vector<4x256xbf16>
    %cst_319 = arith.constant 0.000000e+00 : bf16
    %397 = vector.broadcast %cst_319 : bf16 to vector<4x256xbf16>
    %398 = vector.shape_cast %12 : vector<1x256xi1> to vector<1x256xi1>
    %399 = vector.broadcast %398 : vector<1x256xi1> to vector<4x256xi1>
    %400 = arith.select %399, %396, %397 : vector<4x256xi1>, vector<4x256xbf16>
    %c32_320 = arith.constant 32 : index
    %c0_321 = arith.constant 0 : index
    %401 = vector.load %arg31[%c32_320, %c0_321] : memref<72x256xbf16, #tpu.memory_space<vmem>>, vector<4x256xbf16>
    tpu.vector_store %arg31[%c32_320, %c0_321], %400 {strides = array<i32>} : memref<72x256xbf16, #tpu.memory_space<vmem>>, vector<4x256xbf16>,
    %c0_322 = arith.constant 0 : index
    %c0_323 = arith.constant 0 : index
    %402 = vector.load %arg31[%c0_322, %c0_323] : memref<72x256xbf16, #tpu.memory_space<vmem>>, vector<36x256xbf16>
    %c0_324 = arith.constant 0 : index
    %c0_325 = arith.constant 0 : index
    %c0_326 = arith.constant 0 : index
    %403 = vector.load %arg17[%c0_324, %c0_325, %c0_326] : memref<2x4x36xbf16, #tpu.memory_space<vmem>>, vector<1x4x36xbf16>
    %404 = vector.shape_cast %403 : vector<1x4x36xbf16> to vector<4x36xbf16>
    %cst_327 = arith.constant dense<0.000000e+00> : vector<4x256xf32>
    %405 = tpu.matmul %404, %402, %cst_327 {dimension_numbers = #tpu.dot_dimension_numbers<[1], [0], [0], [1], [0, 0, 1, 1], [], []>} : vector<4x36xbf16>, vector<36x256xbf16>, vector<4x256xf32> -> vector<4x256xf32>
    %406 = vector.extract_strided_slice %357 {offsets = [0, 0], sizes = [4, 1], strides = [1, 1]} : vector<8x1xf32> to vector<4x1xf32>
    %407 = vector.broadcast %406 : vector<4x1xf32> to vector<4x256xf32>
    %408 = arith.mulf %405, %407 : vector<4x256xf32>
    %409 = vector.extract_strided_slice %359 {offsets = [0, 0], sizes = [4, 1], strides = [1, 1]} : vector<8x1xf32> to vector<4x1xf32>
    %410 = vector.broadcast %409 : vector<4x1xf32> to vector<4x256xf32>
    %411 = arith.addf %408, %410 : vector<4x256xf32>
    %cst_328 = arith.constant 0.000000e+00 : f32
    %412 = vector.broadcast %cst_328 : f32 to vector<4x256xf32>
    %413 = arith.maximumf %411, %412 : vector<4x256xf32>
    %414 = arith.truncf %413 : vector<4x256xf32> to vector<4x256xbf16>
    %c0_329 = arith.constant 0 : index
    %c128_330 = arith.constant 128 : index
    %415 = vector.load %arg29[%c0_329, %c128_330] : memref<8x401xbf16, #tpu.memory_space<vmem>>, vector<4x256xbf16>
    tpu.vector_store %arg29[%c0_329, %c128_330], %414 {strides = array<i32>} : memref<8x401xbf16, #tpu.memory_space<vmem>>, vector<4x256xbf16>,
    %c4_331 = arith.constant 4 : index
    %c111_332 = arith.constant 111 : index
    %416 = vector.load %arg30[%c4_331, %c111_332] : memref<8x401xbf16, #tpu.memory_space<vmem>>, vector<4x256xbf16>
    %cst_333 = arith.constant 0.000000e+00 : bf16
    %417 = vector.broadcast %cst_333 : bf16 to vector<4x256xbf16>
    %418 = vector.shape_cast %10 : vector<1x256xi1> to vector<1x256xi1>
    %419 = vector.broadcast %418 : vector<1x256xi1> to vector<4x256xi1>
    %420 = arith.select %419, %416, %417 : vector<4x256xi1>, vector<4x256xbf16>
    %c0_334 = arith.constant 0 : index
    %c0_335 = arith.constant 0 : index
    %421 = vector.load %arg31[%c0_334, %c0_335] : memref<72x256xbf16, #tpu.memory_space<vmem>>, vector<4x256xbf16>
    tpu.vector_store %arg31[%c0_334, %c0_335], %420 {strides = array<i32>} : memref<72x256xbf16, #tpu.memory_space<vmem>>, vector<4x256xbf16>,
    %c4_336 = arith.constant 4 : index
    %c112_337 = arith.constant 112 : index
    %422 = vector.load %arg30[%c4_336, %c112_337] : memref<8x401xbf16, #tpu.memory_space<vmem>>, vector<4x256xbf16>
    %c4_338 = arith.constant 4 : index
    %c0_339 = arith.constant 0 : index
    %423 = vector.load %arg31[%c4_338, %c0_339] : memref<72x256xbf16, #tpu.memory_space<vmem>>, vector<4x256xbf16>
    tpu.vector_store %arg31[%c4_338, %c0_339], %422 {strides = array<i32>} : memref<72x256xbf16, #tpu.memory_space<vmem>>, vector<4x256xbf16>,
    %c4_340 = arith.constant 4 : index
    %c113_341 = arith.constant 113 : index
    %424 = vector.load %arg30[%c4_340, %c113_341] : memref<8x401xbf16, #tpu.memory_space<vmem>>, vector<4x256xbf16>
    %cst_342 = arith.constant 0.000000e+00 : bf16
    %425 = vector.broadcast %cst_342 : bf16 to vector<4x256xbf16>
    %426 = vector.shape_cast %12 : vector<1x256xi1> to vector<1x256xi1>
    %427 = vector.broadcast %426 : vector<1x256xi1> to vector<4x256xi1>
    %428 = arith.select %427, %424, %425 : vector<4x256xi1>, vector<4x256xbf16>
    %c8_343 = arith.constant 8 : index
    %c0_344 = arith.constant 0 : index
    %429 = vector.load %arg31[%c8_343, %c0_344] : memref<72x256xbf16, #tpu.memory_space<vmem>>, vector<4x256xbf16>
    tpu.vector_store %arg31[%c8_343, %c0_344], %428 {strides = array<i32>} : memref<72x256xbf16, #tpu.memory_space<vmem>>, vector<4x256xbf16>,
    %c4_345 = arith.constant 4 : index
    %c127_346 = arith.constant 127 : index
    %430 = vector.load %arg30[%c4_345, %c127_346] : memref<8x401xbf16, #tpu.memory_space<vmem>>, vector<4x256xbf16>
    %cst_347 = arith.constant 0.000000e+00 : bf16
    %431 = vector.broadcast %cst_347 : bf16 to vector<4x256xbf16>
    %432 = vector.shape_cast %10 : vector<1x256xi1> to vector<1x256xi1>
    %433 = vector.broadcast %432 : vector<1x256xi1> to vector<4x256xi1>
    %434 = arith.select %433, %430, %431 : vector<4x256xi1>, vector<4x256xbf16>
    %c12_348 = arith.constant 12 : index
    %c0_349 = arith.constant 0 : index
    %435 = vector.load %arg31[%c12_348, %c0_349] : memref<72x256xbf16, #tpu.memory_space<vmem>>, vector<4x256xbf16>
    tpu.vector_store %arg31[%c12_348, %c0_349], %434 {strides = array<i32>} : memref<72x256xbf16, #tpu.memory_space<vmem>>, vector<4x256xbf16>,
    %c4_350 = arith.constant 4 : index
    %c128_351 = arith.constant 128 : index
    %436 = vector.load %arg30[%c4_350, %c128_351] : memref<8x401xbf16, #tpu.memory_space<vmem>>, vector<4x256xbf16>
    %c16_352 = arith.constant 16 : index
    %c0_353 = arith.constant 0 : index
    %437 = vector.load %arg31[%c16_352, %c0_353] : memref<72x256xbf16, #tpu.memory_space<vmem>>, vector<4x256xbf16>
    tpu.vector_store %arg31[%c16_352, %c0_353], %436 {strides = array<i32>} : memref<72x256xbf16, #tpu.memory_space<vmem>>, vector<4x256xbf16>,
    %c4_354 = arith.constant 4 : index
    %c129_355 = arith.constant 129 : index
    %438 = vector.load %arg30[%c4_354, %c129_355] : memref<8x401xbf16, #tpu.memory_space<vmem>>, vector<4x256xbf16>
    %cst_356 = arith.constant 0.000000e+00 : bf16
    %439 = vector.broadcast %cst_356 : bf16 to vector<4x256xbf16>
    %440 = vector.shape_cast %12 : vector<1x256xi1> to vector<1x256xi1>
    %441 = vector.broadcast %440 : vector<1x256xi1> to vector<4x256xi1>
    %442 = arith.select %441, %438, %439 : vector<4x256xi1>, vector<4x256xbf16>
    %c20_357 = arith.constant 20 : index
    %c0_358 = arith.constant 0 : index
    %443 = vector.load %arg31[%c20_357, %c0_358] : memref<72x256xbf16, #tpu.memory_space<vmem>>, vector<4x256xbf16>
    tpu.vector_store %arg31[%c20_357, %c0_358], %442 {strides = array<i32>} : memref<72x256xbf16, #tpu.memory_space<vmem>>, vector<4x256xbf16>,
    %c4_359 = arith.constant 4 : index
    %c143_360 = arith.constant 143 : index
    %444 = vector.load %arg30[%c4_359, %c143_360] : memref<8x401xbf16, #tpu.memory_space<vmem>>, vector<4x256xbf16>
    %cst_361 = arith.constant 0.000000e+00 : bf16
    %445 = vector.broadcast %cst_361 : bf16 to vector<4x256xbf16>
    %446 = vector.shape_cast %10 : vector<1x256xi1> to vector<1x256xi1>
    %447 = vector.broadcast %446 : vector<1x256xi1> to vector<4x256xi1>
    %448 = arith.select %447, %444, %445 : vector<4x256xi1>, vector<4x256xbf16>
    %c24_362 = arith.constant 24 : index
    %c0_363 = arith.constant 0 : index
    %449 = vector.load %arg31[%c24_362, %c0_363] : memref<72x256xbf16, #tpu.memory_space<vmem>>, vector<4x256xbf16>
    tpu.vector_store %arg31[%c24_362, %c0_363], %448 {strides = array<i32>} : memref<72x256xbf16, #tpu.memory_space<vmem>>, vector<4x256xbf16>,
    %c4_364 = arith.constant 4 : index
    %c144_365 = arith.constant 144 : index
    %450 = vector.load %arg30[%c4_364, %c144_365] : memref<8x401xbf16, #tpu.memory_space<vmem>>, vector<4x256xbf16>
    %c28_366 = arith.constant 28 : index
    %c0_367 = arith.constant 0 : index
    %451 = vector.load %arg31[%c28_366, %c0_367] : memref<72x256xbf16, #tpu.memory_space<vmem>>, vector<4x256xbf16>
    tpu.vector_store %arg31[%c28_366, %c0_367], %450 {strides = array<i32>} : memref<72x256xbf16, #tpu.memory_space<vmem>>, vector<4x256xbf16>,
    %c4_368 = arith.constant 4 : index
    %c145_369 = arith.constant 145 : index
    %452 = vector.load %arg30[%c4_368, %c145_369] : memref<8x401xbf16, #tpu.memory_space<vmem>>, vector<4x256xbf16>
    %cst_370 = arith.constant 0.000000e+00 : bf16
    %453 = vector.broadcast %cst_370 : bf16 to vector<4x256xbf16>
    %454 = vector.shape_cast %12 : vector<1x256xi1> to vector<1x256xi1>
    %455 = vector.broadcast %454 : vector<1x256xi1> to vector<4x256xi1>
    %456 = arith.select %455, %452, %453 : vector<4x256xi1>, vector<4x256xbf16>
    %c32_371 = arith.constant 32 : index
    %c0_372 = arith.constant 0 : index
    %457 = vector.load %arg31[%c32_371, %c0_372] : memref<72x256xbf16, #tpu.memory_space<vmem>>, vector<4x256xbf16>
    tpu.vector_store %arg31[%c32_371, %c0_372], %456 {strides = array<i32>} : memref<72x256xbf16, #tpu.memory_space<vmem>>, vector<4x256xbf16>,
    %c0_373 = arith.constant 0 : index
    %c0_374 = arith.constant 0 : index
    %458 = vector.load %arg31[%c0_373, %c0_374] : memref<72x256xbf16, #tpu.memory_space<vmem>>, vector<36x256xbf16>
    %c1_375 = arith.constant 1 : index
    %c0_376 = arith.constant 0 : index
    %c0_377 = arith.constant 0 : index
    %459 = vector.load %arg17[%c1_375, %c0_376, %c0_377] : memref<2x4x36xbf16, #tpu.memory_space<vmem>>, vector<1x4x36xbf16>
    %460 = vector.shape_cast %459 : vector<1x4x36xbf16> to vector<4x36xbf16>
    %cst_378 = arith.constant dense<0.000000e+00> : vector<4x256xf32>
    %461 = tpu.matmul %460, %458, %cst_378 {dimension_numbers = #tpu.dot_dimension_numbers<[1], [0], [0], [1], [0, 0, 1, 1], [], []>} : vector<4x36xbf16>, vector<36x256xbf16>, vector<4x256xf32> -> vector<4x256xf32>
    %462 = vector.extract_strided_slice %357 {offsets = [4, 0], sizes = [4, 1], strides = [1, 1]} : vector<8x1xf32> to vector<4x1xf32>
    %463 = vector.broadcast %462 : vector<4x1xf32> to vector<4x256xf32>
    %464 = arith.mulf %461, %463 : vector<4x256xf32>
    %465 = vector.extract_strided_slice %359 {offsets = [4, 0], sizes = [4, 1], strides = [1, 1]} : vector<8x1xf32> to vector<4x1xf32>
    %466 = vector.broadcast %465 : vector<4x1xf32> to vector<4x256xf32>
    %467 = arith.addf %464, %466 : vector<4x256xf32>
    %cst_379 = arith.constant 0.000000e+00 : f32
    %468 = vector.broadcast %cst_379 : f32 to vector<4x256xf32>
    %469 = arith.maximumf %467, %468 : vector<4x256xf32>
    %470 = arith.truncf %469 : vector<4x256xf32> to vector<4x256xbf16>
    %c4_380 = arith.constant 4 : index
    %c128_381 = arith.constant 128 : index
    %471 = vector.load %arg29[%c4_380, %c128_381] : memref<8x401xbf16, #tpu.memory_space<vmem>>, vector<4x256xbf16>
    tpu.vector_store %arg29[%c4_380, %c128_381], %470 {strides = array<i32>} : memref<8x401xbf16, #tpu.memory_space<vmem>>, vector<4x256xbf16>,
    %472 = vector.extract_strided_slice %296 {offsets = [2, 0, 0], sizes = [1, 8, 1], strides = [1, 1, 1]} : vector<3x8x1xf32> to vector<1x8x1xf32>
    %473 = vector.shape_cast %472 : vector<1x8x1xf32> to vector<8x1xf32>
    %474 = vector.extract_strided_slice %297 {offsets = [2, 0, 0], sizes = [1, 8, 1], strides = [1, 1, 1]} : vector<3x8x1xf32> to vector<1x8x1xf32>
    %475 = vector.shape_cast %474 : vector<1x8x1xf32> to vector<8x1xf32>
    %c0_382 = arith.constant 0 : index
    %c111_383 = arith.constant 111 : index
    %476 = vector.load %arg29[%c0_382, %c111_383] : memref<8x401xbf16, #tpu.memory_space<vmem>>, vector<8x256xbf16>
    %cst_384 = arith.constant 0.000000e+00 : bf16
    %477 = vector.broadcast %cst_384 : bf16 to vector<8x256xbf16>
    %478 = vector.shape_cast %10 : vector<1x256xi1> to vector<1x256xi1>
    %479 = vector.broadcast %478 : vector<1x256xi1> to vector<8x256xi1>
    %480 = arith.select %479, %476, %477 : vector<8x256xi1>, vector<8x256xbf16>
    %c0_385 = arith.constant 0 : index
    %c0_386 = arith.constant 0 : index
    %481 = vector.load %arg31[%c0_385, %c0_386] : memref<72x256xbf16, #tpu.memory_space<vmem>>, vector<8x256xbf16>
    tpu.vector_store %arg31[%c0_385, %c0_386], %480 {strides = array<i32>} : memref<72x256xbf16, #tpu.memory_space<vmem>>, vector<8x256xbf16>,
    %c0_387 = arith.constant 0 : index
    %c112_388 = arith.constant 112 : index
    %482 = vector.load %arg29[%c0_387, %c112_388] : memref<8x401xbf16, #tpu.memory_space<vmem>>, vector<8x256xbf16>
    %c8_389 = arith.constant 8 : index
    %c0_390 = arith.constant 0 : index
    %483 = vector.load %arg31[%c8_389, %c0_390] : memref<72x256xbf16, #tpu.memory_space<vmem>>, vector<8x256xbf16>
    tpu.vector_store %arg31[%c8_389, %c0_390], %482 {strides = array<i32>} : memref<72x256xbf16, #tpu.memory_space<vmem>>, vector<8x256xbf16>,
    %c0_391 = arith.constant 0 : index
    %c113_392 = arith.constant 113 : index
    %484 = vector.load %arg29[%c0_391, %c113_392] : memref<8x401xbf16, #tpu.memory_space<vmem>>, vector<8x256xbf16>
    %cst_393 = arith.constant 0.000000e+00 : bf16
    %485 = vector.broadcast %cst_393 : bf16 to vector<8x256xbf16>
    %486 = vector.shape_cast %12 : vector<1x256xi1> to vector<1x256xi1>
    %487 = vector.broadcast %486 : vector<1x256xi1> to vector<8x256xi1>
    %488 = arith.select %487, %484, %485 : vector<8x256xi1>, vector<8x256xbf16>
    %c16_394 = arith.constant 16 : index
    %c0_395 = arith.constant 0 : index
    %489 = vector.load %arg31[%c16_394, %c0_395] : memref<72x256xbf16, #tpu.memory_space<vmem>>, vector<8x256xbf16>
    tpu.vector_store %arg31[%c16_394, %c0_395], %488 {strides = array<i32>} : memref<72x256xbf16, #tpu.memory_space<vmem>>, vector<8x256xbf16>,
    %c0_396 = arith.constant 0 : index
    %c127_397 = arith.constant 127 : index
    %490 = vector.load %arg29[%c0_396, %c127_397] : memref<8x401xbf16, #tpu.memory_space<vmem>>, vector<8x256xbf16>
    %cst_398 = arith.constant 0.000000e+00 : bf16
    %491 = vector.broadcast %cst_398 : bf16 to vector<8x256xbf16>
    %492 = vector.shape_cast %10 : vector<1x256xi1> to vector<1x256xi1>
    %493 = vector.broadcast %492 : vector<1x256xi1> to vector<8x256xi1>
    %494 = arith.select %493, %490, %491 : vector<8x256xi1>, vector<8x256xbf16>
    %c24_399 = arith.constant 24 : index
    %c0_400 = arith.constant 0 : index
    %495 = vector.load %arg31[%c24_399, %c0_400] : memref<72x256xbf16, #tpu.memory_space<vmem>>, vector<8x256xbf16>
    tpu.vector_store %arg31[%c24_399, %c0_400], %494 {strides = array<i32>} : memref<72x256xbf16, #tpu.memory_space<vmem>>, vector<8x256xbf16>,
    %c0_401 = arith.constant 0 : index
    %c128_402 = arith.constant 128 : index
    %496 = vector.load %arg29[%c0_401, %c128_402] : memref<8x401xbf16, #tpu.memory_space<vmem>>, vector<8x256xbf16>
    %c32_403 = arith.constant 32 : index
    %c0_404 = arith.constant 0 : index
    %497 = vector.load %arg31[%c32_403, %c0_404] : memref<72x256xbf16, #tpu.memory_space<vmem>>, vector<8x256xbf16>
    tpu.vector_store %arg31[%c32_403, %c0_404], %496 {strides = array<i32>} : memref<72x256xbf16, #tpu.memory_space<vmem>>, vector<8x256xbf16>,
    %c0_405 = arith.constant 0 : index
    %c129_406 = arith.constant 129 : index
    %498 = vector.load %arg29[%c0_405, %c129_406] : memref<8x401xbf16, #tpu.memory_space<vmem>>, vector<8x256xbf16>
    %cst_407 = arith.constant 0.000000e+00 : bf16
    %499 = vector.broadcast %cst_407 : bf16 to vector<8x256xbf16>
    %500 = vector.shape_cast %12 : vector<1x256xi1> to vector<1x256xi1>
    %501 = vector.broadcast %500 : vector<1x256xi1> to vector<8x256xi1>
    %502 = arith.select %501, %498, %499 : vector<8x256xi1>, vector<8x256xbf16>
    %c40_408 = arith.constant 40 : index
    %c0_409 = arith.constant 0 : index
    %503 = vector.load %arg31[%c40_408, %c0_409] : memref<72x256xbf16, #tpu.memory_space<vmem>>, vector<8x256xbf16>
    tpu.vector_store %arg31[%c40_408, %c0_409], %502 {strides = array<i32>} : memref<72x256xbf16, #tpu.memory_space<vmem>>, vector<8x256xbf16>,
    %c0_410 = arith.constant 0 : index
    %c143_411 = arith.constant 143 : index
    %504 = vector.load %arg29[%c0_410, %c143_411] : memref<8x401xbf16, #tpu.memory_space<vmem>>, vector<8x256xbf16>
    %cst_412 = arith.constant 0.000000e+00 : bf16
    %505 = vector.broadcast %cst_412 : bf16 to vector<8x256xbf16>
    %506 = vector.shape_cast %10 : vector<1x256xi1> to vector<1x256xi1>
    %507 = vector.broadcast %506 : vector<1x256xi1> to vector<8x256xi1>
    %508 = arith.select %507, %504, %505 : vector<8x256xi1>, vector<8x256xbf16>
    %c48_413 = arith.constant 48 : index
    %c0_414 = arith.constant 0 : index
    %509 = vector.load %arg31[%c48_413, %c0_414] : memref<72x256xbf16, #tpu.memory_space<vmem>>, vector<8x256xbf16>
    tpu.vector_store %arg31[%c48_413, %c0_414], %508 {strides = array<i32>} : memref<72x256xbf16, #tpu.memory_space<vmem>>, vector<8x256xbf16>,
    %c0_415 = arith.constant 0 : index
    %c144_416 = arith.constant 144 : index
    %510 = vector.load %arg29[%c0_415, %c144_416] : memref<8x401xbf16, #tpu.memory_space<vmem>>, vector<8x256xbf16>
    %c56_417 = arith.constant 56 : index
    %c0_418 = arith.constant 0 : index
    %511 = vector.load %arg31[%c56_417, %c0_418] : memref<72x256xbf16, #tpu.memory_space<vmem>>, vector<8x256xbf16>
    tpu.vector_store %arg31[%c56_417, %c0_418], %510 {strides = array<i32>} : memref<72x256xbf16, #tpu.memory_space<vmem>>, vector<8x256xbf16>,
    %c0_419 = arith.constant 0 : index
    %c145_420 = arith.constant 145 : index
    %512 = vector.load %arg29[%c0_419, %c145_420] : memref<8x401xbf16, #tpu.memory_space<vmem>>, vector<8x256xbf16>
    %cst_421 = arith.constant 0.000000e+00 : bf16
    %513 = vector.broadcast %cst_421 : bf16 to vector<8x256xbf16>
    %514 = vector.shape_cast %12 : vector<1x256xi1> to vector<1x256xi1>
    %515 = vector.broadcast %514 : vector<1x256xi1> to vector<8x256xi1>
    %516 = arith.select %515, %512, %513 : vector<8x256xi1>, vector<8x256xbf16>
    %c64_422 = arith.constant 64 : index
    %c0_423 = arith.constant 0 : index
    %517 = vector.load %arg31[%c64_422, %c0_423] : memref<72x256xbf16, #tpu.memory_space<vmem>>, vector<8x256xbf16>
    tpu.vector_store %arg31[%c64_422, %c0_423], %516 {strides = array<i32>} : memref<72x256xbf16, #tpu.memory_space<vmem>>, vector<8x256xbf16>,
    %c0_424 = arith.constant 0 : index
    %c0_425 = arith.constant 0 : index
    %518 = vector.load %arg31[%c0_424, %c0_425] : memref<72x256xbf16, #tpu.memory_space<vmem>>, vector<72x256xbf16>
    %c0_426 = arith.constant 0 : index
    %c0_427 = arith.constant 0 : index
    %519 = vector.load %arg18[%c0_426, %c0_427] : memref<8x72xbf16, #tpu.memory_space<vmem>>, vector<8x72xbf16>
    %cst_428 = arith.constant dense<0.000000e+00> : vector<8x256xf32>
    %520 = tpu.matmul %519, %518, %cst_428 {dimension_numbers = #tpu.dot_dimension_numbers<[1], [0], [0], [1], [0, 0, 1, 1], [], []>} : vector<8x72xbf16>, vector<72x256xbf16>, vector<8x256xf32> -> vector<8x256xf32>
    %521 = vector.broadcast %473 : vector<8x1xf32> to vector<8x256xf32>
    %522 = arith.mulf %520, %521 : vector<8x256xf32>
    %523 = vector.broadcast %475 : vector<8x1xf32> to vector<8x256xf32>
    %524 = arith.addf %522, %523 : vector<8x256xf32>
    %cst_429 = arith.constant dense<0.000000e+00> : vector<8xf32>
    %525 = vector.multi_reduction <add>, %524, %cst_429 [1] : vector<8x256xf32> to vector<8xf32>
    %526 = vector.shape_cast %525 : vector<8xf32> to vector<8x1xf32>
    %cst_430 = arith.constant 2.560000e+02 : f32
    %527 = vector.broadcast %cst_430 : f32 to vector<8x1xf32>
    %528 = arith.divf %526, %527 : vector<8x1xf32>
    %c0_431 = arith.constant 0 : index
    %c0_432 = arith.constant 0 : index
    %529 = vector.load %arg21[%c0_431, %c0_432] : memref<8x4xf32, #tpu.memory_space<vmem>>, vector<8x4xf32>
    %530 = vector.broadcast %528 : vector<8x1xf32> to vector<8x4xf32>
    %531 = arith.mulf %529, %530 : vector<8x4xf32>
    %cst_433 = arith.constant dense<0.000000e+00> : vector<4xf32>
    %532 = vector.multi_reduction <add>, %531, %cst_433 [0] : vector<8x4xf32> to vector<4xf32>
    %533 = vector.shape_cast %532 : vector<4xf32> to vector<1x4xf32>
    %c0_434 = arith.constant 0 : index
    %c0_435 = arith.constant 0 : index
    %534 = vector.load %arg22[%c0_434, %c0_435] : memref<1x4xf32, #tpu.memory_space<vmem>>, vector<1x4xf32>
    %535 = arith.addf %533, %534 : vector<1x4xf32>
    %cst_436 = arith.constant 0.000000e+00 : f32
    %536 = vector.broadcast %cst_436 : f32 to vector<1x4xf32>
    %537 = arith.maximumf %535, %536 : vector<1x4xf32>
    %c0_437 = arith.constant 0 : index
    %c0_438 = arith.constant 0 : index
    %538 = vector.load %arg23[%c0_437, %c0_438] : memref<8x4xf32, #tpu.memory_space<vmem>>, vector<8x4xf32>
    %539 = vector.broadcast %537 : vector<1x4xf32> to vector<8x4xf32>
    %540 = arith.mulf %538, %539 : vector<8x4xf32>
    %cst_439 = arith.constant dense<0.000000e+00> : vector<8xf32>
    %541 = vector.multi_reduction <add>, %540, %cst_439 [1] : vector<8x4xf32> to vector<8xf32>
    %542 = vector.shape_cast %541 : vector<8xf32> to vector<8x1xf32>
    %c0_440 = arith.constant 0 : index
    %c0_441 = arith.constant 0 : index
    %543 = vector.load %arg24[%c0_440, %c0_441] : memref<8x1xf32, #tpu.memory_space<vmem>>, vector<8x1xf32>
    %544 = arith.addf %542, %543 : vector<8x1xf32>
    %545 = arith.negf %544 : vector<8x1xf32>
    %546 = math.exp %545 : vector<8x1xf32>
    %cst_442 = arith.constant 1.000000e+00 : f32
    %547 = vector.broadcast %cst_442 : f32 to vector<8x1xf32>
    %548 = arith.addf %547, %546 : vector<8x1xf32>
    %549 = arith.divf %547, %548 : vector<8x1xf32>
    %c0_443 = arith.constant 0 : index
    %c0_444 = arith.constant 0 : index
    %550 = vector.load %arg25[%c0_443, %c0_444] : memref<8x1xf32, #tpu.memory_space<vmem>>, vector<8x1xf32>
    %551 = vector.broadcast %550 : vector<8x1xf32> to vector<8x256xf32>
    %552 = arith.mulf %524, %551 : vector<8x256xf32>
    %cst_445 = arith.constant dense<0.000000e+00> : vector<256xf32>
    %553 = vector.multi_reduction <add>, %552, %cst_445 [0] : vector<8x256xf32> to vector<256xf32>
    %554 = vector.shape_cast %553 : vector<256xf32> to vector<1x256xf32>
    %c0_446 = arith.constant 0 : index
    %c0_447 = arith.constant 0 : index
    %555 = vector.load %arg26[%c0_446, %c0_447] : memref<1x1xf32, #tpu.memory_space<vmem>>, vector<1x1xf32>
    %556 = vector.broadcast %555 : vector<1x1xf32> to vector<1x256xf32>
    %557 = arith.addf %554, %556 : vector<1x256xf32>
    %558 = arith.negf %557 : vector<1x256xf32>
    %559 = math.exp %558 : vector<1x256xf32>
    %cst_448 = arith.constant 1.000000e+00 : f32
    %560 = vector.broadcast %cst_448 : f32 to vector<1x256xf32>
    %561 = arith.addf %560, %559 : vector<1x256xf32>
    %562 = arith.divf %560, %561 : vector<1x256xf32>
    %563 = vector.broadcast %549 : vector<8x1xf32> to vector<8x256xf32>
    %564 = arith.mulf %524, %563 : vector<8x256xf32>
    %565 = vector.broadcast %562 : vector<1x256xf32> to vector<8x256xf32>
    %566 = arith.mulf %524, %565 : vector<8x256xf32>
    %567 = arith.addf %564, %566 : vector<8x256xf32>
    %568 = arith.addf %567, %294 : vector<8x256xf32>
    %cst_449 = arith.constant 0.000000e+00 : f32
    %569 = vector.broadcast %cst_449 : f32 to vector<8x256xf32>
    %570 = arith.maximumf %568, %569 : vector<8x256xf32>
    %c0_450 = arith.constant 0 : index
    %c0_451 = arith.constant 0 : index
    %c0_452 = arith.constant 0 : index
    %571 = vector.load %arg27[%c0_450, %c0_451, %c0_452] : memref<1x8x256xf32, #tpu.memory_space<vmem>>, vector<1x8x256xf32>
    %572 = vector.shape_cast %571 : vector<1x8x256xf32> to vector<8x256xf32>
    %573 = vector.shape_cast %570 : vector<8x256xf32> to vector<1x8x256xf32>
    tpu.vector_store %arg27[%c0_450, %c0_451, %c0_452], %573 {strides = array<i32>} : memref<1x8x256xf32, #tpu.memory_space<vmem>>, vector<1x8x256xf32>,
    %c0_453 = arith.constant 0 : index
    %c0_454 = arith.constant 0 : index
    %574 = vector.load %arg32[%c0_453, %c0_454] : memref<8x273xf32, #tpu.memory_space<vmem>>, vector<8x256xf32>
    tpu.vector_store %arg32[%c0_453, %c0_454], %570 {strides = array<i32>} : memref<8x273xf32, #tpu.memory_space<vmem>>, vector<8x256xf32>,
    %c0_455 = arith.constant 0 : index
    %c1_456 = arith.constant 1 : index
    %575 = vector.load %arg32[%c0_455, %c1_456] : memref<8x273xf32, #tpu.memory_space<vmem>>, vector<8x256xf32>
    %c0_457 = arith.constant 0 : index
    %c16_458 = arith.constant 16 : index
    %576 = vector.load %arg32[%c0_457, %c16_458] : memref<8x273xf32, #tpu.memory_space<vmem>>, vector<8x256xf32>
    %c0_459 = arith.constant 0 : index
    %c17 = arith.constant 17 : index
    %577 = vector.load %arg32[%c0_459, %c17] : memref<8x273xf32, #tpu.memory_space<vmem>>, vector<8x256xf32>
    %578 = arith.maximumf %570, %575 : vector<8x256xf32>
    %579 = arith.maximumf %576, %577 : vector<8x256xf32>
    %580 = arith.maximumf %578, %579 : vector<8x256xf32>
    %c0_460 = arith.constant 0 : index
    %c0_461 = arith.constant 0 : index
    %581 = vector.load %arg2[%c0_460, %c0_461] : memref<256x64xf32, #tpu.memory_space<vmem>>, vector<256x64xf32>
    %cst_462 = arith.constant dense<0.000000e+00> : vector<8x64xf32>
    %582 = tpu.matmul %580, %581, %cst_462 {dimension_numbers = #tpu.dot_dimension_numbers<[1], [0], [0], [1], [0, 0, 1, 1], [], []>} : vector<8x256xf32>, vector<256x64xf32>, vector<8x64xf32> -> vector<8x64xf32>
    %c0_463 = arith.constant 0 : index
    %c0_464 = arith.constant 0 : index
    %c0_465 = arith.constant 0 : index
    %583 = vector.load %arg28[%c0_463, %c0_464, %c0_465] : memref<1x8x64xf32, #tpu.memory_space<vmem>>, vector<1x8x64xf32>
    %584 = vector.shape_cast %583 : vector<1x8x64xf32> to vector<8x64xf32>
    %585 = vector.shape_cast %582 : vector<8x64xf32> to vector<1x8x64xf32>
    tpu.vector_store %arg28[%c0_463, %c0_464, %c0_465], %585 {strides = array<i32>} : memref<1x8x64xf32, #tpu.memory_space<vmem>>, vector<1x8x64xf32>,
    return
  }
  func.func @transform_0(%arg0: i32) -> (i32, i32, i32) {
    %c0_i32 = arith.constant 0 : i32
    %c0_i32_0 = arith.constant 0 : i32
    %c0_i32_1 = arith.constant 0 : i32
    return %arg0, %c0_i32, %c0_i32_0 : i32, i32, i32
  }
  func.func @transform_1(%arg0: i32) -> (i32, i32) {
    %c0_i32 = arith.constant 0 : i32
    %c0_i32_0 = arith.constant 0 : i32
    %c0_i32_1 = arith.constant 0 : i32
    return %c0_i32, %c0_i32_0 : i32, i32
  }
  func.func @transform_2(%arg0: i32) -> (i32, i32) {
    %c0_i32 = arith.constant 0 : i32
    %c0_i32_0 = arith.constant 0 : i32
    %c0_i32_1 = arith.constant 0 : i32
    return %c0_i32, %c0_i32_0 : i32, i32
  }
  func.func @transform_3(%arg0: i32) -> (i32, i32, i32) {
    %c0_i32 = arith.constant 0 : i32
    %c0_i32_0 = arith.constant 0 : i32
    %c0_i32_1 = arith.constant 0 : i32
    %c0_i32_2 = arith.constant 0 : i32
    return %c0_i32, %c0_i32_0, %c0_i32_1 : i32, i32, i32
  }
  func.func @transform_4(%arg0: i32) -> (i32, i32) {
    %c0_i32 = arith.constant 0 : i32
    %c0_i32_0 = arith.constant 0 : i32
    %c0_i32_1 = arith.constant 0 : i32
    return %c0_i32, %c0_i32_0 : i32, i32
  }
  func.func @transform_5(%arg0: i32) -> (i32, i32, i32) {
    %c0_i32 = arith.constant 0 : i32
    %c0_i32_0 = arith.constant 0 : i32
    %c0_i32_1 = arith.constant 0 : i32
    %c0_i32_2 = arith.constant 0 : i32
    return %c0_i32, %c0_i32_0, %c0_i32_1 : i32, i32, i32
  }
  func.func @transform_6(%arg0: i32) -> (i32, i32, i32) {
    %c0_i32 = arith.constant 0 : i32
    %c0_i32_0 = arith.constant 0 : i32
    %c0_i32_1 = arith.constant 0 : i32
    %c0_i32_2 = arith.constant 0 : i32
    return %c0_i32, %c0_i32_0, %c0_i32_1 : i32, i32, i32
  }
  func.func @transform_7(%arg0: i32) -> (i32, i32) {
    %c0_i32 = arith.constant 0 : i32
    %c0_i32_0 = arith.constant 0 : i32
    %c0_i32_1 = arith.constant 0 : i32
    return %c0_i32, %c0_i32_0 : i32, i32
  }
  func.func @transform_8(%arg0: i32) -> (i32, i32) {
    %c0_i32 = arith.constant 0 : i32
    %c0_i32_0 = arith.constant 0 : i32
    %c0_i32_1 = arith.constant 0 : i32
    return %c0_i32, %c0_i32_0 : i32, i32
  }
  func.func @transform_9(%arg0: i32) -> (i32, i32) {
    %c0_i32 = arith.constant 0 : i32
    %c0_i32_0 = arith.constant 0 : i32
    %c0_i32_1 = arith.constant 0 : i32
    return %c0_i32, %c0_i32_0 : i32, i32
  }
  func.func @transform_10(%arg0: i32) -> (i32, i32) {
    %c0_i32 = arith.constant 0 : i32
    %c0_i32_0 = arith.constant 0 : i32
    %c0_i32_1 = arith.constant 0 : i32
    return %c0_i32, %c0_i32_0 : i32, i32
  }
  func.func @transform_11(%arg0: i32) -> (i32, i32) {
    %c0_i32 = arith.constant 0 : i32
    %c0_i32_0 = arith.constant 0 : i32
    %c0_i32_1 = arith.constant 0 : i32
    return %c0_i32, %c0_i32_0 : i32, i32
  }
  func.func @transform_12(%arg0: i32) -> (i32, i32) {
    %c0_i32 = arith.constant 0 : i32
    %c0_i32_0 = arith.constant 0 : i32
    %c0_i32_1 = arith.constant 0 : i32
    return %c0_i32, %c0_i32_0 : i32, i32
  }
  func.func @transform_13(%arg0: i32) -> (i32, i32) {
    %c0_i32 = arith.constant 0 : i32
    %c0_i32_0 = arith.constant 0 : i32
    %c0_i32_1 = arith.constant 0 : i32
    return %c0_i32, %c0_i32_0 : i32, i32
  }
  func.func @transform_14(%arg0: i32) -> (i32, i32) {
    %c0_i32 = arith.constant 0 : i32
    %c0_i32_0 = arith.constant 0 : i32
    %c0_i32_1 = arith.constant 0 : i32
    return %c0_i32, %c0_i32_0 : i32, i32
  }
  func.func @transform_15(%arg0: i32) -> (i32, i32) {
    %c0_i32 = arith.constant 0 : i32
    %c0_i32_0 = arith.constant 0 : i32
    %c0_i32_1 = arith.constant 0 : i32
    return %c0_i32, %c0_i32_0 : i32, i32
  }
  func.func @transform_16(%arg0: i32) -> (i32, i32, i32) {
    %c0_i32 = arith.constant 0 : i32
    %c0_i32_0 = arith.constant 0 : i32
    %c0_i32_1 = arith.constant 0 : i32
    %c0_i32_2 = arith.constant 0 : i32
    return %c0_i32, %c0_i32_0, %c0_i32_1 : i32, i32, i32
  }
  func.func @transform_17(%arg0: i32) -> (i32, i32) {
    %c0_i32 = arith.constant 0 : i32
    %c0_i32_0 = arith.constant 0 : i32
    %c0_i32_1 = arith.constant 0 : i32
    return %c0_i32, %c0_i32_0 : i32, i32
  }
  func.func @transform_18(%arg0: i32) -> (i32, i32, i32) {
    %c0_i32 = arith.constant 0 : i32
    %c0_i32_0 = arith.constant 0 : i32
    %c0_i32_1 = arith.constant 0 : i32
    %c0_i32_2 = arith.constant 0 : i32
    return %c0_i32, %c0_i32_0, %c0_i32_1 : i32, i32, i32
  }
  func.func @transform_19(%arg0: i32) -> (i32, i32, i32) {
    %c0_i32 = arith.constant 0 : i32
    %c0_i32_0 = arith.constant 0 : i32
    %c0_i32_1 = arith.constant 0 : i32
    %c0_i32_2 = arith.constant 0 : i32
    return %c0_i32, %c0_i32_0, %c0_i32_1 : i32, i32, i32
  }
  func.func @transform_20(%arg0: i32) -> (i32, i32) {
    %c0_i32 = arith.constant 0 : i32
    %c0_i32_0 = arith.constant 0 : i32
    %c0_i32_1 = arith.constant 0 : i32
    return %c0_i32, %c0_i32_0 : i32, i32
  }
  func.func @transform_21(%arg0: i32) -> (i32, i32) {
    %c0_i32 = arith.constant 0 : i32
    %c0_i32_0 = arith.constant 0 : i32
    %c0_i32_1 = arith.constant 0 : i32
    return %c0_i32, %c0_i32_0 : i32, i32
  }
  func.func @transform_22(%arg0: i32) -> (i32, i32) {
    %c0_i32 = arith.constant 0 : i32
    %c0_i32_0 = arith.constant 0 : i32
    %c0_i32_1 = arith.constant 0 : i32
    return %c0_i32, %c0_i32_0 : i32, i32
  }
  func.func @transform_23(%arg0: i32) -> (i32, i32) {
    %c0_i32 = arith.constant 0 : i32
    %c0_i32_0 = arith.constant 0 : i32
    %c0_i32_1 = arith.constant 0 : i32
    return %c0_i32, %c0_i32_0 : i32, i32
  }
  func.func @transform_24(%arg0: i32) -> (i32, i32) {
    %c0_i32 = arith.constant 0 : i32
    %c0_i32_0 = arith.constant 0 : i32
    %c0_i32_1 = arith.constant 0 : i32
    return %c0_i32, %c0_i32_0 : i32, i32
  }
  func.func @transform_25(%arg0: i32) -> (i32, i32) {
    %c0_i32 = arith.constant 0 : i32
    %c0_i32_0 = arith.constant 0 : i32
    %c0_i32_1 = arith.constant 0 : i32
    return %c0_i32, %c0_i32_0 : i32, i32
  }
  func.func @transform_26(%arg0: i32) -> (i32, i32, i32) {
    %c0_i32 = arith.constant 0 : i32
    %c0_i32_0 = arith.constant 0 : i32
    %c0_i32_1 = arith.constant 0 : i32
    return %arg0, %c0_i32, %c0_i32_0 : i32, i32, i32
  }
  func.func @transform_27(%arg0: i32) -> (i32, i32, i32) {
    %c0_i32 = arith.constant 0 : i32
    %c0_i32_0 = arith.constant 0 : i32
    %c0_i32_1 = arith.constant 0 : i32
    return %arg0, %c0_i32, %c0_i32_0 : i32, i32, i32
  }
}

</mosaic_0001>

<bundles_post_ra>
// kernel: downsample_forward.1
= control target key start
LH: loop header
LB: loop body
LE: loop exit
PB: predicated region body
PF: predicated region fallthrough
CT: control target
= control target key end

     0   :  { %s4747_s0 = inlined_call_operand.vmem [shape: bf16[2,4,256], index: 0, kind: input, shape index: {}]   ;;  %s4748_s1 = inlined_call_operand.vmem [shape: f32[256,64], index: 1, kind: input, shape index: {}]   ;;  %s4749_s2 = inlined_call_operand.vmem [shape: bf16[8,36], index: 2, kind: input, shape index: {}]   ;;  %s4750_s3 = inlined_call_operand.vmem [shape: bf16[2,4,36], index: 3, kind: input, shape index: {}]   ;;  %s4751_s4 = inlined_call_operand.vmem [shape: bf16[8,72], index: 4, kind: input, shape index: {}]   ;;  %s4752_s5 = inlined_call_operand.vmem [shape: f32[3,8,1], index: 5, kind: input, shape index: {}]   ;;  %s4753_s6 = inlined_call_operand.vmem [shape: f32[3,8,1], index: 6, kind: input, shape index: {}]   ;;  %s4754_s7 = inlined_call_operand.vmem [shape: f32[8,4], index: 7, kind: input, shape index: {}]   ;;  %s4755_s8 = inlined_call_operand.vmem [shape: f32[1,4], index: 8, kind: input, shape index: {}]   ;;  %s4756_s9 = inlined_call_operand.vmem [shape: f32[8,4], index: 9, kind: input, shape index: {}]   ;;  %s4757_s10 = inlined_call_operand.vmem [shape: f32[8,1], index: 10, kind: input, shape index: {}]   ;;  %s4758_s11 = inlined_call_operand.vmem [shape: f32[8,1], index: 11, kind: input, shape index: {}]   ;;  %s4759_s12 = inlined_call_operand.<no memory space> [shape: f32[1,1], index: 12, kind: input, shape index: {}]   ;;  %s4760_s13 = inlined_call_operand.vmem [shape: bf16[8,4], index: 13, kind: input, shape index: {}]   ;;  %s4761_s14 = inlined_call_operand.vmem [shape: f32[8,1], index: 14, kind: input, shape index: {}]   ;;  %s4762_s15 = inlined_call_operand.vmem [shape: bf16[8,72], index: 15, kind: input, shape index: {}]   ;;  %s4763_s16 = inlined_call_operand.vmem [shape: bf16[2,4,36], index: 16, kind: input, shape index: {}]   ;;  %s4764_s17 = inlined_call_operand.vmem [shape: bf16[8,72], index: 17, kind: input, shape index: {}]   ;;  %s4765_s18 = inlined_call_operand.vmem [shape: f32[3,8,1], index: 18, kind: input, shape index: {}]   ;;  %s4766_s19 = inlined_call_operand.vmem [shape: f32[3,8,1], index: 19, kind: input, shape index: {}]   ;;  %s4767_s20 = inlined_call_operand.vmem [shape: f32[8,4], index: 20, kind: input, shape index: {}]   ;;  %s4768_s21 = inlined_call_operand.vmem [shape: f32[1,4], index: 21, kind: input, shape index: {}]   ;;  %s4769_s22 = inlined_call_operand.vmem [shape: f32[8,4], index: 22, kind: input, shape index: {}]   ;;  %s4770_s23 = inlined_call_operand.vmem [shape: f32[8,1], index: 23, kind: input, shape index: {}]   ;;  %s4771_s24 = inlined_call_operand.vmem [shape: f32[8,1], index: 24, kind: input, shape index: {}]   ;;  %s4772_s26 = inlined_call_operand.vmem [shape: f32[2,8,256], index: 26, kind: output, shape index: {0}]   ;;  %s4773_s27 = inlined_call_operand.vmem [shape: f32[2,8,64], index: 27, kind: output, shape index: {1}]   ;;  %s4774_s25 = inlined_call_operand.<no memory space> [shape: f32[1,1], index: 25, kind: input, shape index: {}]  }
   0x1   :  { %4804 = sst [smem:[#allocation8_spill]] %s4747_s0  ;;  %v33_v0 = vstv %s4759_s12  ;;  %v35_v1 = vstv %s4774_s25 }
   0x2   :  { %4805 = sst [smem:[#allocation9_spill]] %s4748_s1  ;;  %34 = vst [vmem:[#allocation6] sm:$0x1] %v33_v0  ;;  %36 = vst [vmem:[#allocation7] sm:$0x1] %v35_v1 }
   0x3   :  { %4806 = sst [smem:[#allocation10_spill]] %s4749_s2 }
   0x4   :  { %4807 = sst [smem:[#allocation11_spill]] %s4750_s3 }
   0x5   :  { %4808 = sst [smem:[#allocation12_spill]] %s4751_s4 }
   0x6   :  { %4809 = sst [smem:[#allocation13_spill]] %s4752_s5 }
   0x7   :  { %4810 = sst [smem:[#allocation14_spill]] %s4753_s6 }
   0x8   :  { %4811 = sst [smem:[#allocation15_spill]] %s4754_s7 }
   0x9   :  { %4812 = sst [smem:[#allocation16_spill]] %s4755_s8 }
   0xa   :  { %4813 = sst [smem:[#allocation17_spill]] %s4756_s9  ;;  %s3831_s9 = smov 0  }
   0xb   :  { %4814 = sst [smem:[#allocation18_spill]] %s4757_s10 }
   0xc   :  { %4815 = sst [smem:[#allocation19_spill]] %s4758_s11 }
   0xd LB: > { %s3388_s5 = sadd.s32 4294967295, %s3673_s9   ;;  %p3392_p0 = scmp.ge.s32.totalorder %s3673_s9, 1  ;;  %s3673_s9 = sphi %s3831_s9, %s42_s9  }
   0xe   : > { %p744_p1 = scmp.lt.s32.totalorder %s3673_s9, 3 }
  0x10   : > { %p745_p2 = pnand %p3392_p0, %p744_p1 }
  0x11   : > { %v848_v2 = vlaneseq (!%p745_p2)  ;;  %vm838_vm0 = vcmask (!%p745_p2), 1043456   ;;  %vm839_vm1 = vcmask (!%p745_p2), 138244   ;;  %v3675_v3 = vmov (!%p745_p2), 0   ;;  %p820_p3 = scmp.lt.s32.totalorder (!%p745_p2), %s3388_s5, 1  ;;  %s4816_s0 = sld [smem:[#allocation8_spill]] (!%p745_p2) }
  0x12   : > { %748 = sbr.rel (%p745_p2) target bundleno = 3927 (0xf57), region = 124  ;;  %837 = vst [vmem:[#allocation2] sm:$0xff] (!%p745_p2), %v3675_v3  ;;  %842 = vst [vmem:[#allocation3] sm:$0xff] (!%p745_p2), %v3675_v3  ;;  %3606 = vset.pattern.permute.xlu0 (!%p745_p2), %v3675_v3  ;;  %1198 = vmatprep.mubr.bf16.mxu0 (!%p745_p2), %v3675_v3  ;;  %s4799_s29 = smov (!%p745_p2), 127   ;;  %vm945_vm9 = vcmask (!%p745_p2), 908288   ;;  %vm993_vm10 = vcmask (!%p745_p2), 924672  }
  0x13   : > { %vm840_vm2 = vmor (!%p745_p2), %vm839_vm1, %vm838_vm0  ;;  %v849_v4 = vand.u32 (!%p745_p2), 127, %v848_v2  ;;  %3607 = vset.pattern.permute.xlu1 (!%p745_p2), %v3675_v3  ;;  %917 = vmatprep.mubr.bf16.mxu1 (!%p745_p2), %v3675_v3  ;;  %s4794_s1 = smov (!%p745_p2), 113   ;;  %s4790_s6 = smov (!%p745_p2), 111   ;;  %vm4785_vm13 = vcmask (!%p745_p2), 1039360   ;;  %vm1008_vm15 = vcmask (!%p745_p2), 121856  }
  0x14   : > { %841 = vst.msk [vmem:[#allocation2 + $0x8] sm:$0xff] (!%p745_p2), %vm840_vm2, %v3675_v3  ;;  %843 = vst.msk [vmem:[#allocation3 + $0x8] sm:$0xff] (!%p745_p2), %vm840_vm2, %v3675_v3  ;;  %s4796_s11 = smov (!%p745_p2), 1   ;;  %s3680_s2 = smov (!%p745_p2), 15  }
  0x15   : > { %v850_v5 = vadd.s32 (!%p745_p2), 128, %v849_v4  ;;  %v851_v6 = vand.u32 (!%p745_p2), 15, %v849_v4  ;;  %s3681_s3 = smov (!%p745_p2), 17   ;;  %s3682_s7 = smov (!%p745_p2), 16  }
  0x16   : > { %s4792_s4 = smov (!%p745_p2), 112   ;;  %s4831_s30 = sld [smem:[#allocation10_spill]] (!%p745_p2) }
  0x17   : > { %v852_v7 = vand.u32 (!%p745_p2), 15, %v850_v5  ;;  %vm853_vm3 = vcmp.ne.s32.totalorder (!%p745_p2), %v851_v6, 0  ;;  %vm855_vm4 = vcmp.ne.s32.totalorder (!%p745_p2), %v851_v6, 15  ;;  %s4845_s8 = sld [smem:[#allocation11_spill]] (!%p745_p2)  ;;  %s4908_s25 = sld [smem:[#allocation9_spill]] (!%p745_p2) }
  0x19   : > { %s4915_s5 = smov (!%p820_p3, %s3388_s5), 1  ;;  %vm854_vm5 = vcmp.ne.s32.totalorder %v852_v7, 0  ;;  %vm856_vm6 = vcmp.ne.s32.totalorder %v852_v7, 15 }
  0x1a   : > { %s3512_s12 = sshll.u32 %s4915_s5, 2  ;;  %vm940_vm7 = vmpackc.low %vm854_vm5, %vm853_vm3  ;;  %vm4784_vm3 = vcmask 7168   ;;  %s3513_s28 = sshll.u32 %s4915_s5, 4 }
  0x1b   : > { %s824_s10 = scalar_lea.vmem %s4816_s0, %s3512_s12  ;;  %v941_v9 = vsel %vm940_vm7, 65537, %v3675_v3  ;;  %vm988_vm8 = vmpackc.low %vm856_vm6, %vm855_vm4  ;;  %v1087_v11 = vld [vmem:[#allocation2 + $0xc] sm:$0x3]  ;;  %s4829_s12 = sld [smem:[#allocation13_spill]] }
  0x1c   : > { %v3855_v8 = vld.sshfl [vmem:[%s824_s10] sm:$0x33 pattern:$0x76325410]  ;;  %1014 = vrot.lane.b32.xlu0 %v941_v9, %s4799_s29  ;;  %v989_v10 = vsel %vm988_vm8, 65537, %v3675_v3  ;;  %v1091_v14 = vrot.slane %v1087_v11, 6 }
  0x1d   : > { %933 = vst [vmem:[#allocation2 + $0x4] sm:$0x33] %v3855_v8  ;;  %990 = vrot.lane.b32.xlu1 %v989_v10, %s4794_s1  ;;  %v1065_v44 = vld [vmem:[#allocation2 + $0xc] sm:$0x3]  ;;  %vm4783_vm8 = vcmask 916480   ;;  %s4830_s0 = sld [smem:[#allocation14_spill]] }
  0x1e   : > { %v1041_v55 = vld [vmem:[#allocation2 + $0xc] sm:$0x3]  ;;  %s4858_s10 = sld [smem:[#allocation15_spill]] }
  0x1f   : > { %v2899_v31 = vld [vmem:[#allocation2 + $0xc] sm:$0xf] }
  0x20   : > { %942 = vrot.lane.b32.xlu0 %v941_v9, %s4790_s6 }
  0x21   : > { %1042 = vrot.lane.b32.xlu1 %v989_v10, %s4796_s11 }
  0x24   : > { %v965_v12 = vld [vmem:[#allocation2] sm:$0x33]  ;;  %1066 = vrot.lane.b32.xlu0 %v941_v9, %s3680_s2  ;;  %v966_v16 = vld [vmem:[#allocation2 + $0x8] sm:$0x3] }
  0x25   : > { %v969_v13 = vrot.slane %v965_v12, 6  ;;  %1105 = vrot.lane.b32.xlu1 %v989_v10, %s3681_s3  ;;  %v1086_v15 = vld [vmem:[#allocation2 + $0x4] sm:$0x33]  ;;  %v970_v18 = vrot.slane %v966_v16, 6 }
  0x26   : > { %v1090_v17 = vrot.slane %v1086_v15, 6  ;;  %v935_v24 = vld [vmem:[#allocation2 + $0x8] sm:$0x3]  ;;  %v934_v27 = vld [vmem:[#allocation2] sm:$0x33] }
  0x27   : > { %v983_v32 = vld [vmem:[#allocation2 + $0x8] sm:$0x3]  ;;  %v982_v39 = vld [vmem:[#allocation2] sm:$0x33] }
  0x28   : > { %971 = vrot.lane.b32.xlu0 %v969_v13, %s3682_s7  ;;  %v1064_v48 = vld [vmem:[#allocation2 + $0x4] sm:$0x33] }
  0x29   : > { %1094 = vrot.lane.b32.xlu1 %v1091_v14, %s4792_s4  ;;  %v1013_v49 = vld [vmem:[#allocation2 + $0x8] sm:$0x3]  ;;  %v1012_v52 = vld [vmem:[#allocation2] sm:$0x33] }
  0x2a   : > { %v1038_v0 = vld [vmem:[#allocation2 + $0x4] sm:$0x33] }
  0x2b   : > { %v1040_v4 = vld [vmem:[#allocation2 + $0x4] sm:$0x33]  ;;  %1039 = vst [vmem:[#allocation4 + $0x10] sm:$0x33] %v1038_v0 }
  0x2c   : > { %1092 = vrot.lane.b32.xlu0 %v1090_v17, %s4792_s4 }
  0x2d   : > { %973 = vrot.lane.b32.xlu1 %v970_v18, %s3682_s7  ;;  %v1104_v18 = vld [vmem:[#allocation2 + $0xc] sm:$0x3] }
  0x8e   : > { %v1015_v19 = vpop.permute.xlu0 %1014 }
  0x8f   : > { %v991_v20 = vpop.permute.xlu1 %990  ;;  %v1016_v26 = vrot.slane %v1015_v19, 4 }
  0x90   : > { %v992_v21 = vrot.slane %v991_v20, 4 }
  0x91   : > { %v3895_v40 = vsel %vm4785_vm13, %v1016_v26, %v1015_v19  ;;  %vm3904_vm4 = vcmp.ne.s16.totalorder %v1016_v26, 0 }
  0x92   : > { %v943_v22 = vpop.permute.xlu0 %942  ;;  %v3878_v30 = vsel %vm993_vm10, %v992_v21, %v991_v20  ;;  %vm3880_vm12 = vcmp.ne.s16.totalorder %v992_v21, 0  ;;  %vm4781_vm5 = vcmp.ne.s16.totalorder %v3895_v40, 0  ;;  %v1022_v57 = vsel %vm3904_vm4, %v1013_v49, 0  ;;  %v1103_v21 = vld [vmem:[#allocation2 + $0x4] sm:$0x33] }
  0x93   : > { %v944_v23 = vrot.slane %v943_v22, 4  ;;  %v1043_v25 = vpop.permute.xlu1 %1042  ;;  %vm4779_vm1 = vcmp.ne.s16.totalorder %v3878_v30, 0  ;;  %v998_v38 = vsel %vm3880_vm12, %v983_v32, 0  ;;  %v1021_v61 = vsel %vm4781_vm5, %v1012_v52, 0  ;;  %v1335_v32 = vld [vmem:[#allocation3 + $0xc] sm:$0x3] }
  0x94   : > { %v1044_v43 = vrot.slane %v1043_v25, 4  ;;  %v997_v47 = vsel %vm4779_vm1, %v982_v39, 0  ;;  %v1026_v6 = vrot.slane %v1022_v57, 6  ;;  %vm846_vm5 = vcmask 138240  }
  0x95   : > { %v3871_v28 = vsel %vm945_vm9, %v944_v23, %v943_v22  ;;  %vm3873_vm11 = vcmp.ne.s16.totalorder %v944_v23, 0  ;;  %v1025_v10 = vrot.slane %v1021_v61, 6  ;;  %v1301_v23 = vld [vmem:[#allocation3 + $0xc] sm:$0x3] }
  0x96   : > { %vm4780_vm14 = vcmp.ne.s16.totalorder %v3871_v28, 0  ;;  %v950_v33 = vsel %vm3873_vm11, %v935_v24, 0  ;;  %v1067_v34 = vpop.permute.xlu0 %1066  ;;  %v3917_v53 = vsel %vm4784_vm3, %v1044_v43, %v1043_v25  ;;  %vm3919_vm7 = vcmp.ne.s16.totalorder %v1044_v43, 0  ;;  %v926_v24 = vld [vmem:[%s4829_s12] sm:$0xff] }
  0x97   : > { %955 = vrot.lane.b32.xlu1 %v950_v33, %s3681_s3  ;;  %v1068_v35 = vrot.slane %v1067_v34, 4  ;;  %v949_v36 = vsel %vm4780_vm14, %v934_v27, 0  ;;  %v1106_v37 = vpop.permute.xlu1 %1105  ;;  %vm4788_vm1 = vcmp.ne.s16.totalorder %v3917_v53, 0  ;;  %v1049_v1 = vsel %vm3919_vm7, %v1041_v55, 0  ;;  %v1319_v27 = vld [vmem:[#allocation3 + $0xc] sm:$0x3] }
  0x98   : > { %953 = vrot.lane.b32.xlu0 %v949_v36, %s3681_s3  ;;  %vm4787_vm14 = vcmask 130048   ;;  %v1107_v7 = vrot.slane %v1106_v37, 4  ;;  %v1053_v13 = vrot.slane %v1049_v1, 6  ;;  %v1048_v14 = vsel %vm4788_vm1, %v1040_v4, 0 }
  0x99   : > { %v3898_v41 = vsel %vm1008_vm15, %v1068_v35, %v1067_v34  ;;  %vm3900_vm2 = vcmp.ne.s16.totalorder %v1068_v35, 0  ;;  %v1052_v19 = vrot.slane %v1048_v14, 6  ;;  %v1303_v25 = vsel %vm3919_vm7, %v1301_v23, 0  ;;  %v1351_v35 = vld [vmem:[#allocation3 + $0xc] sm:$0x3] }
  0x9a   : > { %v972_v45 = vpop.permute.xlu0 %971  ;;  %vm4782_vm6 = vcmp.ne.s16.totalorder %v3898_v41, 0  ;;  %v1073_v51 = vsel %vm3900_vm2, %v1065_v44, 0  ;;  %v3943_v16 = vsel %vm846_vm5, %v1107_v7, %v1106_v37  ;;  %v1307_v26 = vrot.slane %v1303_v25, 6  ;;  %v1549_v37 = vld [vmem:[#allocation3 + $0xc] sm:$0xc] }
  0x9b   : > { %1003 = vrot.lane.b32.xlu1 %v998_v38, %s3680_s2  ;;  %v1095_v50 = vpop.permute.xlu1 %1094  ;;  %v975_v58 = vrot.slane %v972_v45, 4  ;;  %v1072_v60 = vsel %vm4782_vm6, %v1064_v48, 0  ;;  %vm3945_vm6 = vcmp.ne.s16.totalorder %v1107_v7, 0  ;;  %v1321_v33 = vsel %vm3900_vm2, %v1319_v27, 0  ;;  %v1565_v38 = vld [vmem:[#allocation3 + $0xc] sm:$0xc] }
  0x9c   : > { %1001 = vrot.lane.b32.xlu0 %v997_v47, %s3680_s2  ;;  %v1097_v56 = vrot.slane %v1095_v50, 4  ;;  %v1112_v20 = vsel %vm3945_vm6, %v1104_v18, 0  ;;  %v1339_v34 = vrot.slane %v1335_v32, 6  ;;  %v1353_v36 = vsel %vm3945_vm6, %v1351_v35, 0 }
  0x9d   : > { %v1551_v39 = vsel %vm3919_vm7, %v1549_v37, 0  ;;  %v1567_v43 = vsel %vm3900_vm2, %v1565_v38, 0  ;;  %v1130_v38 = vld [vmem:[%s4831_s30] sm:$0xf]  ;;  %s4857_s30 = sld [smem:[#allocation12_spill]] }
  0x9e   : > { %v1093_v59 = vpop.permute.xlu0 %1092  ;;  %v3425_v44 = vrot.slane %v1567_v43, 10 }
  0x9f   : > { %1078 = vrot.lane.b32.xlu1 %v1073_v51, %s4794_s1  ;;  %v974_v62 = vpop.permute.xlu1 %973  ;;  %v1096_v63 = vrot.slane %v1093_v59, 4 }
  0xa0   : > { %1076 = vrot.lane.b32.xlu0 %v1072_v60, %s4794_s1  ;;  %v976_v5 = vrot.slane %v974_v62, 4 }
  0xa1   : > { %v1098_v9 = vsel %vm838_vm0, %v1096_v63, %v1097_v56 }
  0xa2   : > { %v977_v11 = vsel %vm838_vm0, %v975_v58, %v976_v5  ;;  %v1100_v12 = vsel %vm4783_vm8, %v1093_v59, %v1098_v9  ;;  %vm1109_vm8 = vcmp.ne.s16.totalorder %v3943_v16, 0 }
  0xa3   : > { %1029 = vrot.lane.b32.xlu1 %v1026_v6, %s4796_s11  ;;  %v979_v15 = vsel %vm4787_vm14, %v972_v45, %v977_v11  ;;  %1102 = vst [vmem:[#allocation4 + $0x18] sm:$0xcc] %v1100_v12  ;;  %v1111_v22 = vsel %vm1109_vm8, %v1103_v21, 0  ;;  %v929_v45 = vld [vmem:[%s4830_s0] sm:$0xff]  ;;  %vm4833_vm14 = vcmp.ne.s16.totalorder %v3878_v30, 0 }
  0xa4   : > { %1027 = vrot.lane.b32.xlu0 %v1025_v10, %s4796_s11  ;;  %981 = vst [vmem:[#allocation4] sm:$0xcc] %v979_v15 }
  0xa7   : > { %1056 = vrot.lane.b32.xlu1 %v1053_v13, %s4799_s29 }
  0xa8   : > { %1054 = vrot.lane.b32.xlu0 %v1052_v19, %s4799_s29 }
  0xab   : > { %1117 = vrot.lane.b32.xlu1 %v1112_v20, %s4790_s6 }
  0xac   : > { %1115 = vrot.lane.b32.xlu0 %v1111_v22, %s4790_s6 }
  0xaf   : > { %1216 = vperm.xlu1 %3607, %v929_v45  }
  0xb0   : > { %1209 = vperm.xlu0 %3606, %v926_v24  }
  0xb4   : > { %1310 = vrot.lane.b32.xlu0 %v1307_v26, %s4799_s29 }
  0xb8   : > { %1326 = vrot.lane.b32.xlu0 %v1321_v33, %s4794_s1 }
  0xbc   : > { %1342 = vrot.lane.b32.xlu0 %v1339_v34, %s4792_s4 }
  0xc0   : > { %1358 = vrot.lane.b32.xlu0 %v1353_v36, %s4790_s6 }
  0xc4   : > { %1556 = vrot.lane.b32.xlu0 %v1551_v39, %s4799_s29 }
  0xc8   : > { %1576 = vrot.lane.b32.xlu0 %v3425_v44, %s4794_s1 }
 0x109   : > { %v956_v47 = vpop.permute.xlu1 %955 }
 0x10a   : > { %v958_v48 = vrot.slane %v956_v47, 4  ;;  %v954_v49 = vpop.permute.xlu0 %953 }
 0x10b   : > { %v957_v50 = vrot.slane %v954_v49, 4 }
 0x10d   : > { %v960_v51 = vsel %vm838_vm0, %v957_v50, %v958_v48  ;;  %v1004_v52 = vpop.permute.xlu1 %1003 }
 0x10e   : > { %v962_v55 = vsel %vm846_vm5, %v954_v49, %v960_v51  ;;  %v1006_v56 = vrot.slane %v1004_v52, 4  ;;  %v1002_v57 = vpop.permute.xlu0 %1001 }
 0x10f   : > { %964 = vst [vmem:[#allocation4] sm:$0x33] %v962_v55  ;;  %v1005_v58 = vrot.slane %v1002_v57, 4 }
 0x111   : > { %v1007_v59 = vsel %vm838_vm0, %v1005_v58, %v1006_v56  ;;  %v1079_v60 = vpop.permute.xlu1 %1078 }
 0x112   : > { %v1009_v61 = vsel %vm1008_vm15, %v1002_v57, %v1007_v59  ;;  %v1081_v62 = vrot.slane %v1079_v60, 4  ;;  %v1077_v63 = vpop.permute.xlu0 %1076 }
 0x113   : > { %1011 = vst [vmem:[#allocation4 + $0x8] sm:$0x33] %v1009_v61  ;;  %v1080_v0 = vrot.slane %v1077_v63, 4 }
 0x115   : > { %v1082_v1 = vsel %vm838_vm0, %v1080_v0, %v1081_v62  ;;  %v1030_v4 = vpop.permute.xlu1 %1029 }
 0x116   : > { %v1083_v5 = vsel %vm993_vm10, %v1077_v63, %v1082_v1  ;;  %v1032_v6 = vrot.slane %v1030_v4, 4  ;;  %v1028_v7 = vpop.permute.xlu0 %1027 }
 0x117   : > { %1085 = vst [vmem:[#allocation4 + $0x18] sm:$0x33] %v1083_v5  ;;  %v1031_v9 = vrot.slane %v1028_v7, 4 }
 0x119   : > { %v1033_v10 = vsel %vm838_vm0, %v1031_v9, %v1032_v6  ;;  %v1057_v11 = vpop.permute.xlu1 %1056 }
 0x11a   : > { %v1035_v12 = vsel %vm4784_vm3, %v1028_v7, %v1033_v10  ;;  %v1059_v13 = vrot.slane %v1057_v11, 4  ;;  %v1055_v14 = vpop.permute.xlu0 %1054  ;;  %vm878_vm3 = vcmask 1041408  }
 0x11b   : > { %1037 = vst [vmem:[#allocation4 + $0x8] sm:$0xcc] %v1035_v12  ;;  %v1058_v15 = vrot.slane %v1055_v14, 4 }
 0x11d   : > { %v1060_v18 = vsel %vm838_vm0, %v1058_v15, %v1059_v13  ;;  %v1118_v19 = vpop.permute.xlu1 %1117 }
 0x11e   : > { %v1061_v20 = vsel %vm4785_vm13, %v1055_v14, %v1060_v18  ;;  %v1120_v21 = vrot.slane %v1118_v19, 4  ;;  %v1116_v22 = vpop.permute.xlu0 %1115  ;;  %vm4786_vm13 = vcmask 293888  }
 0x11f   : > { %1063 = vst [vmem:[#allocation4 + $0x10] sm:$0xcc] %v1061_v20  ;;  %v1119_v23 = vrot.slane %v1116_v22, 4 }
 0x121   : > { %v1121_v24 = vsel %vm838_vm0, %v1119_v23, %v1120_v21 }
 0x122   : > { %v1122_v25 = vsel %vm945_vm9, %v1116_v22, %v1121_v24  ;;  %v3618_v26 = vld [vmem:[#allocation4 + $0x4] ss:$8 sps:$4 sm:$0xff]   ;;  %v3620_v27 = vld [vmem:[#allocation4] ss:$8 sps:$4 sm:$0xff]  }
 0x123   : > { %1124 = vst [vmem:[#allocation4 + $0x20] sm:$0x33] %v1122_v25  ;;  %1166 = vmatprep.subr.bf16.mxu0 %v3618_v26 }
 0x124   : > { %1167 = vmatpush1.bf16.msra.mxu0 %v3620_v27 }
 0x126   : > { %v3621_v32 = vld [vmem:[#allocation4 + $0x14] ss:$8 sps:$4 sm:$0xff]   ;;  %v3623_v33 = vld [vmem:[#allocation4 + $0x10] ss:$8 sps:$4 sm:$0xff]  }
 0x127   : > { %1168 = vmatprep.subr.bf16.mxu0 %v3621_v32 }
 0x128   : > { %1169 = vmatpush1.bf16.msra.mxu0 %v3623_v33 }
 0x12a   : > { %v1129_v34 = vld [vmem:[#allocation4 + $0x20] sm:$0x33] }
 0x12b   : > { %v3406_v35 = vcombine.high %v1129_v34, %v1129_v34  ;;  %v3405_v36 = vcombine.low %v1129_v34, %v1129_v34 }
 0x12d   : > { %3407 = vmatprep.subr.msk.bf16.mxu0 %vm878_vm3, %v3406_v35  ;;  %v1161_v37 = vsel %vm878_vm3, %v3405_v36, 0 }
 0x12e   : > { %1171 = vmatpush1.bf16.msra.mxu0 %v1161_v37  ;;  %v1217_v44 = vpop.permute.xlu1 %1216  ;;  %v1599_v37 = vld [vmem:[#allocation3 + $0xc] sm:$0xc] }
 0x12f   : > { %v1210_v39 = vpop.permute.xlu0 %1209 }
 0x131   : > { %3408 = vmatmul.mubr.msk.bf16.vlgmr.msra.gmra.mrb[0].mxu0 %vm4786_vm13, %v1130_v38  ;;  %vm4832_vm13 = vcmp.ne.s16.totalorder %v3871_v28, 0  ;;  %v1585_v38 = vld [vmem:[#allocation3 + $0xc] sm:$0xc] }
 0x132   : > { %1438 = vmatprep.mubr.bf16.mxu0 %v3675_v3 }
 0x204   : > { %v1200_v43 = vpop.f32.mrb[0].mxu0 }
 0x205   : > { %v1212_v45 = vmul.f32 %v1210_v39, %v1200_v43  ;;  %v1202_v47 = vpop.f32.mrb[1].mxu0  ;;  %v1601_v43 = vsel %vm3945_vm6, %v1599_v37, 0 }
 0x206   : > { %v1213_v48 = vmul.f32 %v1210_v39, %v1202_v47  ;;  %v1204_v49 = vpop.f32.mrb[2].mxu0  ;;  %v3427_v47 = vrot.slane %v1601_v43, 10 }
 0x207   : > { %v1219_v50 = vadd.f32 %v1217_v44, %v1212_v45  ;;  %v1205_v51 = vpop.f32.mrb[3].mxu0 }
 0x208   : > { %v1220_v52 = vadd.f32 %v1217_v44, %v1213_v48  ;;  %v930_v51 = vld [vmem:[%s4830_s0 + $0x8] sm:$0xff] }
 0x209   : > { %v1221_v55 = vmax.f32 %v1219_v50, 0.0 }
 0x20a   : > { %v1222_v56 = vmax.f32 %v1220_v52, 0.0 }
 0x20c   : > { %v3514_v57 = vpack.c.bf16 %v1222_v56, %v1221_v55  ;;  %v1785_v56 = vld [vmem:[#allocation2 + $0xc] sm:$0xf] }
 0x20e   : > { %1231 = vst [vmem:[#allocation3 + $0x4] sm:$0xff] %v3514_v57 }
 0x215   : > { %v1493_v58 = vld [vmem:[#allocation3 + $0x8] sm:$0xc]  ;;  %v1492_v59 = vld [vmem:[#allocation3] sm:$0xcc]  ;;  %v1233_v60 = vld [vmem:[#allocation3 + $0x8] sm:$0x3] }
 0x216   : > { %1498 = vrot.lane.b32.xlu0 %v1493_v58, %s3682_s7  ;;  %1496 = vrot.lane.b32.xlu1 %v1492_v59, %s3682_s7  ;;  %v1584_v61 = vld [vmem:[#allocation3 + $0x4] sm:$0xcc]  ;;  %v1235_v62 = vsel %vm3873_vm11, %v1233_v60, 0  ;;  %v1265_v63 = vld [vmem:[#allocation3 + $0x8] sm:$0x3]  ;;  %v1787_v59 = vsel %vm3919_vm7, %v1785_v56, 0 }
 0x217   : > { %v1232_v0 = vld [vmem:[#allocation3] sm:$0x33]  ;;  %v1267_v1 = vsel %vm3880_vm12, %v1265_v63, 0  ;;  %v1527_v5 = vld [vmem:[#allocation3 + $0x8] sm:$0xc] }
 0x218   : > { %v1234_v4 = vsel %vm4832_vm13, %v1232_v0, 0  ;;  %v1264_v6 = vld [vmem:[#allocation3] sm:$0x33]  ;;  %v1529_v7 = vsel %vm3904_vm4, %v1527_v5, 0  ;;  %v1249_v10 = vld [vmem:[#allocation3 + $0x8] sm:$0x3]  ;;  %v873_v5 = vcombine.high %v3855_v8, %v3855_v8 }
 0x219   : > { %v1266_v9 = vsel %vm4833_vm14, %v1264_v6, 0  ;;  %v1318_v11 = vld [vmem:[#allocation3 + $0x4] sm:$0x33]  ;;  %v1253_v14 = vrot.slane %v1249_v10, 6  ;;  %vm4834_vm13 = vcmp.ne.s16.totalorder %v3898_v41, 0  ;;  %vm4835_vm14 = vcmp.ne.s16.totalorder %v3895_v40, 0 }
 0x21a   : > { %1588 = vrot.lane.b32.xlu1 %v1584_v61, %s4792_s4  ;;  %1240 = vrot.lane.b32.xlu0 %v1235_v62, %s3681_s3  ;;  %v1281_v12 = vld [vmem:[#allocation3 + $0x8] sm:$0x3]  ;;  %v1320_v15 = vsel %vm4834_vm13, %v1318_v11, 0  ;;  %v1473_v20 = vld [vmem:[#allocation3 + $0x8] sm:$0xc]  ;;  %vm4836_vm13 = vmmov %vm4835_vm14  ;;  %v880_v6 = vsel %vm878_vm3, %v3855_v8, 0 }
 0x21b   : > { %v1298_v13 = vld [vmem:[#allocation3 + $0x4] sm:$0x33]  ;;  %v1283_v18 = vsel %vm3904_vm4, %v1281_v12, 0  ;;  %v1475_v23 = vsel %vm3873_vm11, %v1473_v20, 0  ;;  %v1526_v24 = vld [vmem:[#allocation3] sm:$0xcc]  ;;  %3399 = vmatprep.subr.msk.bf16.mxu1 %vm878_vm3, %v873_v5 }
 0x21c   : > { %1299 = vst [vmem:[#allocation4 + $0x10] sm:$0x33] %v1298_v13  ;;  %v1350_v19 = vld [vmem:[#allocation3 + $0x4] sm:$0x33]  ;;  %v1287_v21 = vrot.slane %v1283_v18, 6  ;;  %v3420_v26 = vrot.slane %v1475_v23, 10  ;;  %886 = vmatpush1.bf16.msra.mxu1 %v880_v6  ;;  %v4082_v13 = vpop.permute.xlu0 %1310 }
 0x21d   : > { %v1352_v22 = vsel %vm1109_vm8, %v1350_v19, 0  ;;  %v1507_v25 = vld [vmem:[#allocation3 + $0x8] sm:$0xc]  ;;  %v1528_v27 = vsel %vm4835_vm14, %v1526_v24, 0  ;;  %v1248_v36 = vld [vmem:[#allocation3] sm:$0x33] }
 0x21e   : > { %1272 = vrot.lane.b32.xlu0 %v1267_v1, %s3680_s2  ;;  %1238 = vrot.lane.b32.xlu1 %v1234_v4, %s3681_s3  ;;  %v1509_v32 = vsel %vm3880_vm12, %v1507_v25, 0  ;;  %v1548_v33 = vld [vmem:[#allocation3 + $0x4] sm:$0xcc]  ;;  %v1252_v39 = vrot.slane %v1248_v36, 6  ;;  %v1334_v44 = vld [vmem:[#allocation3 + $0x4] sm:$0x33] }
 0x21f   : > { %v3422_v34 = vrot.slane %v1509_v32, 10  ;;  %v1550_v35 = vsel %vm4788_vm1, %v1548_v33, 0  ;;  %v1280_v45 = vld [vmem:[#allocation3] sm:$0x33]  ;;  %v1338_v48 = vrot.slane %v1334_v44, 6  ;;  %vm4837_vm14 = vcmp.ne.s16.totalorder %v3871_v28, 0 }
 0x220   : > { %v1282_v49 = vsel %vm4836_vm13, %v1280_v45, 0  ;;  %v1300_v50 = vld [vmem:[#allocation3 + $0x4] sm:$0x33]  ;;  %v1472_v57 = vld [vmem:[#allocation3] sm:$0xcc]  ;;  %vm4838_vm13 = vcmp.ne.s16.totalorder %v3878_v30, 0 }
 0x221   : > { %v1286_v52 = vrot.slane %v1282_v49, 6  ;;  %v1302_v55 = vsel %vm4788_vm1, %v1300_v50, 0  ;;  %v1474_v60 = vsel %vm4837_vm14, %v1472_v57, 0  ;;  %v1506_v61 = vld [vmem:[#allocation3] sm:$0xcc]  ;;  %vm4839_vm1 = vcmp.ne.s16.totalorder %v3898_v41, 0 }
 0x222   : > { %1534 = vrot.lane.b32.xlu0 %v1529_v7, %s4796_s11  ;;  %1270 = vrot.lane.b32.xlu1 %v1266_v9, %s3680_s2  ;;  %v1306_v58 = vrot.slane %v1302_v55, 6  ;;  %v3419_v62 = vrot.slane %v1474_v60, 10  ;;  %v1508_v63 = vsel %vm4838_vm13, %v1506_v61, 0  ;;  %v1564_v0 = vld [vmem:[#allocation3 + $0x4] sm:$0xcc]  ;;  %vm4789_vm14 = vcmask 31744  }
 0x223   : > { %v3421_v1 = vrot.slane %v1508_v63, 10  ;;  %v1566_v4 = vsel %vm4839_vm1, %v1564_v0, 0  ;;  %v1598_v7 = vld [vmem:[#allocation3 + $0x4] sm:$0xcc]  ;;  %v858_v10 = vld [vmem:[%s4760_s13] sm:$0xf] }
 0x224   : > { %v3424_v9 = vrot.slane %v1566_v4, 10  ;;  %v1600_v11 = vsel %vm1109_vm8, %v1598_v7, 0  ;;  %3400 = vmatmul.mubr.msk.bf16.vlgmr.msra.gmra.mrb[0].mxu1 %vm4789_vm14, %v858_v10  ;;  %v927_v12 = vld [vmem:[%s4829_s12 + $0x8] sm:$0xff]  ;;  %vm4840_vm1 = vcmask 130048   ;;  %vm4841_vm13 = vcmask 916480  }
 0x225   : > { %v3426_v8 = vrot.slane %v1600_v11, 10  ;;  %1691 = vmatprep.mubr.bf16.mxu1 %v3675_v3  ;;  %vm4842_vm14 = vcmask 7168  }
 0x226   : > { %1256 = vrot.lane.b32.xlu0 %v1253_v14, %s3682_s7  ;;  %1324 = vrot.lane.b32.xlu1 %v1320_v15, %s4794_s1  ;;  %v1327_v14 = vpop.permute.xlu0 %1326 }
 0x22a   : > { %1290 = vrot.lane.b32.xlu0 %v1287_v21, %s4796_s11  ;;  %1356 = vrot.lane.b32.xlu1 %v1352_v22, %s4790_s6  ;;  %v1343_v15 = vpop.permute.xlu0 %1342 }
 0x22b   : > { %v1345_v7 = vrot.slane %v1343_v15, 4 }
 0x22e   : > { %1484 = vrot.lane.b32.xlu0 %v3420_v26, %s3681_s3  ;;  %1532 = vrot.lane.b32.xlu1 %v1528_v27, %s4796_s11  ;;  %v1359_v18 = vpop.permute.xlu0 %1358 }
 0x22f   : > { %v1361_v55 = vrot.slane %v1359_v18, 4 }
 0x232   : > { %1518 = vrot.lane.b32.xlu0 %v3422_v34, %s3680_s2  ;;  %1554 = vrot.lane.b32.xlu1 %v1550_v35, %s4799_s29  ;;  %v4084_v19 = vpop.permute.xlu0 %1556 }
 0x236   : > { %1590 = vrot.lane.b32.xlu0 %v1585_v38, %s4792_s4  ;;  %1254 = vrot.lane.b32.xlu1 %v1252_v39, %s3682_s7  ;;  %v4086_v20 = vpop.permute.xlu0 %1576 }
 0x23a   : > { %1610 = vrot.lane.b32.xlu0 %v3427_v47, %s4790_s6  ;;  %1340 = vrot.lane.b32.xlu1 %v1338_v48, %s4792_s4  ;;  %v1329_v47 = vrot.slane %v1327_v14, 4 }
 0x23e   : > { %1456 = vperm.xlu0 %3606, %v930_v51   ;;  %1288 = vrot.lane.b32.xlu1 %v1286_v52, %s4796_s11 }
 0x242   : > { %1792 = vrot.lane.b32.xlu0 %v1787_v59, %s4799_s29  ;;  %1308 = vrot.lane.b32.xlu1 %v1306_v58, %s4799_s29 }
 0x246   : > { %1482 = vrot.lane.b32.xlu1 %v3419_v62, %s3681_s3 }
 0x24a   : > { %1516 = vrot.lane.b32.xlu1 %v3421_v1, %s3680_s2 }
 0x24e   : > { %1574 = vrot.lane.b32.xlu1 %v3424_v9, %s4794_s1 }
 0x252   : > { %1608 = vrot.lane.b32.xlu1 %v3426_v8, %s4790_s6 }
 0x256   : > { %1449 = vperm.xlu1 %3607, %v927_v12  }
 0x288   : > { %v1497_v21 = vpop.permute.xlu1 %1496  ;;  %v1499_v22 = vpop.permute.xlu0 %1498 }
 0x289   : > { %v1500_v9 = vrot.slane %v1497_v21, 4  ;;  %v1501_v10 = vrot.slane %v1499_v22, 4 }
 0x28c   : > { %v4088_v23 = vpop.permute.xlu1 %1588  ;;  %v1241_v24 = vpop.permute.xlu0 %1240 }
 0x28d   : > { %v1243_v27 = vrot.slane %v1241_v24, 4  ;;  %v1502_v24 = vsel %vm838_vm0, %v1500_v9, %v1501_v10 }
 0x28e   : > { %v1503_v22 = vsel %vm4840_vm1, %v1497_v21, %v1502_v24 }
 0x290   : > { %v1239_v25 = vpop.permute.xlu1 %1238  ;;  %v1273_v26 = vpop.permute.xlu0 %1272 }
 0x291   : > { %v1242_v32 = vrot.slane %v1239_v25, 4  ;;  %v1275_v37 = vrot.slane %v1273_v26, 4 }
 0x293   : > { %v1244_v33 = vsel %vm838_vm0, %v1242_v32, %v1243_v27  ;;  %v1592_v32 = vrot.slane %v4088_v23, 4 }
 0x294   : > { %v1245_v34 = vsel %vm846_vm5, %v1239_v25, %v1244_v33  ;;  %v1271_v35 = vpop.permute.xlu1 %1270  ;;  %v4092_v36 = vpop.permute.xlu0 %1534 }
 0x295   : > { %1247 = vst [vmem:[#allocation4] sm:$0x33] %v1245_v34  ;;  %v1274_v38 = vrot.slane %v1271_v35, 4 }
 0x297   : > { %v1276_v39 = vsel %vm838_vm0, %v1274_v38, %v1275_v37  ;;  %v1313_v37 = vrot.slane %v4082_v13, 4 }
 0x298   : > { %v1277_v43 = vsel %vm1008_vm15, %v1271_v35, %v1276_v39  ;;  %v1325_v44 = vpop.permute.xlu1 %1324  ;;  %v1257_v45 = vpop.permute.xlu0 %1256 }
 0x299   : > { %1279 = vst [vmem:[#allocation4 + $0x8] sm:$0x33] %v1277_v43  ;;  %v1328_v48 = vrot.slane %v1325_v44, 4  ;;  %v1259_v0 = vrot.slane %v1257_v45, 4 }
 0x29b   : > { %v1330_v49 = vsel %vm838_vm0, %v1328_v48, %v1329_v47 }
 0x29c   : > { %v1331_v50 = vsel %vm993_vm10, %v1325_v44, %v1330_v49  ;;  %v1357_v51 = vpop.permute.xlu1 %1356  ;;  %v1291_v52 = vpop.permute.xlu0 %1290  ;;  %v1537_v44 = vrot.slane %v4092_v36, 4 }
 0x29d   : > { %1333 = vst [vmem:[#allocation4 + $0x18] sm:$0x33] %v1331_v50  ;;  %v1360_v56 = vrot.slane %v1357_v51, 4  ;;  %v1293_v25 = vrot.slane %v1291_v52, 4 }
 0x29f   : > { %v1362_v57 = vsel %vm838_vm0, %v1360_v56, %v1361_v55  ;;  %v1559_v55 = vrot.slane %v4084_v19, 4 }
 0x2a0   : > { %v1363_v58 = vsel %vm945_vm9, %v1357_v51, %v1362_v57  ;;  %v1533_v59 = vpop.permute.xlu1 %1532  ;;  %v1485_v60 = vpop.permute.xlu0 %1484 }
 0x2a1   : > { %1365 = vst [vmem:[#allocation4 + $0x20] sm:$0x33] %v1363_v58  ;;  %v1536_v38 = vrot.slane %v1533_v59, 4  ;;  %v1487_v13 = vrot.slane %v1485_v60, 4  ;;  %v1542_v58 = vld [vmem:[#allocation3 + $0x4] sm:$0xcc] }
 0x2a3   : > { %v1538_v50 = vsel %vm838_vm0, %v1536_v38, %v1537_v44 }
 0x2a4   : > { %v4100_v61 = vpop.permute.xlu1 %1554  ;;  %v1519_v62 = vpop.permute.xlu0 %1518  ;;  %v1539_v56 = vsel %vm4842_vm14, %v1533_v59, %v1538_v50 }
 0x2a5   : > { %v1558_v51 = vrot.slane %v4100_v61, 4  ;;  %v1521_v57 = vrot.slane %v1519_v62, 4 }
 0x2a8   : > { %v1255_v63 = vpop.permute.xlu1 %1254  ;;  %v1591_v8 = vpop.permute.xlu0 %1590  ;;  %v1370_v10 = vld [vmem:[#allocation4 + $0x20] sm:$0x33] }
 0x2a9   : > { %v1258_v1 = vrot.slane %v1255_v63, 4  ;;  %v1593_v26 = vrot.slane %v1591_v8, 4 }
 0x2ab   : > { %v1260_v4 = vsel %vm838_vm0, %v1258_v1, %v1259_v0  ;;  %v1594_v39 = vsel %vm838_vm0, %v1592_v32, %v1593_v26  ;;  %v1560_v1 = vsel %vm838_vm0, %v1558_v51, %v1559_v55 }
 0x2ac   : > { %v1261_v5 = vsel %vm4840_vm1, %v1255_v63, %v1260_v4  ;;  %v1341_v6 = vpop.permute.xlu1 %1340  ;;  %v1595_v47 = vsel %vm4841_vm13, %v4088_v23, %v1594_v39  ;;  %vm4843_vm1 = vcmask 1039360  }
 0x2ad   : > { %1263 = vst [vmem:[#allocation4] sm:$0xcc] %v1261_v5  ;;  %v1344_v11 = vrot.slane %v1341_v6, 4 }
 0x2af   : > { %v1346_v12 = vsel %vm838_vm0, %v1344_v11, %v1345_v7  ;;  %v1579_v11 = vrot.slane %v4086_v20, 4 }
 0x2b0   : > { %v1347_v14 = vsel %vm4841_vm13, %v1341_v6, %v1346_v12  ;;  %v1289_v18 = vpop.permute.xlu1 %1288  ;;  %v3423_v6 = vrot.slane %v1542_v58, 10  ;;  %vm4844_vm13 = vmmov %vm4843_vm1 }
 0x2b1   : > { %1349 = vst [vmem:[#allocation4 + $0x18] sm:$0xcc] %v1347_v14  ;;  %v1292_v27 = vrot.slane %v1289_v18, 4  ;;  %v1561_v59 = vsel %vm4844_vm13, %v4100_v61, %v1560_v1  ;;  %v3414_v61 = vcombine.low %v1370_v10, %v1370_v10  ;;  %vm4848_vm13 = vcmp.ne.s16.totalorder %v3871_v28, 0 }
 0x2b3   : > { %v1294_v15 = vsel %vm838_vm0, %v1292_v27, %v1293_v25  ;;  %v3415_v25 = vcombine.high %v1370_v10, %v1370_v10 }
 0x2b4   : > { %v1366_v33 = vld [vmem:[#allocation4] sm:$0xff]  ;;  %v1295_v34 = vsel %vm4842_vm14, %v1289_v18, %v1294_v15  ;;  %v1309_v35 = vpop.permute.xlu1 %1308  ;;  %v1611_v18 = vpop.permute.xlu0 %1610 }
 0x2b5   : > { %1505 = vst [vmem:[#allocation4] sm:$0xcc] %v1503_v22  ;;  %1297 = vst [vmem:[#allocation4 + $0x8] sm:$0xcc] %v1295_v34  ;;  %v1312_v43 = vrot.slane %v1309_v35, 4  ;;  %v1613_v32 = vrot.slane %v1611_v18, 4 }
 0x2b6   : > { %v1401_v22 = vsel %vm878_vm3, %v3414_v61, 0 }
 0x2b7   : > { %v1314_v45 = vsel %vm838_vm0, %v1312_v43, %v1313_v37 }
 0x2b8   : > { %v1369_v21 = vld [vmem:[#allocation4 + $0x18] sm:$0xff]  ;;  %v1315_v48 = vsel %vm4843_vm1, %v1309_v35, %v1314_v45  ;;  %v1483_v49 = vpop.permute.xlu1 %1482  ;;  %vm4846_vm1 = vcmask 293888  }
 0x2b9   : > { %1597 = vst [vmem:[#allocation4 + $0x18] sm:$0xcc] %v1595_v47  ;;  %1317 = vst [vmem:[#allocation4 + $0x10] sm:$0xcc] %v1315_v48  ;;  %v1486_v52 = vrot.slane %v1483_v49, 4 }
 0x2ba   : > { %vm4847_vm14 = vmmov %vm4846_vm1 }
 0x2bb   : > { %v1488_v36 = vsel %vm838_vm0, %v1486_v52, %v1487_v13 }
 0x2bc   : > { %v1367_v23 = vld [vmem:[#allocation4 + $0x8] sm:$0xff]  ;;  %v1489_v63 = vsel %vm846_vm5, %v1483_v49, %v1488_v36  ;;  %v1517_v0 = vpop.permute.xlu1 %1516 }
 0x2bd   : > { %1541 = vst [vmem:[#allocation4 + $0x8] sm:$0xcc] %v1539_v56  ;;  %1491 = vst [vmem:[#allocation4] sm:$0x33] %v1489_v63  ;;  %v1520_v60 = vrot.slane %v1517_v0, 4  ;;  %v3411_v4 = vcombine.high %v1366_v33, %v1367_v23  ;;  %v3410_v5 = vcombine.low %v1366_v33, %v1367_v23  ;;  %v1457_v56 = vpop.permute.xlu0 %1456 }
 0x2be   : > { %v1371_v33 = vld [vmem:[%s4845_s8] sm:$0x3] }
 0x2bf   : > { %v1522_v19 = vsel %vm838_vm0, %v1520_v60, %v1521_v57  ;;  %1406 = vmatprep.subr.bf16.mxu0 %v3411_v4 }
 0x2c0   : > { %v1368_v62 = vld [vmem:[#allocation4 + $0x10] sm:$0xff]  ;;  %v1523_v7 = vsel %vm1008_vm15, %v1517_v0, %v1522_v19  ;;  %v1575_v9 = vpop.permute.xlu1 %1574  ;;  %1407 = vmatpush1.bf16.msra.mxu0 %v3410_v5 }
 0x2c1   : > { %1547 = vst [vmem:[#allocation4 + $0x10] sm:$0x33] %v3423_v6  ;;  %1563 = vst [vmem:[#allocation4 + $0x10] sm:$0xcc] %v1561_v59  ;;  %v1578_v8 = vrot.slane %v1575_v9, 4  ;;  %v3413_v12 = vcombine.high %v1368_v62, %v1369_v21  ;;  %v3412_v14 = vcombine.low %v1368_v62, %v1369_v21  ;;  %v1704_v59 = vrot.slane %v1457_v56, 4 }
 0x2c2   : > { %1525 = vst [vmem:[#allocation4 + $0x8] sm:$0x33] %v1523_v7  ;;  %v3428_v21 = vld [vmem:[%s4845_s8 + $0x2] sm:$0x3] }
 0x2c3   : > { %v1580_v24 = vsel %vm838_vm0, %v1578_v8, %v1579_v11  ;;  %1408 = vmatprep.subr.bf16.mxu0 %v3413_v12 }
 0x2c4   : > { %v1581_v26 = vsel %vm993_vm10, %v1575_v9, %v1580_v24  ;;  %v1609_v27 = vpop.permute.xlu1 %1608  ;;  %1409 = vmatpush1.bf16.msra.mxu0 %v3412_v14 }
 0x2c5   : > { %1583 = vst [vmem:[#allocation4 + $0x18] sm:$0x33] %v1581_v26  ;;  %v1612_v15 = vrot.slane %v1609_v27, 4  ;;  %3416 = vmatprep.subr.msk.bf16.mxu0 %vm878_vm3, %v3415_v25 }
 0x2c7   : > { %v1614_v20 = vsel %vm838_vm0, %v1612_v15, %v1613_v32 }
 0x2c8   : > { %v1615_v34 = vsel %vm945_vm9, %v1609_v27, %v1614_v20  ;;  %1411 = vmatpush1.bf16.msra.mxu0 %v1401_v22 }
 0x2c9   : > { %v3626_v35 = vld [vmem:[#allocation4 + $0x4] ss:$8 sps:$4 sm:$0xff]   ;;  %v3628_v37 = vld [vmem:[#allocation4] ss:$8 sps:$4 sm:$0xff]   ;;  %1617 = vst [vmem:[#allocation4 + $0x20] sm:$0x33] %v1615_v34 }
 0x2ca   : > { %1659 = vmatprep.subr.bf16.mxu1 %v3626_v35 }
 0x2cb   : > { %3417 = vmatmul.mubr.msk.bf16.vlgmr.msra.gmra.mrb[4].mxu0 %vm4846_vm1, %v1371_v33  ;;  %1660 = vmatpush1.bf16.msra.mxu1 %v3628_v37  ;;  %vm4849_vm1 = vcmp.ne.s16.totalorder %v3878_v30, 0  ;;  %v1801_v37 = vld [vmem:[#allocation2 + $0xc] sm:$0xf] }
 0x2cc   : > { %v3629_v38 = vld [vmem:[#allocation4 + $0x14] ss:$8 sps:$4 sm:$0xff]   ;;  %v3631_v39 = vld [vmem:[#allocation4 + $0x10] ss:$8 sps:$4 sm:$0xff]   ;;  %1943 = vmatprep.mubr.bf16.mxu0 %v3675_v3 }
 0x2cd   : > { %1661 = vmatprep.subr.bf16.mxu1 %v3629_v38  ;;  %v1803_v38 = vsel %vm3900_vm2, %v1801_v37, 0 }
 0x2cf   : > { %1662 = vmatpush1.bf16.msra.mxu1 %v3631_v39 }
 0x2d0   : > { %v1622_v43 = vld [vmem:[#allocation4 + $0x20] sm:$0x33] }
 0x2d1   : > { %v3434_v44 = vcombine.high %v1622_v43, %v1622_v43  ;;  %v3433_v45 = vcombine.low %v1622_v43, %v1622_v43  ;;  %v1817_v43 = vld [vmem:[#allocation2 + $0xc] sm:$0xf] }
 0x2d3   : > { %3435 = vmatprep.subr.msk.bf16.mxu1 %vm878_vm3, %v3434_v44  ;;  %v1654_v47 = vsel %vm878_vm3, %v3433_v45, 0  ;;  %v1831_v45 = vld [vmem:[#allocation2 + $0xc] sm:$0xf] }
 0x2d4   : > { %1664 = vmatpush1.bf16.msra.mxu1 %v1654_v47  ;;  %v1833_v47 = vsel %vm3945_vm6, %v1831_v45, 0 }
 0x2d5   : > { %v1450_v51 = vpop.permute.xlu1 %1449 }
 0x2d6   : > { %v1700_v5 = vrot.slane %v1450_v51, 4 }
 0x2d7   : > { %3436 = vmatmul.mubr.msk.bf16.vlgmr.msra.gmra.mrb[4].mxu1 %vm4847_vm14, %v3428_v21  ;;  %vm4850_vm14 = vcmp.ne.s16.totalorder %v3895_v40, 0 }
 0x2d8   : > { %2296 = vmatprep.mubr.bf16.mxu1 %v3675_v3 }
 0x2f7   : > { %v4148_v48 = vpop.f32.mrb[0].mxu1 }
 0x2f8   : > { %v4150_v49 = vpop.f32.mrb[1].mxu1 }
 0x2f9   : > { %v923_v50 = vpop.f32.mrb[2].mxu1 }
 0x2fa   : > { %v924_v13 = vpop.f32.mrb[3].mxu1  ;;  %v931_v50 = vld [vmem:[%s4830_s0 + $0x10] sm:$0xff] }
 0x39e   : > { %v1440_v52 = vpop.f32.mrb[4].mxu0 }
 0x39f   : > { %v1452_v55 = vmul.f32 %v1450_v51, %v1440_v52  ;;  %v1442_v36 = vpop.f32.mrb[5].mxu0  ;;  %v1793_v52 = vpop.permute.xlu0 %1792 }
 0x3a0   : > { %v1453_v57 = vmul.f32 %v1450_v51, %v1442_v36  ;;  %v1444_v23 = vpop.f32.mrb[6].mxu0  ;;  %v928_v51 = vld [vmem:[%s4829_s12 + $0x10] sm:$0xff] }
 0x3a1   : > { %v1459_v58 = vadd.f32 %v1457_v56, %v1452_v55  ;;  %v1445_v63 = vpop.f32.mrb[7].mxu0 }
 0x3a2   : > { %v1460_v0 = vadd.f32 %v1457_v56, %v1453_v57 }
 0x3a3   : > { %v1461_v1 = vmax.f32 %v1459_v58, 0.0 }
 0x3a4   : > { %v1462_v60 = vmax.f32 %v1460_v0, 0.0 }
 0x3a6   : > { %v3515_v4 = vpack.c.bf16 %v1462_v60, %v1461_v1 }
 0x3a8   : > { %1471 = vst [vmem:[#allocation2 + $0x4] sm:$0x33] %v3515_v4 }
 0x3aa   : > { %v1693_v6 = vpop.f32.mrb[4].mxu1 }
 0x3ab   : > { %v1702_v19 = vmul.f32 %v1700_v5, %v1693_v6  ;;  %v1695_v62 = vpop.f32.mrb[5].mxu1 }
 0x3ac   : > { %v1703_v7 = vmul.f32 %v1700_v5, %v1695_v62  ;;  %v1697_v9 = vpop.f32.mrb[6].mxu1 }
 0x3ad   : > { %v1706_v10 = vadd.f32 %v1704_v59, %v1702_v19  ;;  %v1698_v11 = vpop.f32.mrb[7].mxu1 }
 0x3ae   : > { %v1707_v8 = vadd.f32 %v1704_v59, %v1703_v7 }
 0x3af   : > { %v1708_v12 = vmax.f32 %v1706_v10, 0.0 }
 0x3b0   : > { %v1709_v14 = vmax.f32 %v1707_v8, 0.0 }
 0x3b2   : > { %v3516_v18 = vpack.c.bf16 %v1709_v14, %v1708_v12 }
 0x3b4   : > { %v1717_v24 = vrot.slane %v3516_v18, 6 }
 0x3b6   : > { %1719 = vst [vmem:[#allocation2 + $0x4] sm:$0xcc] %v1717_v24 }
 0x3bd   : > { %v1737_v25 = vld [vmem:[#allocation2 + $0x8] sm:$0xf]  ;;  %v1736_v61 = vld [vmem:[#allocation2] sm:$0xff] }
 0x3be   : > { %1742 = vrot.lane.b32.xlu0 %v1737_v25, %s3682_s7  ;;  %1740 = vrot.lane.b32.xlu1 %v1736_v61, %s3682_s7  ;;  %v1721_v26 = vld [vmem:[#allocation2 + $0x8] sm:$0xf]  ;;  %v1722_v32 = vsel %vm4848_vm13, %v1736_v61, 0  ;;  %v1752_v22 = vsel %vm4849_vm1, %v1736_v61, 0  ;;  %v1768_v35 = vsel %vm4850_vm14, %v1736_v61, 0  ;;  %vm4851_vm13 = vcmp.ne.s16.totalorder %v3917_v53, 0 }
 0x3bf   : > { %v1723_v27 = vsel %vm3873_vm11, %v1721_v26, 0  ;;  %v1751_v15 = vld [vmem:[#allocation2 + $0x8] sm:$0xf]  ;;  %vm4852_vm1 = vcmp.ne.s16.totalorder %v3898_v41, 0  ;;  %vm4853_vm14 = vcmask 130048  }
 0x3c0   : > { %v1753_v20 = vsel %vm3880_vm12, %v1751_v15, 0  ;;  %v1767_v33 = vld [vmem:[#allocation2 + $0x8] sm:$0xf] }
 0x3c1   : > { %v1769_v34 = vsel %vm3904_vm4, %v1767_v33, 0  ;;  %v4174_v39 = vld [vmem:[#allocation2 + $0x4] sm:$0xff] }
 0x3c2   : > { %1728 = vrot.lane.b32.xlu0 %v1723_v27, %s3681_s3  ;;  %1726 = vrot.lane.b32.xlu1 %v1722_v32, %s3681_s3  ;;  %v1786_v44 = vsel %vm4851_vm13, %v4174_v39, 0  ;;  %v1802_v21 = vsel %vm4852_vm1, %v4174_v39, 0  ;;  %v1832_v13 = vsel %vm1109_vm8, %v4174_v39, 0  ;;  %vm4854_vm13 = vcmask 7168  }
 0x3c3   : > { %vm4855_vm1 = vcmask 1039360  }
 0x3c6   : > { %1758 = vrot.lane.b32.xlu0 %v1753_v20, %s3680_s2  ;;  %1756 = vrot.lane.b32.xlu1 %v1752_v22, %s3680_s2  ;;  %v1795_v22 = vrot.slane %v1793_v52, 4 }
 0x3ca   : > { %1774 = vrot.lane.b32.xlu0 %v1769_v34, %s4796_s11  ;;  %1772 = vrot.lane.b32.xlu1 %v1768_v35, %s4796_s11  ;;  %s4869_s11 = smov 113  }
 0x3ce   : > { %1808 = vrot.lane.b32.xlu0 %v1803_v38, %s4794_s1  ;;  %1820 = vrot.lane.b32.xlu1 %v4174_v39, %s4792_s4 }
 0x3d2   : > { %1822 = vrot.lane.b32.xlu0 %v1817_v43, %s4792_s4  ;;  %1790 = vrot.lane.b32.xlu1 %v1786_v44, %s4799_s29  ;;  %s4860_s4 = sld [smem:[#allocation16_spill]] }
 0x3d6   : > { %1838 = vrot.lane.b32.xlu0 %v1833_v47, %s4790_s6  ;;  %1806 = vrot.lane.b32.xlu1 %v1802_v21, %s4794_s1  ;;  %s4868_s1 = smov 1  }
 0x3da   : > { %1961 = vperm.xlu0 %3606, %v931_v50   ;;  %1836 = vrot.lane.b32.xlu1 %v1832_v13, %s4790_s6  ;;  %s4870_s6 = smov 112  }
 0x3de   : > { %1954 = vperm.xlu1 %3607, %v928_v51  }
 0x430   : > { %v1743_v55 = vpop.permute.xlu0 %1742  ;;  %v1741_v36 = vpop.permute.xlu1 %1740 }
 0x431   : > { %v1745_v56 = vrot.slane %v1743_v55, 4  ;;  %v1744_v57 = vrot.slane %v1741_v36, 4 }
 0x433   : > { %v1746_v63 = vsel %vm838_vm0, %v1744_v57, %v1745_v56 }
 0x434   : > { %v1729_v23 = vpop.permute.xlu0 %1728  ;;  %v1727_v58 = vpop.permute.xlu1 %1726  ;;  %v1747_v4 = vsel %vm4853_vm14, %v1741_v36, %v1746_v63  ;;  %vm4856_vm14 = vcmask 916480  }
 0x435   : > { %v1731_v0 = vrot.slane %v1729_v23, 4  ;;  %v1730_v1 = vrot.slane %v1727_v58, 4 }
 0x437   : > { %v1732_v60 = vsel %vm838_vm0, %v1730_v1, %v1731_v0 }
 0x438   : > { %v1733_v5 = vsel %vm846_vm5, %v1727_v58, %v1732_v60  ;;  %v1759_v6 = vpop.permute.xlu0 %1758  ;;  %v1757_v19 = vpop.permute.xlu1 %1756 }
 0x439   : > { %v1761_v59 = vrot.slane %v1759_v6, 4  ;;  %v1760_v62 = vrot.slane %v1757_v19, 4  ;;  %v3439_v7 = vcombine.high %v1733_v5, %v1747_v4  ;;  %v3438_v9 = vcombine.low %v1733_v5, %v1747_v4  ;;  %v1855_v4 = vld [vmem:[%s4857_s30] sm:$0xf] }
 0x43b   : > { %1911 = vmatprep.subr.bf16.mxu0 %v3439_v7  ;;  %v1762_v8 = vsel %vm838_vm0, %v1760_v62, %v1761_v59 }
 0x43c   : > { %v1775_v10 = vpop.permute.xlu0 %1774  ;;  %v1773_v11 = vpop.permute.xlu1 %1772  ;;  %1912 = vmatpush1.bf16.msra.mxu0 %v3438_v9  ;;  %v1763_v24 = vsel %vm1008_vm15, %v1757_v19, %v1762_v8 }
 0x43d   : > { %v1777_v12 = vrot.slane %v1775_v10, 4  ;;  %v1776_v14 = vrot.slane %v1773_v11, 4 }
 0x43f   : > { %v1778_v18 = vsel %vm838_vm0, %v1776_v14, %v1777_v12  ;;  %v2020_v14 = vld [vmem:[#allocation6] sm:$0x1] }
 0x440   : > { %v1779_v25 = vsel %vm4854_vm13, %v1773_v11, %v1778_v18  ;;  %v1809_v61 = vpop.permute.xlu0 %1808  ;;  %v1821_v26 = vpop.permute.xlu1 %1820  ;;  %vm4798_vm13 = vcmask 588800   ;;  %v1971_v18 = vld [vmem:[%s4858_s10] sm:$0xff]  ;;  %s4861_s10 = sld [smem:[#allocation17_spill]] }
 0x441   : > { %v3441_v27 = vcombine.high %v1763_v24, %v1779_v25  ;;  %v3440_v32 = vcombine.low %v1763_v24, %v1779_v25  ;;  %v1824_v35 = vrot.slane %v1821_v26, 4  ;;  %v1811_v38 = vrot.slane %v1809_v61, 4 }
 0x443   : > { %1913 = vmatprep.subr.bf16.mxu0 %v3441_v27 }
 0x444   : > { %v1823_v15 = vpop.permute.xlu0 %1822  ;;  %v1791_v20 = vpop.permute.xlu1 %1790  ;;  %1914 = vmatpush1.bf16.msra.mxu0 %v3440_v32 }
 0x445   : > { %v1825_v33 = vrot.slane %v1823_v15, 4  ;;  %v1794_v34 = vrot.slane %v1791_v20, 4 }
 0x447   : > { %v1796_v37 = vsel %vm838_vm0, %v1794_v34, %v1795_v22  ;;  %v1826_v45 = vsel %vm838_vm0, %v1824_v35, %v1825_v33  ;;  %v1980_v33 = vld [vmem:[%s4860_s4] sm:$0x1]  ;;  %v1985_v34 = vshrl.u32 %v848_v2, 7  ;;  %s4863_s4 = sld [smem:[#allocation19_spill]] }
 0x448   : > { %v1797_v43 = vsel %vm4855_vm1, %v1791_v20, %v1796_v37  ;;  %v1807_v44 = vpop.permute.xlu1 %1806  ;;  %v1839_v13 = vpop.permute.xlu0 %1838  ;;  %v1827_v52 = vsel %vm4856_vm14, %v1821_v26, %v1826_v45  ;;  %vm4859_vm1 = vcmask 31744   ;;  %v859_v2 = vld [vmem:[%s4761_s14] sm:$0xff] }
 0x449   : > { %v1810_v47 = vrot.slane %v1807_v44, 4  ;;  %v3443_v21 = vcombine.high %v4174_v39, %v1797_v43  ;;  %v3442_v50 = vcombine.low %v4174_v39, %v1797_v43  ;;  %v1841_v56 = vrot.slane %v1839_v13, 4  ;;  %vm4862_vm14 = vmmov %vm4859_vm1  ;;  %v2139_v13 = vld [vmem:[#allocation2 + $0xc] sm:$0xf] }
 0x44b   : > { %v1812_v51 = vsel %vm838_vm0, %v1810_v47, %v1811_v38  ;;  %1915 = vmatprep.subr.bf16.mxu0 %v3443_v21  ;;  %v4240_v38 = vsub.s32 0, %v1985_v34 }
 0x44c   : > { %v1813_v55 = vsel %vm993_vm10, %v1807_v44, %v1812_v51  ;;  %v1837_v36 = vpop.permute.xlu1 %1836  ;;  %1916 = vmatpush1.bf16.msra.mxu0 %v3442_v50  ;;  %v1983_v44 = vld [vmem:[%s4861_s10] sm:$0xff]  ;;  %v2141_v51 = vsel %vm3919_vm7, %v2139_v13, 0  ;;  %s4864_s10 = sld [smem:[#allocation18_spill]] }
 0x44d   : > { %v1840_v57 = vrot.slane %v1837_v36, 4  ;;  %v3445_v23 = vcombine.high %v1813_v55, %v1827_v52  ;;  %v3444_v58 = vcombine.low %v1813_v55, %v1827_v52  ;;  %v2000_v50 = vld [vmem:[%s4863_s4] sm:$0xff]  ;;  %s4873_s4 = smov 111  }
 0x44f   : > { %v1842_v63 = vsel %vm838_vm0, %v1840_v57, %v1841_v56  ;;  %1917 = vmatprep.subr.bf16.mxu0 %v3445_v23 }
 0x450   : > { %v1843_v0 = vsel %vm945_vm9, %v1837_v36, %v1842_v63  ;;  %1918 = vmatpush1.bf16.msra.mxu0 %v3444_v58 }
 0x451   : > { %v3447_v39 = vcombine.high %v1843_v0, %v1843_v0  ;;  %v3446_v1 = vcombine.low %v1843_v0, %v1843_v0 }
 0x452   : > { %v1992_v52 = vld [vmem:[%s4864_s10] sm:$0xff] }
 0x453   : > { %3448 = vmatprep.subr.msk.bf16.mxu0 %vm838_vm0, %v3447_v39  ;;  %v1906_v60 = vsel %vm838_vm0, %v3446_v1, 0 }
 0x454   : > { %1920 = vmatpush1.bf16.msra.mxu0 %v1906_v60 }
 0x457   : > { %3449 = vmatmul.mubr.msk.bf16.vlgmr.msra.gmra.mrb[8].mxu0 %vm4798_vm13, %v1855_v4 }
 0x458   : > { %2536 = vmatprep.mubr.bf16.mxu0 %v3675_v3 }
 0x459   : > { %v1962_v62 = vpop.permute.xlu0 %1961 }
 0x45d   : > { %v1955_v5 = vpop.permute.xlu1 %1954 }
 0x52a   : > { %v1945_v6 = vpop.f32.mrb[8].mxu0 }
 0x52b   : > { %v1957_v19 = vmul.f32 %v1955_v5, %v1945_v6  ;;  %v1947_v59 = vpop.f32.mrb[9].mxu0 }
 0x52c   : > { %v1958_v7 = vmul.f32 %v1955_v5, %v1947_v59  ;;  %v1949_v9 = vpop.f32.mrb[10].mxu0 }
 0x52d   : > { %v4226_v10 = vadd.f32 %v1962_v62, %v1957_v19  ;;  %v1950_v11 = vpop.f32.mrb[11].mxu0 }
 0x52e   : > { %v4228_v8 = vadd.f32 %v1962_v62, %v1958_v7 }
 0x530   : > { %v1966_v12 = vadd.f32 %v4228_v8, %v4226_v10 }
 0x532   : > { %1967 = vadd.xlane.f32.xlu1 %v1966_v12 }
 0x543   : > { %2023 = vperm.xlu1 %3607, %v2020_v14  }
 0x5bf   : > { %v1968_v24 = vpop.xlane.xlu1 %1967 }
 0x5c0   : > { %v1970_v25 = vmul.f32 0.00390625, %v1968_v24 }
 0x5c2   : > { %v1972_v61 = vmul.f32 %v1971_v18, %v1970_v25 }
 0x5c3   : > { %v2024_v11 = vpop.permute.xlu1 %2023 }
 0x5c4   : > { %v1973_v26 = vsel %vm4859_vm1, %v1972_v61, 0.0  ;;  %v2029_v18 = vrot.slane %v2024_v11, %v4240_v38  ;;  %vm4865_vm1 = vcmp.ne.s16.totalorder %v3871_v28, 0 }
 0x5c5   : > { %v1974_v27 = vrot.slane %v1973_v26, 4 }
 0x5c7   : > { %v1975_v32 = vadd.f32 %v1974_v27, %v1973_v26 }
 0x5c9   : > { %v1976_v15 = vrot.slane %v1975_v32, 2 }
 0x5cb   : > { %v1977_v20 = vadd.f32 %v1976_v15, %v1975_v32 }
 0x5cd   : > { %v1978_v22 = vrot.slane %v1977_v20, 1 }
 0x5cf   : > { %v1979_v35 = vadd.f32 %v1978_v22, %v1977_v20 }
 0x5d1   : > { %v1981_v37 = vadd.f32 %v1980_v33, %v1979_v35 }
 0x5d3   : > { %v1982_v43 = vmax.f32 %v1981_v37, 0.0 }
 0x5d5   : > { %v1987_v45 = vrot.slane %v1982_v43, %v4240_v38 }
 0x5d7   : > { %v1988_v47 = vmul.f32 %v1987_v45, %v1983_v44 }
 0x5d9   : > { %v1989_v21 = vsel %vm4862_vm14, %v1988_v47, 0.0  ;;  %vm4866_vm14 = vcmp.ne.s16.totalorder %v3878_v30, 0 }
 0x5da   : > { %1990 = vadd.xlane.f32.xlu0 %v1989_v21 }
 0x5f0   : > { %2003 = vperm.xlu0 %3606, %v2000_v50  }
 0x5f4   : > { %862 = vperm.xlu0 %3606, %v859_v2  }
 0x5f8   : > { %2146 = vrot.lane.b32.xlu0 %v2141_v51, %s4799_s29 }
 0x667   : > { %v1991_v55 = vpop.xlane.xlu0 %1990 }
 0x668   : > { %v1993_v36 = vadd.f32 %v1992_v52, %v1991_v55 }
 0x66a   : > { %v3450_v56 = vmul.f32 -1.442695, %v1993_v36 }
 0x66c   : > { %3643 = vpow2.f32 %v3450_v56 }
 0x66f   : > { %v2004_v63 = vpop.permute.xlu0 %2003 }
 0x670   : > { %v2006_v0 = vmul.f32 %v2004_v63, %v4226_v10  ;;  %v2007_v39 = vmul.f32 %v2004_v63, %v4228_v8 }
 0x672   : > { %v2008_v1 = vrot.slane %v2006_v0, 4  ;;  %v2014_v60 = vrot.slane %v2007_v39, 4 }
 0x673   : > { %v863_v34 = vpop.permute.xlu0 %862 }
 0x674   : > { %v2009_v4 = vadd.f32 %v2008_v1, %v2006_v0  ;;  %v2015_v5 = vadd.f32 %v2014_v60, %v2007_v39  ;;  %v920_v47 = vadd.f32 %v4148_v48, %v863_v34  ;;  %v922_v21 = vadd.f32 %v4150_v49, %v863_v34  ;;  %v2155_v1 = vld [vmem:[#allocation2 + $0xc] sm:$0xf] }
 0x675   : > { %v2157_v60 = vsel %vm3900_vm2, %v2155_v1, 0 }
 0x676   : > { %v3644_v57 = vpop.eup %3643  ;;  %v2010_v6 = vrot.slane %v2009_v4, 2  ;;  %v2016_v19 = vrot.slane %v2015_v5, 2 }
 0x677   : > { %v1997_v23 = vadd.f32 1.0, %v3644_v57  ;;  %v2147_v34 = vpop.permute.xlu0 %2146 }
 0x678   : > { %v2011_v59 = vadd.f32 %v2010_v6, %v2009_v4  ;;  %v2017_v62 = vadd.f32 %v2016_v19, %v2015_v5  ;;  %v2171_v4 = vld [vmem:[#allocation2 + $0xc] sm:$0xf] }
 0x679   : > { %3645 = vrcp.f32 %v1997_v23  ;;  %v2185_v6 = vld [vmem:[#allocation2 + $0xc] sm:$0xf] }
 0x67a   : > { %v2012_v7 = vrot.slane %v2011_v59, 1  ;;  %v2018_v9 = vrot.slane %v2017_v62, 1  ;;  %v2187_v19 = vsel %vm3945_vm6, %v2185_v6, 0 }
 0x67c   : > { %v2013_v12 = vadd.f32 %v2012_v7, %v2011_v59  ;;  %v2019_v14 = vadd.f32 %v2018_v9, %v2017_v62  ;;  %v2399_v62 = vld [vmem:[#allocation3 + $0xc] sm:$0x3]  ;;  %v2064_v7 = vld [vmem:[%s4766_s19] sm:$0xff] }
 0x67d   : > { %v2401_v11 = vsel %vm3919_vm7, %v2399_v62, 0 }
 0x67e   : > { %v2030_v24 = vadd.f32 %v2029_v18, %v2013_v12  ;;  %v2031_v25 = vadd.f32 %v2029_v18, %v2019_v14  ;;  %v2061_v12 = vld [vmem:[%s4765_s18] sm:$0xff]  ;;  %v2405_v14 = vrot.slane %v2401_v11, 6  ;;  %v2417_v18 = vld [vmem:[#allocation3 + $0xc] sm:$0x3] }
 0x680   : > { %v3451_v61 = vmul.f32 -1.442695, %v2030_v24  ;;  %v3452_v26 = vmul.f32 -1.442695, %v2031_v25  ;;  %v2433_v24 = vld [vmem:[#allocation3 + $0xc] sm:$0x3] }
 0x681   : > { %v2419_v25 = vsel %vm3900_vm2, %v2417_v18, 0 }
 0x682   : > { %3647 = vpow2.f32 %v3451_v61  ;;  %v2437_v61 = vrot.slane %v2433_v24, 6 }
 0x683   : > { %v3646_v58 = vpop.eup %3645  ;;  %3649 = vpow2.f32 %v3452_v26  ;;  %v2449_v26 = vld [vmem:[#allocation3 + $0xc] sm:$0x3] }
 0x684   : > { %2046 = vperm.xlu1 %3607, %v3646_v58  }
 0x68c   : > { %v3648_v27 = vpop.eup %3647 }
 0x68d   : > { %v3650_v32 = vpop.eup %3649  ;;  %v2038_v15 = vadd.f32 1.0, %v3648_v27  ;;  %v2451_v27 = vsel %vm3945_vm6, %v2449_v26, 0 }
 0x68e   : > { %v2039_v20 = vadd.f32 1.0, %v3650_v32  ;;  %v2647_v32 = vld [vmem:[#allocation3 + $0xc] sm:$0xc] }
 0x68f   : > { %3651 = vrcp.f32 %v2038_v15  ;;  %v2663_v15 = vld [vmem:[#allocation3 + $0xc] sm:$0xc] }
 0x690   : > { %3653 = vrcp.f32 %v2039_v20  ;;  %v2649_v20 = vsel %vm3919_vm7, %v2647_v32, 0 }
 0x699   : > { %v3652_v22 = vpop.eup %3651 }
 0x69a   : > { %v3654_v33 = vpop.eup %3653  ;;  %v2051_v37 = vmul.f32 %v3652_v22, %v4226_v10  ;;  %v2665_v22 = vsel %vm3900_vm2, %v2663_v15, 0 }
 0x69b   : > { %v2052_v43 = vmul.f32 %v3654_v33, %v4228_v8  ;;  %v3482_v33 = vrot.slane %v2665_v22, 10 }
 0x703   : > { %v2047_v35 = vpop.permute.xlu1 %2046 }
 0x704   : > { %v2049_v44 = vmul.f32 %v2047_v35, %v4226_v10  ;;  %v2050_v45 = vmul.f32 %v2047_v35, %v4228_v8 }
 0x706   : > { %v2053_v50 = vadd.f32 %v2051_v37, %v2049_v44  ;;  %v2054_v2 = vadd.f32 %v2052_v43, %v2050_v45 }
 0x708   : > { %v4268_v13 = vadd.f32 %v2053_v50, %v920_v47  ;;  %v4270_v51 = vadd.f32 %v2054_v2, %v922_v21 }
 0x70a   : > { %v2057_v52 = vmax.f32 %v4268_v13, 0.0  ;;  %v2058_v55 = vmax.f32 %v4270_v51, 0.0  ;;  %v3199_v51 = vld [vmem:[%s4908_s25 + $0x8] sm:$0xff] }
 0x70c   : > { %v4278_v10 = vpack.c.bf16 %v2058_v55, %v2057_v52 }
 0x70e   : > { %2073 = vst [vmem:[#allocation2 + $0x4] sm:$0xff] %v4278_v10  ;;  %2137 = vst [vmem:[#allocation4 + $0x20] sm:$0xff] %v4278_v10  ;;  %v2186_v9 = vsel %vm1109_vm8, %v4278_v10, 0 }
 0x715   : > { %v2091_v48 = vld [vmem:[#allocation2 + $0x8] sm:$0xf]  ;;  %v2090_v49 = vld [vmem:[#allocation2] sm:$0xff] }
 0x716   : > { %2096 = vrot.lane.b32.xlu0 %v2091_v48, %s3682_s7  ;;  %2094 = vrot.lane.b32.xlu1 %v2090_v49, %s3682_s7  ;;  %v2075_v8 = vld [vmem:[#allocation2 + $0x8] sm:$0xf]  ;;  %v2076_v56 = vsel %vm4865_vm1, %v2090_v49, 0  ;;  %v2106_v58 = vsel %vm4866_vm14, %v2090_v49, 0  ;;  %vm4867_vm1 = vcmp.ne.s16.totalorder %v3895_v40, 0  ;;  %vm4871_vm14 = vcmp.ne.s16.totalorder %v3917_v53, 0 }
 0x717   : > { %v2077_v36 = vsel %vm3873_vm11, %v2075_v8, 0  ;;  %v2105_v57 = vld [vmem:[#allocation2 + $0x8] sm:$0xf]  ;;  %v2122_v39 = vsel %vm4867_vm1, %v2090_v49, 0  ;;  %v2140_v5 = vsel %vm4871_vm14, %v4278_v10, 0  ;;  %vm4872_vm1 = vcmp.ne.s16.totalorder %v3898_v41, 0 }
 0x718   : > { %v2107_v23 = vsel %vm3880_vm12, %v2105_v57, 0  ;;  %v2121_v63 = vld [vmem:[#allocation2 + $0x8] sm:$0xf]  ;;  %v2156_v59 = vsel %vm4872_vm1, %v4278_v10, 0  ;;  %vm4874_vm14 = vcmask 130048   ;;  %vm4875_vm1 = vcmask 7168  }
 0x719   : > { %v2123_v0 = vsel %vm3904_vm4, %v2121_v63, 0 }
 0x71a   : > { %2082 = vrot.lane.b32.xlu0 %v2077_v36, %s3681_s3  ;;  %2080 = vrot.lane.b32.xlu1 %v2076_v56, %s3681_s3 }
 0x71e   : > { %2112 = vrot.lane.b32.xlu0 %v2107_v23, %s3680_s2  ;;  %2110 = vrot.lane.b32.xlu1 %v2106_v58, %s3680_s2 }
 0x722   : > { %2128 = vrot.lane.b32.xlu0 %v2123_v0, %s4868_s1  ;;  %2126 = vrot.lane.b32.xlu1 %v2122_v39, %s4868_s1 }
 0x726   : > { %2162 = vrot.lane.b32.xlu0 %v2157_v60, %s4869_s11  ;;  %2174 = vrot.lane.b32.xlu1 %v4278_v10, %s4870_s6 }
 0x72a   : > { %2176 = vrot.lane.b32.xlu0 %v2171_v4, %s4870_s6  ;;  %2144 = vrot.lane.b32.xlu1 %v2140_v5, %s4799_s29 }
 0x72e   : > { %2192 = vrot.lane.b32.xlu0 %v2187_v19, %s4873_s4  ;;  %2160 = vrot.lane.b32.xlu1 %v2156_v59, %s4869_s11 }
 0x732   : > { %2314 = vperm.xlu0 %3606, %v2064_v7   ;;  %2190 = vrot.lane.b32.xlu1 %v2186_v9, %s4873_s4 }
 0x736   : > { %2408 = vrot.lane.b32.xlu0 %v2405_v14, %s4799_s29  ;;  %2307 = vperm.xlu1 %3607, %v2061_v12   ;;  %v2149_v14 = vrot.slane %v2147_v34, 4 }
 0x73a   : > { %2424 = vrot.lane.b32.xlu0 %v2419_v25, %s4869_s11 }
 0x73e   : > { %2440 = vrot.lane.b32.xlu0 %v2437_v61, %s4870_s6 }
 0x742   : > { %2456 = vrot.lane.b32.xlu0 %v2451_v27, %s4873_s4 }
 0x746   : > { %2654 = vrot.lane.b32.xlu0 %v2649_v20, %s4799_s29 }
 0x74a   : > { %2674 = vrot.lane.b32.xlu0 %v3482_v33, %s4869_s11 }
 0x788   : > { %v2097_v35 = vpop.permute.xlu0 %2096  ;;  %v2095_v37 = vpop.permute.xlu1 %2094 }
 0x789   : > { %v2099_v43 = vrot.slane %v2097_v35, 4  ;;  %v2098_v44 = vrot.slane %v2095_v37, 4 }
 0x78b   : > { %v2100_v45 = vsel %vm838_vm0, %v2098_v44, %v2099_v43 }
 0x78c   : > { %v2101_v47 = vsel %vm4874_vm14, %v2095_v37, %v2100_v45  ;;  %v2083_v21 = vpop.permute.xlu0 %2082  ;;  %v2081_v50 = vpop.permute.xlu1 %2080  ;;  %vm4876_vm14 = vcmask 1039360  }
 0x78d   : > { %2103 = vst [vmem:[#allocation4 + $0x8] sm:$0xff] %v2101_v47  ;;  %v2085_v2 = vrot.slane %v2083_v21, 4  ;;  %v2084_v48 = vrot.slane %v2081_v50, 4 }
 0x78f   : > { %v2086_v49 = vsel %vm838_vm0, %v2084_v48, %v2085_v2 }
 0x790   : > { %v2087_v8 = vsel %vm846_vm5, %v2081_v50, %v2086_v49  ;;  %v2113_v36 = vpop.permute.xlu0 %2112  ;;  %v2111_v56 = vpop.permute.xlu1 %2110 }
 0x791   : > { %2089 = vst [vmem:[#allocation4] sm:$0xff] %v2087_v8  ;;  %v2115_v57 = vrot.slane %v2113_v36, 4  ;;  %v2114_v23 = vrot.slane %v2111_v56, 4  ;;  %v3455_v58 = vcombine.high %v2087_v8, %v2101_v47  ;;  %v3454_v63 = vcombine.low %v2087_v8, %v2101_v47  ;;  %v2209_v36 = vld [vmem:[%s4762_s15] sm:$0xf] }
 0x793   : > { %v2116_v0 = vsel %vm838_vm0, %v2114_v23, %v2115_v57  ;;  %2264 = vmatprep.subr.bf16.mxu1 %v3455_v58 }
 0x794   : > { %v2117_v39 = vsel %vm1008_vm15, %v2111_v56, %v2116_v0  ;;  %v2129_v1 = vpop.permute.xlu0 %2128  ;;  %v2127_v60 = vpop.permute.xlu1 %2126  ;;  %2265 = vmatpush1.bf16.msra.mxu1 %v3454_v63 }
 0x795   : > { %2119 = vst [vmem:[#allocation4 + $0x10] sm:$0xff] %v2117_v39  ;;  %v2131_v4 = vrot.slane %v2129_v1, 4  ;;  %v2130_v5 = vrot.slane %v2127_v60, 4 }
 0x797   : > { %v2132_v6 = vsel %vm838_vm0, %v2130_v5, %v2131_v4 }
 0x798   : > { %v2133_v19 = vsel %vm4875_vm1, %v2127_v60, %v2132_v6  ;;  %v2163_v59 = vpop.permute.xlu0 %2162  ;;  %v2175_v62 = vpop.permute.xlu1 %2174  ;;  %vm4877_vm1 = vcmask 916480  }
 0x799   : > { %2135 = vst [vmem:[#allocation4 + $0x18] sm:$0xff] %v2133_v19  ;;  %v3457_v7 = vcombine.high %v2117_v39, %v2133_v19  ;;  %v3456_v9 = vcombine.low %v2117_v39, %v2133_v19  ;;  %v2178_v25 = vrot.slane %v2175_v62, 4  ;;  %v2165_v26 = vrot.slane %v2163_v59, 4 }
 0x79b   : > { %2266 = vmatprep.subr.bf16.mxu1 %v3457_v7 }
 0x79c   : > { %v2177_v11 = vpop.permute.xlu0 %2176  ;;  %v2145_v12 = vpop.permute.xlu1 %2144  ;;  %2267 = vmatpush1.bf16.msra.mxu1 %v3456_v9 }
 0x79d   : > { %v2179_v18 = vrot.slane %v2177_v11, 4  ;;  %v2148_v24 = vrot.slane %v2145_v12, 4 }
 0x79f   : > { %v2150_v61 = vsel %vm838_vm0, %v2148_v24, %v2149_v14  ;;  %v2180_v15 = vsel %vm838_vm0, %v2178_v25, %v2179_v18 }
 0x7a0   : > { %v2151_v27 = vsel %vm4876_vm14, %v2145_v12, %v2150_v61  ;;  %v2161_v32 = vpop.permute.xlu1 %2160  ;;  %v2193_v35 = vpop.permute.xlu0 %2192  ;;  %v2181_v34 = vsel %vm4877_vm1, %v2175_v62, %v2180_v15  ;;  %vm4878_vm14 = vcmp.ne.s16.totalorder %v3871_v28, 0  ;;  %vm4879_vm1 = vcmp.ne.s16.totalorder %v3878_v30, 0 }
 0x7a1   : > { %v2164_v20 = vrot.slane %v2161_v32, 4  ;;  %v3459_v22 = vcombine.high %v4278_v10, %v2151_v27  ;;  %v3458_v33 = vcombine.low %v4278_v10, %v2151_v27  ;;  %v2195_v45 = vrot.slane %v2193_v35, 4 }
 0x7a3   : > { %v2166_v37 = vsel %vm838_vm0, %v2164_v20, %v2165_v26  ;;  %2268 = vmatprep.subr.bf16.mxu1 %v3459_v22 }
 0x7a4   : > { %v2167_v43 = vsel %vm993_vm10, %v2161_v32, %v2166_v37  ;;  %v2191_v44 = vpop.permute.xlu1 %2190  ;;  %2269 = vmatpush1.bf16.msra.mxu1 %v3458_v33 }
 0x7a5   : > { %v2194_v47 = vrot.slane %v2191_v44, 4  ;;  %v3461_v21 = vcombine.high %v2167_v43, %v2181_v34  ;;  %v3460_v50 = vcombine.low %v2167_v43, %v2181_v34 }
 0x7a7   : > { %v2196_v2 = vsel %vm838_vm0, %v2194_v47, %v2195_v45  ;;  %2270 = vmatprep.subr.bf16.mxu1 %v3461_v21 }
 0x7a8   : > { %v2197_v48 = vsel %vm945_vm9, %v2191_v44, %v2196_v2  ;;  %2271 = vmatpush1.bf16.msra.mxu1 %v3460_v50 }
 0x7a9   : > { %v3463_v10 = vcombine.high %v2197_v48, %v2197_v48  ;;  %v3462_v49 = vcombine.low %v2197_v48, %v2197_v48 }
 0x7ab   : > { %3464 = vmatprep.subr.msk.bf16.mxu1 %vm838_vm0, %v3463_v10  ;;  %v2259_v8 = vsel %vm838_vm0, %v3462_v49, 0 }
 0x7ac   : > { %2273 = vmatpush1.bf16.msra.mxu1 %v2259_v8 }
 0x7af   : > { %3465 = vmatmul.mubr.msk.bf16.vlgmr.msra.gmra.mrb[8].mxu1 %vm4798_vm13, %v2209_v36  ;;  %vm4885_vm13 = vcmp.ne.s16.totalorder %v3898_v41, 0 }
 0x7b0   : > { %2789 = vmatprep.mubr.bf16.mxu1 %v3675_v3 }
 0x7b1   : > { %v2315_v63 = vpop.permute.xlu0 %2314 }
 0x7b5   : > { %v2308_v56 = vpop.permute.xlu1 %2307 }
 0x882   : > { %v2298_v57 = vpop.f32.mrb[8].mxu1 }
 0x883   : > { %v2310_v23 = vmul.f32 %v2308_v56, %v2298_v57  ;;  %v2300_v58 = vpop.f32.mrb[9].mxu1  ;;  %v2697_v57 = vld [vmem:[#allocation3 + $0xc] sm:$0xc] }
 0x884   : > { %v2311_v0 = vmul.f32 %v2308_v56, %v2300_v58  ;;  %v2302_v39 = vpop.f32.mrb[10].mxu1 }
 0x885   : > { %v2317_v1 = vadd.f32 %v2315_v63, %v2310_v23  ;;  %v2303_v60 = vpop.f32.mrb[11].mxu1  ;;  %v2683_v23 = vld [vmem:[#allocation3 + $0xc] sm:$0xc] }
 0x886   : > { %v2318_v4 = vadd.f32 %v2315_v63, %v2311_v0  ;;  %v2699_v63 = vsel %vm3945_vm6, %v2697_v57, 0 }
 0x887   : > { %v2319_v5 = vmax.f32 %v2317_v1, 0.0  ;;  %v3484_v1 = vrot.slane %v2699_v63, 10 }
 0x888   : > { %v2320_v6 = vmax.f32 %v2318_v4, 0.0 }
 0x88a   : > { %v3518_v19 = vpack.c.bf16 %v2320_v6, %v2319_v5  ;;  %v2065_v6 = vld [vmem:[%s4766_s19 + $0x8] sm:$0xff] }
 0x88c   : > { %2329 = vst [vmem:[#allocation3 + $0x4] sm:$0xff] %v3518_v19 }
 0x893   : > { %v2591_v59 = vld [vmem:[#allocation3 + $0x8] sm:$0xc]  ;;  %v2590_v62 = vld [vmem:[#allocation3] sm:$0xcc]  ;;  %v2331_v7 = vld [vmem:[#allocation3 + $0x8] sm:$0x3] }
 0x894   : > { %2596 = vrot.lane.b32.xlu0 %v2591_v59, %s3682_s7  ;;  %2594 = vrot.lane.b32.xlu1 %v2590_v62, %s3682_s7  ;;  %v2682_v9 = vld [vmem:[#allocation3 + $0x4] sm:$0xcc]  ;;  %v2333_v11 = vsel %vm3873_vm11, %v2331_v7, 0  ;;  %v2363_v12 = vld [vmem:[#allocation3 + $0x8] sm:$0x3] }
 0x895   : > { %v2330_v14 = vld [vmem:[#allocation3] sm:$0x33]  ;;  %v2365_v18 = vsel %vm3880_vm12, %v2363_v12, 0  ;;  %v2625_v25 = vld [vmem:[#allocation3 + $0x8] sm:$0xc] }
 0x896   : > { %v2332_v24 = vsel %vm4878_vm14, %v2330_v14, 0  ;;  %v2362_v61 = vld [vmem:[#allocation3] sm:$0x33]  ;;  %v2627_v26 = vsel %vm3904_vm4, %v2625_v25, 0  ;;  %v2347_v32 = vld [vmem:[#allocation3 + $0x8] sm:$0x3] }
 0x897   : > { %v2364_v27 = vsel %vm4879_vm1, %v2362_v61, 0  ;;  %v2416_v15 = vld [vmem:[#allocation3 + $0x4] sm:$0x33]  ;;  %v2351_v33 = vrot.slane %v2347_v32, 6  ;;  %vm4880_vm14 = vcmp.ne.s16.totalorder %v3898_v41, 0  ;;  %vm4881_vm1 = vcmp.ne.s16.totalorder %v3895_v40, 0 }
 0x898   : > { %2686 = vrot.lane.b32.xlu1 %v2682_v9, %s4870_s6  ;;  %2338 = vrot.lane.b32.xlu0 %v2333_v11, %s3681_s3  ;;  %v2379_v20 = vld [vmem:[#allocation3 + $0x8] sm:$0x3]  ;;  %v2418_v35 = vsel %vm4880_vm14, %v2416_v15, 0  ;;  %v2571_v43 = vld [vmem:[#allocation3 + $0x8] sm:$0xc]  ;;  %vm4882_vm14 = vcmp.ne.s16.totalorder %v3917_v53, 0 }
 0x899   : > { %v2396_v22 = vld [vmem:[#allocation3 + $0x4] sm:$0x33]  ;;  %v2381_v37 = vsel %vm3904_vm4, %v2379_v20, 0  ;;  %v2573_v47 = vsel %vm3873_vm11, %v2571_v43, 0  ;;  %v2624_v21 = vld [vmem:[#allocation3] sm:$0xcc] }
 0x89a   : > { %2397 = vst [vmem:[#allocation4 + $0x10] sm:$0x33] %v2396_v22  ;;  %v2448_v34 = vld [vmem:[#allocation3 + $0x4] sm:$0x33]  ;;  %v2385_v44 = vrot.slane %v2381_v37, 6  ;;  %v3477_v2 = vrot.slane %v2573_v47, 10  ;;  %v4443_v22 = vpop.permute.xlu0 %2408 }
 0x89b   : > { %v2450_v45 = vsel %vm1109_vm8, %v2448_v34, 0  ;;  %v2605_v50 = vld [vmem:[#allocation3 + $0x8] sm:$0xc]  ;;  %v2626_v48 = vsel %vm4881_vm1, %v2624_v21, 0  ;;  %v2346_v56 = vld [vmem:[#allocation3] sm:$0x33] }
 0x89c   : > { %2370 = vrot.lane.b32.xlu0 %v2365_v18, %s3680_s2  ;;  %2336 = vrot.lane.b32.xlu1 %v2332_v24, %s3681_s3  ;;  %v2607_v10 = vsel %vm3880_vm12, %v2605_v50, 0  ;;  %v2646_v49 = vld [vmem:[#allocation3 + $0x4] sm:$0xcc]  ;;  %v2350_v58 = vrot.slane %v2346_v56, 6  ;;  %v2432_v0 = vld [vmem:[#allocation3 + $0x4] sm:$0x33] }
 0x89d   : > { %v3479_v8 = vrot.slane %v2607_v10, 10  ;;  %v2648_v36 = vsel %vm4882_vm14, %v2646_v49, 0  ;;  %v2378_v39 = vld [vmem:[#allocation3] sm:$0x33]  ;;  %v2436_v60 = vrot.slane %v2432_v0, 6  ;;  %v2062_v20 = vld [vmem:[%s4765_s18 + $0x8] sm:$0xff] }
 0x89e   : > { %v2380_v4 = vsel %vm4881_vm1, %v2378_v39, 0  ;;  %v2398_v5 = vld [vmem:[#allocation3 + $0x4] sm:$0x33]  ;;  %v2883_v62 = vld [vmem:[#allocation2 + $0xc] sm:$0xf]  ;;  %vm4883_vm1 = vcmp.ne.s16.totalorder %v3871_v28, 0 }
 0x89f   : > { %v2384_v19 = vrot.slane %v2380_v4, 6  ;;  %v2400_v59 = vsel %vm4882_vm14, %v2398_v5, 0  ;;  %v2570_v7 = vld [vmem:[#allocation3] sm:$0xcc]  ;;  %v2885_v11 = vsel %vm3919_vm7, %v2883_v62, 0  ;;  %vm4884_vm14 = vcmp.ne.s16.totalorder %v3878_v30, 0 }
 0x8a0   : > { %2632 = vrot.lane.b32.xlu0 %v2627_v26, %s4868_s1  ;;  %2368 = vrot.lane.b32.xlu1 %v2364_v27, %s3680_s2  ;;  %v2404_v9 = vrot.slane %v2400_v59, 6  ;;  %v2572_v12 = vsel %vm4883_vm1, %v2570_v7, 0  ;;  %v2604_v14 = vld [vmem:[#allocation3] sm:$0xcc]  ;;  %vm4886_vm7 = vcmask 130048  }
 0x8a1   : > { %v3476_v18 = vrot.slane %v2572_v12, 10  ;;  %v2606_v24 = vsel %vm4884_vm14, %v2604_v14, 0  ;;  %v2662_v25 = vld [vmem:[#allocation3 + $0x4] sm:$0xcc]  ;;  %vm4888_vm1 = vmmov %vm4886_vm7  ;;  %vm4889_vm14 = vcmask 7168  }
 0x8a2   : > { %v3478_v61 = vrot.slane %v2606_v24, 10  ;;  %v2664_v54 = vsel %vm4885_vm13, %v2662_v25, 0  ;;  %v2696_v26 = vld [vmem:[#allocation3 + $0x4] sm:$0xcc]  ;;  %vm4887_vm13 = vcmask 916480  }
 0x8a3   : > { %v3481_v27 = vrot.slane %v2664_v54, 10  ;;  %v2698_v32 = vsel %vm1109_vm8, %v2696_v26, 0 }
 0x8a4   : > { %2354 = vrot.lane.b32.xlu0 %v2351_v33, %s3682_s7  ;;  %2422 = vrot.lane.b32.xlu1 %v2418_v35, %s4869_s11  ;;  %v3483_v15 = vrot.slane %v2698_v32, 10  ;;  %v2425_v33 = vpop.permute.xlu0 %2424 }
 0x8a8   : > { %2388 = vrot.lane.b32.xlu0 %v2385_v44, %s4868_s1  ;;  %2454 = vrot.lane.b32.xlu1 %v2450_v45, %s4873_s4  ;;  %v2441_v35 = vpop.permute.xlu0 %2440 }
 0x8a9   : > { %v2443_v32 = vrot.slane %v2441_v35, 4 }
 0x8ac   : > { %2582 = vrot.lane.b32.xlu0 %v3477_v2, %s3681_s3  ;;  %2630 = vrot.lane.b32.xlu1 %v2626_v48, %s4868_s1  ;;  %v2457_v37 = vpop.permute.xlu0 %2456 }
 0x8ad   : > { %v2459_v59 = vrot.slane %v2457_v37, 4 }
 0x8b0   : > { %2616 = vrot.lane.b32.xlu0 %v3479_v8, %s3680_s2  ;;  %2652 = vrot.lane.b32.xlu1 %v2648_v36, %s4799_s29  ;;  %v4445_v34 = vpop.permute.xlu0 %2654 }
 0x8b4   : > { %2688 = vrot.lane.b32.xlu0 %v2683_v23, %s4870_s6  ;;  %2352 = vrot.lane.b32.xlu1 %v2350_v58, %s3682_s7  ;;  %v4447_v43 = vpop.permute.xlu0 %2674 }
 0x8b8   : > { %2708 = vrot.lane.b32.xlu0 %v3484_v1, %s4873_s4  ;;  %2438 = vrot.lane.b32.xlu1 %v2436_v60, %s4870_s6  ;;  %v2427_v1 = vrot.slane %v2425_v33, 4 }
 0x8bc   : > { %2554 = vperm.xlu0 %3606, %v2065_v6   ;;  %2386 = vrot.lane.b32.xlu1 %v2384_v19, %s4868_s1 }
 0x8c0   : > { %2890 = vrot.lane.b32.xlu0 %v2885_v11, %s4799_s29  ;;  %2406 = vrot.lane.b32.xlu1 %v2404_v9, %s4799_s29 }
 0x8c4   : > { %2580 = vrot.lane.b32.xlu1 %v3476_v18, %s3681_s3 }
 0x8c8   : > { %2614 = vrot.lane.b32.xlu1 %v3478_v61, %s3680_s2 }
 0x8cc   : > { %2672 = vrot.lane.b32.xlu1 %v3481_v27, %s4869_s11 }
 0x8d0   : > { %2706 = vrot.lane.b32.xlu1 %v3483_v15, %s4873_s4 }
 0x8d4   : > { %2547 = vperm.xlu1 %3607, %v2062_v20  }
 0x906   : > { %v2597_v44 = vpop.permute.xlu0 %2596  ;;  %v2595_v45 = vpop.permute.xlu1 %2594 }
 0x907   : > { %v2599_v15 = vrot.slane %v2597_v44, 4  ;;  %v2598_v20 = vrot.slane %v2595_v45, 4 }
 0x90a   : > { %v4449_v47 = vpop.permute.xlu1 %2686  ;;  %v2339_v21 = vpop.permute.xlu0 %2338 }
 0x90b   : > { %v2341_v48 = vrot.slane %v2339_v21, 4 }
 0x90e   : > { %v2371_v50 = vpop.permute.xlu0 %2370  ;;  %v2337_v2 = vpop.permute.xlu1 %2336 }
 0x90f   : > { %v2340_v10 = vrot.slane %v2337_v2, 4  ;;  %v2373_v57 = vrot.slane %v2371_v50, 4 }
 0x911   : > { %v2342_v49 = vsel %vm838_vm0, %v2340_v10, %v2341_v48  ;;  %v2600_v48 = vsel %vm838_vm0, %v2598_v20, %v2599_v15 }
 0x912   : > { %v2343_v8 = vsel %vm846_vm5, %v2337_v2, %v2342_v49  ;;  %v4453_v36 = vpop.permute.xlu0 %2632  ;;  %v2369_v56 = vpop.permute.xlu1 %2368  ;;  %v2601_v44 = vsel %vm4888_vm1, %v2595_v45, %v2600_v48  ;;  %vm4892_vm1 = vmmov %vm4889_vm14 }
 0x913   : > { %2345 = vst [vmem:[#allocation4] sm:$0x33] %v2343_v8  ;;  %v2372_v23 = vrot.slane %v2369_v56, 4 }
 0x915   : > { %v2374_v58 = vsel %vm838_vm0, %v2372_v23, %v2373_v57 }
 0x916   : > { %v2375_v63 = vsel %vm1008_vm15, %v2369_v56, %v2374_v58  ;;  %v2355_v0 = vpop.permute.xlu0 %2354  ;;  %v2423_v39 = vpop.permute.xlu1 %2422  ;;  %v2690_v56 = vrot.slane %v4449_v47, 4 }
 0x917   : > { %2377 = vst [vmem:[#allocation4 + $0x8] sm:$0x33] %v2375_v63  ;;  %v2426_v60 = vrot.slane %v2423_v39, 4  ;;  %v2357_v25 = vrot.slane %v2355_v0, 4  ;;  %v2411_v63 = vrot.slane %v4443_v22, 4 }
 0x919   : > { %v2428_v4 = vsel %vm838_vm0, %v2426_v60, %v2427_v1  ;;  %v2635_v60 = vrot.slane %v4453_v36, 4 }
 0x91a   : > { %v2429_v5 = vsel %vm993_vm10, %v2423_v39, %v2428_v4  ;;  %v2389_v6 = vpop.permute.xlu0 %2388  ;;  %v2455_v19 = vpop.permute.xlu1 %2454 }
 0x91b   : > { %2431 = vst [vmem:[#allocation4 + $0x18] sm:$0x33] %v2429_v5  ;;  %v2458_v62 = vrot.slane %v2455_v19, 4  ;;  %v2391_v10 = vrot.slane %v2389_v6, 4 }
 0x91d   : > { %v2460_v7 = vsel %vm838_vm0, %v2458_v62, %v2459_v59 }
 0x91e   : > { %v2461_v9 = vsel %vm945_vm9, %v2455_v19, %v2460_v7  ;;  %v2631_v11 = vpop.permute.xlu1 %2630  ;;  %v2583_v12 = vpop.permute.xlu0 %2582 }
 0x91f   : > { %2463 = vst [vmem:[#allocation4 + $0x20] sm:$0x33] %v2461_v9  ;;  %v2634_v0 = vrot.slane %v2631_v11, 4  ;;  %v2585_v59 = vrot.slane %v2583_v12, 4  ;;  %v2657_v9 = vrot.slane %v4445_v34, 4 }
 0x921   : > { %v2636_v22 = vsel %vm838_vm0, %v2634_v0, %v2635_v60 }
 0x922   : > { %v4461_v14 = vpop.permute.xlu1 %2652  ;;  %v2617_v18 = vpop.permute.xlu0 %2616 }
 0x923   : > { %v2656_v62 = vrot.slane %v4461_v14, 4 }
 0x925   : > { %v2658_v12 = vsel %vm838_vm0, %v2656_v62, %v2657_v9 }
 0x926   : > { %v2353_v24 = vpop.permute.xlu1 %2352  ;;  %v2689_v37 = vpop.permute.xlu0 %2688 }
 0x927   : > { %v2356_v61 = vrot.slane %v2353_v24, 4  ;;  %v2691_v49 = vrot.slane %v2689_v37, 4 }
 0x929   : > { %v2358_v54 = vsel %vm838_vm0, %v2356_v61, %v2357_v25  ;;  %v2692_v39 = vsel %vm838_vm0, %v2690_v56, %v2691_v49  ;;  %v2619_v25 = vrot.slane %v2617_v18, 4  ;;  %v2640_v61 = vld [vmem:[#allocation3 + $0x4] sm:$0xcc] }
 0x92a   : > { %v2359_v26 = vsel %vm4886_vm7, %v2353_v24, %v2358_v54  ;;  %v2439_v27 = vpop.permute.xlu1 %2438  ;;  %vm4890_vm7 = vmmov %vm4887_vm13  ;;  %v2637_v24 = vsel %vm4892_vm1, %v2631_v11, %v2636_v22  ;;  %v3480_v20 = vrot.slane %v2640_v61, 10  ;;  %v2709_v49 = vpop.permute.xlu0 %2708  ;;  %vm4897_vm1 = vcmp.ne.s16.totalorder %v3878_v30, 0 }
 0x92b   : > { %2361 = vst [vmem:[#allocation4] sm:$0xcc] %v2359_v26  ;;  %v2442_v33 = vrot.slane %v2439_v27, 4  ;;  %v2693_v5 = vsel %vm4890_vm7, %v4449_v47, %v2692_v39  ;;  %vm4894_vm7 = vcmask 293888   ;;  %v2901_v30 = vsel %vm3900_vm2, %v2899_v31, 0 }
 0x92c   : > { %vm4900_vm2 = vcmp.ne.s16.totalorder %v3898_v41, 0  ;;  %v2063_v41 = vld [vmem:[%s4765_s18 + $0x10] sm:$0xff] }
 0x92d   : > { %v2444_v21 = vsel %vm838_vm0, %v2442_v33, %v2443_v32 }
 0x92e   : > { %v2445_v50 = vsel %vm4887_vm13, %v2439_v27, %v2444_v21  ;;  %v2387_v2 = vpop.permute.xlu1 %2386  ;;  %vm4891_vm13 = vcmask 1039360   ;;  %v2468_v21 = vld [vmem:[#allocation4 + $0x20] sm:$0x33] }
 0x92f   : > { %2447 = vst [vmem:[#allocation4 + $0x18] sm:$0xcc] %v2445_v50  ;;  %v2390_v8 = vrot.slane %v2387_v2, 4  ;;  %v2677_v50 = vrot.slane %v4447_v43, 4  ;;  %v3472_v56 = vcombine.high %v2468_v21, %v2468_v21 }
 0x931   : > { %v2392_v35 = vsel %vm838_vm0, %v2390_v8, %v2391_v10 }
 0x932   : > { %v2464_v57 = vld [vmem:[#allocation4] sm:$0xff]  ;;  %v2393_v23 = vsel %vm4889_vm14, %v2387_v2, %v2392_v35  ;;  %v2407_v58 = vpop.permute.xlu1 %2406  ;;  %vm4893_vm14 = vmmov %vm4891_vm13 }
 0x933   : > { %2603 = vst [vmem:[#allocation4] sm:$0xcc] %v2601_v44  ;;  %2395 = vst [vmem:[#allocation4 + $0x8] sm:$0xcc] %v2393_v23  ;;  %v2410_v1 = vrot.slane %v2407_v58, 4  ;;  %v2659_v11 = vsel %vm4893_vm14, %v4461_v14, %v2658_v12  ;;  %v3471_v14 = vcombine.low %v2468_v21, %v2468_v21 }
 0x935   : > { %v2412_v4 = vsel %vm838_vm0, %v2410_v1, %v2411_v63  ;;  %v2469_v63 = vld [vmem:[%s4763_s16] sm:$0x3] }
 0x936   : > { %v2467_v45 = vld [vmem:[#allocation4 + $0x18] sm:$0xff]  ;;  %v2413_v6 = vsel %vm4891_vm13, %v2407_v58, %v2412_v4  ;;  %v2581_v19 = vpop.permute.xlu1 %2580  ;;  %v2499_v58 = vsel %vm878_vm3, %v3471_v14, 0  ;;  %vm4895_vm13 = vmmov %vm4894_vm7 }
 0x937   : > { %2695 = vst [vmem:[#allocation4 + $0x18] sm:$0xcc] %v2693_v5  ;;  %2415 = vst [vmem:[#allocation4 + $0x10] sm:$0xcc] %v2413_v6  ;;  %v2584_v7 = vrot.slane %v2581_v19, 4 }
 0x939   : > { %v2586_v36 = vsel %vm838_vm0, %v2584_v7, %v2585_v59  ;;  %v3485_v59 = vld [vmem:[%s4763_s16 + $0x2] sm:$0x3] }
 0x93a   : > { %v2465_v47 = vld [vmem:[#allocation4 + $0x8] sm:$0xff]  ;;  %v2587_v54 = vsel %vm846_vm5, %v2581_v19, %v2586_v36  ;;  %v2615_v26 = vpop.permute.xlu1 %2614 }
 0x93b   : > { %2639 = vst [vmem:[#allocation4 + $0x8] sm:$0xcc] %v2637_v24  ;;  %2589 = vst [vmem:[#allocation4] sm:$0x33] %v2587_v54  ;;  %v2618_v27 = vrot.slane %v2615_v26, 4  ;;  %v3468_v32 = vcombine.high %v2464_v57, %v2465_v47  ;;  %v3467_v15 = vcombine.low %v2464_v57, %v2465_v47  ;;  %v2711_v57 = vrot.slane %v2709_v49, 4  ;;  %v2555_v9 = vpop.permute.xlu0 %2554 }
 0x93d   : > { %v2620_v34 = vsel %vm838_vm0, %v2618_v27, %v2619_v25  ;;  %2504 = vmatprep.subr.bf16.mxu0 %v3468_v32 }
 0x93e   : > { %v2466_v18 = vld [vmem:[#allocation4 + $0x10] sm:$0xff]  ;;  %v2621_v33 = vsel %vm1008_vm15, %v2615_v26, %v2620_v34  ;;  %2505 = vmatpush1.bf16.msra.mxu0 %v3467_v15  ;;  %v2673_v37 = vpop.permute.xlu1 %2672  ;;  %v2802_v15 = vrot.slane %v2555_v9, 4 }
 0x93f   : > { %2645 = vst [vmem:[#allocation4 + $0x10] sm:$0x33] %v3480_v20  ;;  %2661 = vst [vmem:[#allocation4 + $0x10] sm:$0xcc] %v2659_v11  ;;  %v2676_v2 = vrot.slane %v2673_v37, 4  ;;  %v3470_v48 = vcombine.high %v2466_v18, %v2467_v45  ;;  %v3469_v10 = vcombine.low %v2466_v18, %v2467_v45  ;;  %v2891_v17 = vpop.permute.xlu0 %2890 }
 0x940   : > { %2623 = vst [vmem:[#allocation4 + $0x8] sm:$0x33] %v2621_v33 }
 0x941   : > { %v2678_v8 = vsel %vm838_vm0, %v2676_v2, %v2677_v50  ;;  %2506 = vmatprep.subr.bf16.mxu0 %v3470_v48 }
 0x942   : > { %v2679_v35 = vsel %vm993_vm10, %v2673_v37, %v2678_v8  ;;  %2507 = vmatpush1.bf16.msra.mxu0 %v3469_v10  ;;  %v2707_v44 = vpop.permute.xlu1 %2706 }
 0x943   : > { %2681 = vst [vmem:[#allocation4 + $0x18] sm:$0x33] %v2679_v35  ;;  %v2710_v23 = vrot.slane %v2707_v44, 4  ;;  %3473 = vmatprep.subr.msk.bf16.mxu0 %vm878_vm3, %v3472_v56 }
 0x945   : > { %v2712_v43 = vsel %vm838_vm0, %v2710_v23, %v2711_v57 }
 0x946   : > { %v2713_v0 = vsel %vm945_vm9, %v2707_v44, %v2712_v43  ;;  %2509 = vmatpush1.bf16.msra.mxu0 %v2499_v58 }
 0x947   : > { %v3635_v39 = vld [vmem:[#allocation4 + $0x4] ss:$8 sps:$4 sm:$0xff]   ;;  %v3637_v1 = vld [vmem:[#allocation4] ss:$8 sps:$4 sm:$0xff]   ;;  %2715 = vst [vmem:[#allocation4 + $0x20] sm:$0x33] %v2713_v0 }
 0x948   : > { %2757 = vmatprep.subr.bf16.mxu1 %v3635_v39 }
 0x949   : > { %3474 = vmatmul.mubr.msk.bf16.vlgmr.msra.gmra.mrb[12].mxu0 %vm4894_vm7, %v2469_v63  ;;  %2758 = vmatpush1.bf16.msra.mxu1 %v3637_v1  ;;  %v2915_v63 = vld [vmem:[#allocation2 + $0xc] sm:$0xf] }
 0x94a   : > { %v3638_v60 = vld [vmem:[#allocation4 + $0x14] ss:$8 sps:$4 sm:$0xff]   ;;  %v3640_v4 = vld [vmem:[#allocation4 + $0x10] ss:$8 sps:$4 sm:$0xff]   ;;  %3040 = vmatprep.mubr.bf16.mxu0 %v3675_v3 }
 0x94b   : > { %2759 = vmatprep.subr.bf16.mxu1 %v3638_v60 }
 0x94d   : > { %2760 = vmatpush1.bf16.msra.mxu1 %v3640_v4 }
 0x94e   : > { %v2720_v5 = vld [vmem:[#allocation4 + $0x20] sm:$0x33] }
 0x94f   : > { %v3491_v45 = vcombine.high %v2720_v5, %v2720_v5  ;;  %v3490_v6 = vcombine.low %v2720_v5, %v2720_v5 }
 0x951   : > { %3492 = vmatprep.subr.msk.bf16.mxu1 %vm878_vm3, %v3491_v45  ;;  %v2752_v19 = vsel %vm878_vm3, %v3490_v6, 0  ;;  %vm4896_vm3 = vcmp.ne.s16.totalorder %v3871_v28, 0 }
 0x952   : > { %2762 = vmatpush1.bf16.msra.mxu1 %v2752_v19 }
 0x953   : > { %v2548_v22 = vpop.permute.xlu1 %2547 }
 0x954   : > { %v2798_v27 = vrot.slane %v2548_v22, 4 }
 0x955   : > { %3493 = vmatmul.mubr.msk.bf16.vlgmr.msra.gmra.mrb[12].mxu1 %vm4895_vm13, %v3485_v59 }
 0xa1c   : > { %v2538_v62 = vpop.f32.mrb[12].mxu0 }
 0xa1d   : > { %v2550_v7 = vmul.f32 %v2548_v22, %v2538_v62  ;;  %v2540_v3 = vpop.f32.mrb[13].mxu0 }
 0xa1e   : > { %v2551_v36 = vmul.f32 %v2548_v22, %v2540_v3  ;;  %v2542_v24 = vpop.f32.mrb[14].mxu0 }
 0xa1f   : > { %v2557_v25 = vadd.f32 %v2555_v9, %v2550_v7  ;;  %v2543_v47 = vpop.f32.mrb[15].mxu0 }
 0xa20   : > { %v2558_v61 = vadd.f32 %v2555_v9, %v2551_v36 }
 0xa21   : > { %v2559_v54 = vmax.f32 %v2557_v25, 0.0 }
 0xa22   : > { %v2560_v26 = vmax.f32 %v2558_v61, 0.0 }
 0xa24   : > { %v3519_v12 = vpack.c.bf16 %v2560_v26, %v2559_v54 }
 0xa26   : > { %2569 = vst [vmem:[#allocation2 + $0x4] sm:$0x33] %v3519_v12 }
 0xa28   : > { %v2791_v32 = vpop.f32.mrb[12].mxu1 }
 0xa29   : > { %v2800_v20 = vmul.f32 %v2798_v27, %v2791_v32  ;;  %v2793_v34 = vpop.f32.mrb[13].mxu1 }
 0xa2a   : > { %v2801_v11 = vmul.f32 %v2798_v27, %v2793_v34  ;;  %v2795_v18 = vpop.f32.mrb[14].mxu1 }
 0xa2b   : > { %v2804_v33 = vadd.f32 %v2802_v15, %v2800_v20  ;;  %v2796_v37 = vpop.f32.mrb[15].mxu1 }
 0xa2c   : > { %v2805_v21 = vadd.f32 %v2802_v15, %v2801_v11 }
 0xa2d   : > { %v2806_v50 = vmax.f32 %v2804_v33, 0.0 }
 0xa2e   : > { %v2807_v2 = vmax.f32 %v2805_v21, 0.0 }
 0xa30   : > { %v3520_v48 = vpack.c.bf16 %v2807_v2, %v2806_v50  ;;  %v2893_v50 = vrot.slane %v2891_v17, 4  ;;  %v2953_v17 = vld [vmem:[%s4764_s17] sm:$0xf] }
 0xa32   : > { %v2815_v10 = vrot.slane %v3520_v48, 6 }
 0xa34   : > { %2817 = vst [vmem:[#allocation2 + $0x4] sm:$0xcc] %v2815_v10 }
 0xa3b   : > { %v2835_v49 = vld [vmem:[#allocation2 + $0x8] sm:$0xf]  ;;  %v2834_v8 = vld [vmem:[#allocation2] sm:$0xff] }
 0xa3c   : > { %2840 = vrot.lane.b32.xlu0 %v2835_v49, %s3682_s7  ;;  %2838 = vrot.lane.b32.xlu1 %v2834_v8, %s3682_s7  ;;  %v2819_v56 = vld [vmem:[#allocation2 + $0x8] sm:$0xf]  ;;  %v2820_v44 = vsel %vm4896_vm3, %v2834_v8, 0  ;;  %v2850_v43 = vsel %vm4897_vm1, %v2834_v8, 0  ;;  %vm3300_vm3 = vcmask 523264  }
 0xa3d   : > { %v4510_v14 = vld [vmem:[#allocation2 + $0x4] sm:$0xff]  ;;  %v2821_v35 = vsel %vm3873_vm11, %v2819_v56, 0  ;;  %vm4898_vm11 = vcmp.ne.s16.totalorder %v3895_v40, 0  ;;  %v2929_v40 = vld [vmem:[#allocation2 + $0xc] sm:$0xf] }
 0xa3e   : > { %2881 = vst [vmem:[#allocation4 + $0x20] sm:$0xff] %v4510_v14  ;;  %v2849_v57 = vld [vmem:[#allocation2 + $0x8] sm:$0xf]  ;;  %v2866_v58 = vsel %vm4898_vm11, %v2834_v8, 0  ;;  %v2931_v0 = vsel %vm3945_vm6, %v2929_v40, 0  ;;  %v2900_v42 = vsel %vm4900_vm2, %v4510_v14, 0 }
 0xa3f   : > { %v2851_v23 = vsel %vm3880_vm12, %v2849_v57, 0  ;;  %v2865_v29 = vld [vmem:[#allocation2 + $0x8] sm:$0xf]  ;;  %vm4899_vm12 = vcmp.ne.s16.totalorder %v3917_v53, 0  ;;  %v2066_v53 = vld [vmem:[%s4766_s19 + $0x10] sm:$0xff]  ;;  %v2930_v39 = vsel %vm1109_vm8, %v4510_v14, 0  ;;  %vm4904_vm8 = vmmov %vm4893_vm14 }
 0xa40   : > { %2826 = vrot.lane.b32.xlu0 %v2821_v35, %s3681_s3  ;;  %2824 = vrot.lane.b32.xlu1 %v2820_v44, %s3681_s3  ;;  %v2867_v28 = vsel %vm3904_vm4, %v2865_v29, 0  ;;  %v2884_v46 = vsel %vm4899_vm12, %v4510_v14, 0  ;;  %vm4901_vm4 = vcmask 130048   ;;  %vm4902_vm6 = vcmask 7168   ;;  %s3397_s3 = sshll.u32 %s4915_s5, 3 }
 0xa41   : > { %s833_s12 = scalar_lea.vmem %s4773_s27, %s3397_s3 }
 0xa44   : > { %2856 = vrot.lane.b32.xlu0 %v2851_v23, %s3680_s2  ;;  %2854 = vrot.lane.b32.xlu1 %v2850_v43, %s3680_s2 }
 0xa48   : > { %2872 = vrot.lane.b32.xlu0 %v2867_v28, %s4868_s1  ;;  %2870 = vrot.lane.b32.xlu1 %v2866_v58, %s4868_s1 }
 0xa4c   : > { %2906 = vrot.lane.b32.xlu0 %v2901_v30, %s4869_s11  ;;  %2918 = vrot.lane.b32.xlu1 %v4510_v14, %s4870_s6 }
 0xa50   : > { %2920 = vrot.lane.b32.xlu0 %v2915_v63, %s4870_s6  ;;  %2888 = vrot.lane.b32.xlu1 %v2884_v46, %s4799_s29  ;;  %s829_s29 = scalar_lea.vmem %s4772_s26, %s3513_s28 }
 0xa54   : > { %2936 = vrot.lane.b32.xlu0 %v2931_v0, %s4873_s4  ;;  %2904 = vrot.lane.b32.xlu1 %v2900_v42, %s4869_s11 }
 0xa58   : > { %3058 = vperm.xlu0 %3606, %v2066_v53   ;;  %2934 = vrot.lane.b32.xlu1 %v2930_v39, %s4873_s4  ;;  %s4909_s4 = smov 127  }
 0xa5c   : > { %3051 = vperm.xlu1 %3607, %v2063_v41  }
 0xaae   : > { %v2841_v1 = vpop.permute.xlu0 %2840  ;;  %v2839_v60 = vpop.permute.xlu1 %2838 }
 0xaaf   : > { %v2843_v4 = vrot.slane %v2841_v1, 4  ;;  %v2842_v5 = vrot.slane %v2839_v60, 4 }
 0xab1   : > { %v2844_v45 = vsel %vm838_vm0, %v2842_v5, %v2843_v4 }
 0xab2   : > { %v2845_v6 = vsel %vm4901_vm4, %v2839_v60, %v2844_v45  ;;  %v2827_v19 = vpop.permute.xlu0 %2826  ;;  %v2825_v16 = vpop.permute.xlu1 %2824 }
 0xab3   : > { %2847 = vst [vmem:[#allocation4 + $0x8] sm:$0xff] %v2845_v6  ;;  %v2829_v59 = vrot.slane %v2827_v19, 4  ;;  %v2828_v22 = vrot.slane %v2825_v16, 4 }
 0xab5   : > { %v2830_v62 = vsel %vm838_vm0, %v2828_v22, %v2829_v59 }
 0xab6   : > { %v2831_v7 = vsel %vm846_vm5, %v2825_v16, %v2830_v62  ;;  %v2857_v3 = vpop.permute.xlu0 %2856  ;;  %v2855_v9 = vpop.permute.xlu1 %2854 }
 0xab7   : > { %2833 = vst [vmem:[#allocation4] sm:$0xff] %v2831_v7  ;;  %v2859_v36 = vrot.slane %v2857_v3, 4  ;;  %v2858_v24 = vrot.slane %v2855_v9, 4  ;;  %v3495_v25 = vcombine.low %v2831_v7, %v2845_v6  ;;  %v3496_v47 = vcombine.high %v2831_v7, %v2845_v6  ;;  %v3116_v7 = vld [vmem:[#allocation7] sm:$0x1] }
 0xab8   : > { %v3067_v3 = vld [vmem:[%s4767_s20] sm:$0xff] }
 0xab9   : > { %v2860_v61 = vsel %vm838_vm0, %v2858_v24, %v2859_v36  ;;  %3008 = vmatprep.subr.bf16.mxu0 %v3496_v47 }
 0xaba   : > { %v2861_v54 = vsel %vm1008_vm15, %v2855_v9, %v2860_v61  ;;  %v2873_v26 = vpop.permute.xlu0 %2872  ;;  %v2871_v12 = vpop.permute.xlu1 %2870  ;;  %3009 = vmatpush1.bf16.msra.mxu0 %v3495_v25  ;;  %vm4903_vm15 = vcmask 916480  }
 0xabb   : > { %2863 = vst [vmem:[#allocation4 + $0x10] sm:$0xff] %v2861_v54  ;;  %v2875_v27 = vrot.slane %v2873_v26, 4  ;;  %v2874_v32 = vrot.slane %v2871_v12, 4  ;;  %vm4912_vm7 = vmmov %vm4903_vm15 }
 0xabc   : > { %vm4913_vm13 = vmmov %vm4912_vm7 }
 0xabd   : > { %v2876_v15 = vsel %vm838_vm0, %v2874_v32, %v2875_v27  ;;  %v3076_v27 = vld [vmem:[%s4768_s21] sm:$0x1] }
 0xabe   : > { %v2877_v20 = vsel %vm4902_vm6, %v2871_v12, %v2876_v15  ;;  %v2907_v34 = vpop.permute.xlu0 %2906  ;;  %v2919_v11 = vpop.permute.xlu1 %2918 }
 0xabf   : > { %2879 = vst [vmem:[#allocation4 + $0x18] sm:$0xff] %v2877_v20  ;;  %v3497_v18 = vcombine.low %v2861_v54, %v2877_v20  ;;  %v3498_v33 = vcombine.high %v2861_v54, %v2877_v20  ;;  %v2922_v2 = vrot.slane %v2919_v11, 4  ;;  %v2909_v57 = vrot.slane %v2907_v34, 4  ;;  %v3079_v34 = vld [vmem:[%s4769_s22] sm:$0xff] }
 0xac1   : > { %3010 = vmatprep.subr.bf16.mxu0 %v3498_v33 }
 0xac2   : > { %v2921_v37 = vpop.permute.xlu0 %2920  ;;  %v2889_v21 = vpop.permute.xlu1 %2888  ;;  %3011 = vmatpush1.bf16.msra.mxu0 %v3497_v18 }
 0xac3   : > { %v2923_v48 = vrot.slane %v2921_v37, 4  ;;  %v2892_v10 = vrot.slane %v2889_v21, 4  ;;  %v3096_v37 = vld [vmem:[%s4771_s24] sm:$0xff] }
 0xac5   : > { %v2924_v49 = vsel %vm838_vm0, %v2922_v2, %v2923_v48  ;;  %v2894_v8 = vsel %vm838_vm0, %v2892_v10, %v2893_v50  ;;  %v3088_v50 = vld [vmem:[%s4770_s23] sm:$0xff] }
 0xac6   : > { %v2925_v56 = vsel %vm4903_vm15, %v2919_v11, %v2924_v49  ;;  %v2895_v35 = vsel %vm4904_vm8, %v2889_v21, %v2894_v8  ;;  %v2905_v44 = vpop.permute.xlu1 %2904  ;;  %v2937_v28 = vpop.permute.xlu0 %2936  ;;  %v3684_v21 = vmov 0.0  }
 0xac7   : > { %v2908_v23 = vrot.slane %v2905_v44, 4  ;;  %v3499_v43 = vcombine.low %v4510_v14, %v2895_v35  ;;  %v3500_v29 = vcombine.high %v4510_v14, %v2895_v35  ;;  %v2939_v63 = vrot.slane %v2937_v28, 4  ;;  %847 = vst.msk [vmem:[#allocation5 + $0x10] sm:$0xff] %vm846_vm5, %v3684_v21  ;;  %v3203_v21 = vld [vmem:[%s4908_s25 + $0x28] sm:$0xff]  ;;  %vm4910_vm5 = vmmov %vm4904_vm8 }
 0xac8   : > { %vm4911_vm14 = vmmov %vm4910_vm5 }
 0xac9   : > { %v2910_v58 = vsel %vm838_vm0, %v2908_v23, %v2909_v57  ;;  %3012 = vmatprep.subr.bf16.mxu0 %v3500_v29 }
 0xaca   : > { %v2911_v31 = vsel %vm993_vm10, %v2905_v44, %v2910_v58  ;;  %v2935_v30 = vpop.permute.xlu1 %2934  ;;  %3013 = vmatpush1.bf16.msra.mxu0 %v3499_v43  ;;  %vm4905_vm10 = vcmask 588800  }
 0xacb   : > { %v2938_v46 = vrot.slane %v2935_v30, 4  ;;  %v3501_v40 = vcombine.low %v2911_v31, %v2925_v56  ;;  %v3502_v0 = vcombine.high %v2911_v31, %v2925_v56 }
 0xacd   : > { %v2940_v42 = vsel %vm838_vm0, %v2938_v46, %v2939_v63  ;;  %3014 = vmatprep.subr.bf16.mxu0 %v3502_v0 }
 0xace   : > { %v2941_v53 = vsel %vm945_vm9, %v2935_v30, %v2940_v42  ;;  %3015 = vmatpush1.bf16.msra.mxu0 %v3501_v40 }
 0xacf   : > { %v3504_v39 = vcombine.high %v2941_v53, %v2941_v53  ;;  %v3503_v14 = vcombine.low %v2941_v53, %v2941_v53 }
 0xad1   : > { %3505 = vmatprep.subr.msk.bf16.mxu0 %vm838_vm0, %v3504_v39  ;;  %v3003_v41 = vsel %vm838_vm0, %v3503_v14, 0  ;;  %vm4906_vm0 = vcmask 31744  }
 0xad2   : > { %3017 = vmatpush1.bf16.msra.mxu0 %v3003_v41  ;;  %vm4907_vm9 = vmmov %vm4906_vm0 }
 0xad5   : > { %3506 = vmatmul.mubr.msk.bf16.vlgmr.msra.gmra.mrb[16].mxu0 %vm4905_vm10, %v2953_v17 }
 0xad7   : > { %v3059_v45 = vpop.permute.xlu0 %3058 }
 0xadb   : > { %v3052_v1 = vpop.permute.xlu1 %3051 }
 0xba8   : > { %v3042_v60 = vpop.f32.mrb[16].mxu0 }
 0xba9   : > { %v3054_v4 = vmul.f32 %v3052_v1, %v3042_v60  ;;  %v3044_v5 = vpop.f32.mrb[17].mxu0 }
 0xbaa   : > { %v3055_v6 = vmul.f32 %v3052_v1, %v3044_v5  ;;  %v3046_v19 = vpop.f32.mrb[18].mxu0 }
 0xbab   : > { %v4582_v16 = vadd.f32 %v3059_v45, %v3054_v4  ;;  %v3047_v59 = vpop.f32.mrb[19].mxu0 }
 0xbac   : > { %v4584_v22 = vadd.f32 %v3059_v45, %v3055_v6 }
 0xbae   : > { %v3063_v62 = vadd.f32 %v4584_v22, %v4582_v16 }
 0xbb0   : > { %3064 = vadd.xlane.f32.xlu1 %v3063_v62 }
 0xbc1   : > { %3119 = vperm.xlu1 %3607, %v3116_v7  }
 0xc3d   : > { %v3065_v9 = vpop.xlane.xlu1 %3064 }
 0xc3e   : > { %v3066_v36 = vmul.f32 0.00390625, %v3065_v9 }
 0xc40   : > { %v3068_v24 = vmul.f32 %v3067_v3, %v3066_v36 }
 0xc41   : > { %v3120_v0 = vpop.permute.xlu1 %3119 }
 0xc42   : > { %v3069_v25 = vsel %vm4906_vm0, %v3068_v24, 0.0  ;;  %v3125_v39 = vrot.slane %v3120_v0, %v4240_v38  ;;  %v4615_v24 = vld [vmem:[#allocation5 + $0x10] sm:$0xff]  ;;  %v3227_v0 = vld [vmem:[%s4908_s25 + $0xe8] sm:$0xff] }
 0xc43   : > { %v3070_v47 = vrot.slane %v3069_v25, 4 }
 0xc45   : > { %v3071_v61 = vadd.f32 %v3070_v47, %v3069_v25 }
 0xc47   : > { %v3072_v54 = vrot.slane %v3071_v61, 2 }
 0xc49   : > { %v3073_v26 = vadd.f32 %v3072_v54, %v3071_v61  ;;  %v3214_v61 = vld [vmem:[%s4908_s25 + $0x80] sm:$0xff] }
 0xc4b   : > { %v3074_v12 = vrot.slane %v3073_v26, 1 }
 0xc4d   : > { %v3075_v32 = vadd.f32 %v3074_v12, %v3073_v26 }
 0xc4f   : > { %v3077_v15 = vadd.f32 %v3076_v27, %v3075_v32  ;;  %v3200_v32 = vld [vmem:[%s4908_s25 + $0x10] sm:$0xff] }
 0xc51   : > { %v3078_v20 = vmax.f32 %v3077_v15, 0.0  ;;  %v3201_v15 = vld [vmem:[%s4908_s25 + $0x18] sm:$0xff] }
 0xc53   : > { %v3083_v11 = vrot.slane %v3078_v20, %v4240_v38  ;;  %v3218_v20 = vld [vmem:[%s4908_s25 + $0xa0] sm:$0xff] }
 0xc55   : > { %v3084_v18 = vmul.f32 %v3083_v11, %v3079_v34  ;;  %v3219_v34 = vld [vmem:[%s4908_s25 + $0xa8] sm:$0xff] }
 0xc57   : > { %v3085_v33 = vsel %vm4907_vm9, %v3084_v18, 0.0  ;;  %v3562_v18 = vpack.c.bf16 %v3201_v15, %v3200_v32 }
 0xc58   : > { %3086 = vadd.xlane.f32.xlu0 %v3085_v33  ;;  %v3564_v33 = vpack.c.bf16 %v3219_v34, %v3218_v20 }
 0xc6e   : > { %3099 = vperm.xlu0 %3606, %v3096_v37   ;;  %v3202_v37 = vld [vmem:[%s4908_s25 + $0x20] sm:$0xff] }
 0xce5   : > { %v3087_v2 = vpop.xlane.xlu0 %3086 }
 0xce6   : > { %v3089_v48 = vadd.f32 %v3088_v50, %v3087_v2  ;;  %v3220_v50 = vld [vmem:[%s4908_s25 + $0xb0] sm:$0xff]  ;;  %v3221_v2 = vld [vmem:[%s4908_s25 + $0xb8] sm:$0xff] }
 0xce8   : > { %v3507_v10 = vmul.f32 -1.442695, %v3089_v48  ;;  %v3566_v48 = vpack.c.bf16 %v3203_v21, %v3202_v37 }
 0xcea   : > { %3655 = vpow2.f32 %v3507_v10  ;;  %v3568_v10 = vpack.c.bf16 %v3221_v2, %v3220_v50 }
 0xced   : > { %v3100_v35 = vpop.permute.xlu0 %3099 }
 0xcee   : > { %v3102_v44 = vmul.f32 %v3100_v35, %v4582_v16  ;;  %v3103_v57 = vmul.f32 %v3100_v35, %v4584_v22  ;;  %v3223_v35 = vld [vmem:[%s4908_s25 + $0xc8] sm:$0xff] }
 0xcf0   : > { %v3104_v23 = vrot.slane %v3102_v44, 4  ;;  %v3110_v43 = vrot.slane %v3103_v57, 4 }
 0xcf2   : > { %v3105_v29 = vadd.f32 %v3104_v23, %v3102_v44  ;;  %v3111_v28 = vadd.f32 %v3110_v43, %v3103_v57  ;;  %v3206_v23 = vld [vmem:[%s4908_s25 + $0x40] sm:$0xff]  ;;  %v3207_v43 = vld [vmem:[%s4908_s25 + $0x48] sm:$0xff] }
 0xcf4   : > { %v3656_v49 = vpop.eup %3655  ;;  %v3106_v58 = vrot.slane %v3105_v29, 2  ;;  %v3112_v31 = vrot.slane %v3111_v28, 2 }
 0xcf5   : > { %v3093_v8 = vadd.f32 1.0, %v3656_v49  ;;  %v3204_v49 = vld [vmem:[%s4908_s25 + $0x30] sm:$0xff] }
 0xcf6   : > { %v3107_v30 = vadd.f32 %v3106_v58, %v3105_v29  ;;  %v3113_v63 = vadd.f32 %v3112_v31, %v3111_v28  ;;  %v3224_v29 = vld [vmem:[%s4908_s25 + $0xd0] sm:$0xff]  ;;  %v3225_v28 = vld [vmem:[%s4908_s25 + $0xd8] sm:$0xff]  ;;  %v3574_v58 = vpack.c.bf16 %v3207_v43, %v3206_v23 }
 0xcf7   : > { %3657 = vrcp.f32 %v3093_v8  ;;  %v3205_v8 = vld [vmem:[%s4908_s25 + $0x38] sm:$0xff]  ;;  %v3576_v31 = vpack.c.bf16 %v3225_v28, %v3224_v29 }
 0xcf8   : > { %v3108_v46 = vrot.slane %v3107_v30, 1  ;;  %v3114_v40 = vrot.slane %v3113_v63, 1  ;;  %v3570_v44 = vpack.c.bf16 %v3205_v8, %v3204_v49 }
 0xcfa   : > { %v3109_v42 = vadd.f32 %v3108_v46, %v3107_v30  ;;  %v3115_v53 = vadd.f32 %v3114_v40, %v3113_v63  ;;  %v3208_v30 = vld [vmem:[%s4908_s25 + $0x50] sm:$0xff]  ;;  %v3209_v63 = vld [vmem:[%s4908_s25 + $0x58] sm:$0xff]  ;;  %v3226_v40 = vld [vmem:[%s4908_s25 + $0xe0] sm:$0xff] }
 0xcfb   : > { %v3578_v46 = vpack.c.bf16 %v3209_v63, %v3208_v30 }
 0xcfc   : > { %v3126_v14 = vadd.f32 %v3125_v39, %v3109_v42  ;;  %v3127_v41 = vadd.f32 %v3125_v39, %v3115_v53  ;;  %v3210_v42 = vld [vmem:[%s4908_s25 + $0x60] sm:$0xff]  ;;  %v3580_v53 = vpack.c.bf16 %v3227_v0, %v3226_v40  ;;  %v3211_v39 = vld [vmem:[%s4908_s25 + $0x68] sm:$0xff] }
 0xcfe   : > { %v3508_v17 = vmul.f32 -1.442695, %v3126_v14  ;;  %v3509_v1 = vmul.f32 -1.442695, %v3127_v41  ;;  %v3582_v14 = vpack.c.bf16 %v3211_v39, %v3210_v42  ;;  %v3228_v41 = vld [vmem:[%s4908_s25 + $0xf0] sm:$0xff] }
 0xd00   : > { %3659 = vpow2.f32 %v3508_v17  ;;  %v3229_v17 = vld [vmem:[%s4908_s25 + $0xf8] sm:$0xff] }
 0xd01   : > { %v3658_v56 = vpop.eup %3657  ;;  %3661 = vpow2.f32 %v3509_v1  ;;  %v3212_v1 = vld [vmem:[%s4908_s25 + $0x70] sm:$0xff] }
 0xd02   : > { %3142 = vperm.xlu1 %3607, %v3658_v56   ;;  %v3222_v56 = vld [vmem:[%s4908_s25 + $0xc0] sm:$0xff] }
 0xd03   : > { %v3572_v57 = vpack.c.bf16 %v3223_v35, %v3222_v56 }
 0xd0a   : > { %v3660_v60 = vpop.eup %3659 }
 0xd0b   : > { %v3662_v4 = vpop.eup %3661  ;;  %v3134_v5 = vadd.f32 1.0, %v3660_v60  ;;  %v3584_v60 = vpack.c.bf16 %v3229_v17, %v3228_v41 }
 0xd0c   : > { %v3135_v45 = vadd.f32 1.0, %v3662_v4  ;;  %v3213_v4 = vld [vmem:[%s4908_s25 + $0x78] sm:$0xff] }
 0xd0d   : > { %3663 = vrcp.f32 %v3134_v5 }
 0xd0e   : > { %3665 = vrcp.f32 %v3135_v45  ;;  %v3586_v45 = vpack.c.bf16 %v3213_v4, %v3212_v1 }
 0xd17   : > { %v3664_v6 = vpop.eup %3663 }
 0xd18   : > { %v3666_v19 = vpop.eup %3665  ;;  %v3147_v62 = vmul.f32 %v3664_v6, %v4582_v16 }
 0xd19   : > { %v3148_v38 = vmul.f32 %v3666_v19, %v4584_v22 }
 0xd81   : > { %v3143_v59 = vpop.permute.xlu1 %3142 }
 0xd82   : > { %v3145_v7 = vmul.f32 %v3143_v59, %v4582_v16  ;;  %v3146_v3 = vmul.f32 %v3143_v59, %v4584_v22  ;;  %v3215_v16 = vld [vmem:[%s4908_s25 + $0x88] sm:$0xff]  ;;  %v3198_v22 = vld [vmem:[%s4908_s25] sm:$0xff] }
 0xd83   : > { %v3556_v13 = vpack.c.bf16 %v3215_v16, %v3214_v61  ;;  %v3558_v12 = vpack.c.bf16 %v3199_v51, %v3198_v22 }
 0xd84   : > { %v3149_v9 = vadd.f32 %v3147_v62, %v3145_v7  ;;  %v3150_v36 = vadd.f32 %v3148_v38, %v3146_v3 }
 0xd85   : > { %3557 = vmatprep.subr.bf16.mxu1 %v3556_v13 }
 0xd86   : > { %v3151_v25 = vadd.f32 %v3149_v9, %v2057_v52  ;;  %v3152_v47 = vadd.f32 %v3150_v36, %v2058_v55  ;;  %v3216_v52 = vld [vmem:[%s4908_s25 + $0x90] sm:$0xff]  ;;  %v3217_v55 = vld [vmem:[%s4908_s25 + $0x98] sm:$0xff]  ;;  %3559 = vmatpush3.bf16.msra.mxu1 %v3558_v12 }
 0xd87   : > { %v3560_v27 = vpack.c.bf16 %v3217_v55, %v3216_v52 }
 0xd88   : > { %v4642_v54 = vmax.f32 %v3151_v25, 0.0  ;;  %v4644_v26 = vmax.f32 %v3152_v47, 0.0 }
 0xd89   : > { %3561 = vmatprep.subr.bf16.mxu1 %v3560_v27 }
 0xd8a   : > { %3155 = vst [vmem:[%s829_s29] sm:$0xff] %v4642_v54  ;;  %3156 = vst [vmem:[%s829_s29 + $0x8] sm:$0xff] %v4644_v26  ;;  %3165 = vrot.lane.b32.xlu1 %v4642_v54, %s4909_s4  ;;  %v3608_v11 = vpack.i.bf16 %v4615_v24, %v4644_v26  ;;  %3563 = vmatpush3.bf16.msra.mxu1 %v3562_v18 }
 0xd8b   : > { %3565 = vmatprep.subr.bf16.mxu1 %v3564_v33 }
 0xd8c   : > { %3609 = vrot.lane.b32.xlu0 %v3608_v11, %s4909_s4 }
 0xd8e   : > { %3567 = vmatpush3.bf16.msra.mxu1 %v3566_v48 }
 0xd8f   : > { %3569 = vmatprep.subr.bf16.mxu1 %v3568_v10 }
 0xd92   : > { %3571 = vmatpush3.bf16.msra.mxu1 %v3570_v44 }
 0xd93   : > { %3573 = vmatprep.subr.bf16.mxu1 %v3572_v57 }
 0xd96   : > { %3575 = vmatpush3.bf16.msra.mxu1 %v3574_v58 }
 0xd97   : > { %3577 = vmatprep.subr.bf16.mxu1 %v3576_v31 }
 0xd9a   : > { %3579 = vmatpush3.bf16.msra.mxu1 %v3578_v46 }
 0xd9b   : > { %3581 = vmatprep.subr.bf16.mxu1 %v3580_v53 }
 0xd9e   : > { %3583 = vmatpush3.bf16.msra.mxu1 %v3582_v14 }
 0xd9f   : > { %3585 = vmatprep.subr.bf16.mxu1 %v3584_v60 }
 0xda2   : > { %3587 = vmatpush3.bf16.msra.mxu1 %v3586_v45 }
 0xdfc   : > { %v3166_v59 = vpop.permute.xlu1 %3165 }
 0xdfe   : > { %v3610_v5 = vpop.permute.xlu0 %3609 }
 0xdff   : > { %v3612_v6 = vunpack.i.h.bf16 %v3610_v5  ;;  %v3611_v19 = vunpack.i.l.bf16 %v3610_v5 }
 0xe01   : > { %v3181_v62 = vmax.f32 %v4615_v24, %v3612_v6  ;;  %v3173_v38 = vsel %vm4910_vm5, %v3611_v19, %v3612_v6  ;;  %v3172_v7 = vsel %vm4911_vm14, %v3166_v59, %v3611_v19 }
 0xe02   : > { %v3180_v3 = vmax.f32 %v4644_v26, %v3173_v38  ;;  %v3176_v9 = vmax.f32 %v4642_v54, %v3172_v7 }
 0xe04   : > { %v3613_v36 = vpack.i.bf16 %v3181_v62, %v3180_v3  ;;  %3185 = vrot.lane.b32.xlu1 %v3176_v9, %s4870_s6 }
 0xe06   : > { %3614 = vrot.lane.b32.xlu0 %v3613_v36, %s4870_s6 }
 0xe76   : > { %v3186_v16 = vpop.permute.xlu1 %3185 }
 0xe78   : > { %v3615_v25 = vpop.permute.xlu0 %3614 }
 0xe79   : > { %v3617_v47 = vunpack.i.h.bf16 %v3615_v25  ;;  %v3616_v61 = vunpack.i.l.bf16 %v3615_v25 }
 0xe7b   : > { %v3192_v24 = vsel %vm4912_vm7, %v3186_v16, %v3616_v61  ;;  %v3193_v22 = vsel %vm4913_vm13, %v3616_v61, %v3617_v47 }
 0xe7c   : > { %v3196_v13 = vmax.f32 %v3176_v9, %v3192_v24  ;;  %v3197_v51 = vmax.f32 %v3180_v3, %v3193_v22 }
 0xe7e   : > { %3294 = vmatprep.mubr.f32.mxu1 %v3197_v51 }
 0xe7f   : > { %3295 = vmatmul.mubr.f32.vlgmr.msra.gmra.mrb[16].mxu1 %v3196_v13 }
 0xf52   : > { %v3553_v52 = vpop.f32.mrb[16].mxu1 }
 0xf53   : > { %v3554_v55 = vpop.f32.mrb[17].mxu1 }
 0xf54   : > { %v3555_v54 = vadd.f32 %v3554_v55, %v3553_v52 }
 0xf56   : > { %3301 = vst.msk [vmem:[%s833_s12] sm:$0xff] %vm3300_vm3, %v3555_v54 }
 0xf57 PF: > { %s42_s9 = sadd.s32 1, %s3673_s9  }
 0xf58   : > { %p39_p4 = scmp.ge.s32.totalorder %s42_s9, 4  }
 0xf5a   :  { %41 = sbr.rel (!%p39_p4) target bundleno = 13 (0xd), region = 168 }

</bundles_post_ra>
